<compile_context>
chip_gen: v7x
topology: tpu7x:2x2x1
jax: 0.10.0
libtpu: 0.0.40
codegen_flags: <defaults>
</compile_context>

<pallas_src>
import functools

import jax
import jax.numpy as jnp
from jax.experimental import pallas as pl
from jax.experimental.pallas import tpu as pltpu


# ---------------------------------------------------------------------------
# Fused kernel: QKV projections + multi-head attention + output projection,
# one batch element per grid step.
# ---------------------------------------------------------------------------
def cross_attn_kernel(fea_ref, dep_ref, wq_ref, wkv_ref, wp_ref, bp_ref,
                      out_ref, *, num_heads, scale):
    # Activations arrive as f32; cast MXU operands to bf16 (f32 accumulation).
    fea = fea_ref[0].astype(jnp.bfloat16)               # (N1, dim1)
    dep = dep_ref[0].astype(jnp.bfloat16)               # (N2, dim2)

    # Q projection and fused K|V projection (one 2*dim-wide MXU pass).
    q = jnp.dot(fea, wq_ref[...], preferred_element_type=jnp.float32)   # (N1, dim)
    kv = jnp.dot(dep, wkv_ref[...], preferred_element_type=jnp.float32) # (N2, 2*dim)

    dim = q.shape[-1]
    hd = dim // num_heads

    k = kv[:, :dim]                                      # (N2, dim) f32
    v = kv[:, dim:].astype(jnp.bfloat16)                 # (N2, dim) bf16

    # Fold the softmax scale into q once; transpose K once (XLU), so per-head
    # slices of kT are cheap sublane slices instead of per-head transposes.
    q = (q * scale).astype(jnp.bfloat16)                 # (N1, dim)
    kT = k.T.astype(jnp.bfloat16)                        # (dim, N2)

    # Static per-head loop (8 heads); results collected register-side.
    ohs = []
    for h in range(num_heads):
        qh = q[:, h * hd:(h + 1) * hd]                   # (N1, hd)  lane slice
        khT = kT[h * hd:(h + 1) * hd, :]                 # (hd, N2)  sublane slice
        vh = v[:, h * hd:(h + 1) * hd]                   # (N2, hd)

        s = jnp.dot(qh, khT, preferred_element_type=jnp.float32)    # (N1, N2)

        # Numerically-stable softmax; divide folded into an approx-reciprocal
        # multiply applied on the (N1, hd) result rather than the probs.
        m = jnp.max(s, axis=-1, keepdims=True)
        p = jnp.exp(s - m)
        denom = jnp.sum(p, axis=-1, keepdims=True)
        oh = jnp.dot(p.astype(jnp.bfloat16), vh,
                     preferred_element_type=jnp.float32)             # (N1, hd)
        ohs.append(oh * pl.reciprocal(denom, approx=True))

    av = jnp.concatenate(ohs, axis=-1).astype(jnp.bfloat16)          # (N1, dim)

    # Output projection + bias: single lane-dense (N1, dim1) store.
    out_ref[0] = (jnp.dot(av, wp_ref[...],
                          preferred_element_type=jnp.float32) + bp_ref[...])


# ---------------------------------------------------------------------------
# Wrapper
# ---------------------------------------------------------------------------
def cross_attention_forward(fea, depth_fea, params):
    B, N1, dim1 = fea.shape
    _, N2, dim2 = depth_fea.shape
    num_heads = params["num_heads"]
    wq, wk, wv = params["wq1"], params["wk2"], params["wv2"]   # (dim1,dim),(dim2,dim),(dim2,dim)
    wp, bp = params["w_proj"], params["b_proj"]                # (dim, dim1), (1, dim1)
    dim = wq.shape[1]
    assert dim % num_heads == 0
    hd = dim // num_heads
    scale = hd ** (-0.5)

    # bf16 weights (halve weight DMA bytes, native MXU dtype); K|V packed.
    wq_b = wq.astype(jnp.bfloat16)
    wkv_b = jnp.concatenate([wk, wv], axis=1).astype(jnp.bfloat16)   # (dim2, 2*dim)
    wp_b = wp.astype(jnp.bfloat16)

    kernel = functools.partial(cross_attn_kernel, num_heads=num_heads, scale=scale)

    return pl.pallas_call(
        kernel,
        out_shape=jax.ShapeDtypeStruct((B, N1, dim1), jnp.float32),
        grid=(B,),
        in_specs=[
            pl.BlockSpec((1, N1, dim1), lambda b: (b, 0, 0)),
            pl.BlockSpec((1, N2, dim2), lambda b: (b, 0, 0)),
            pl.BlockSpec((dim1, dim), lambda b: (0, 0)),
            pl.BlockSpec((dim2, 2 * dim), lambda b: (0, 0)),
            pl.BlockSpec((dim, dim1), lambda b: (0, 0)),
            pl.BlockSpec((1, dim1), lambda b: (0, 0)),
        ],
        out_specs=pl.BlockSpec((1, N1, dim1), lambda b: (b, 0, 0)),
        compiler_params=pltpu.CompilerParams(
            dimension_semantics=("parallel",)),   # B axis -> 2nd TC on v7x
    )(fea, depth_fea, wq_b, wkv_b, wp_b, bp)


# ---------------------------------------------------------------------------
# Pure-JAX f32 reference (PyTorch-equivalent semantics) for correctness check
# ---------------------------------------------------------------------------
def cross_attention_reference(fea, depth_fea, params):
    B, N1, dim1 = fea.shape
    _, N2, dim2 = depth_fea.shape
    nh = params["num_heads"]
    dim = params["wq1"].shape[1]
    hd = dim // nh
    scale = hd ** (-0.5)

    q = (fea @ params["wq1"]).reshape(B, N1, nh, hd).transpose(0, 2, 1, 3)
    k = (depth_fea @ params["wk2"]).reshape(B, N2, nh, hd).transpose(0, 2, 1, 3)
    v = (depth_fea @ params["wv2"]).reshape(B, N2, nh, hd).transpose(0, 2, 1, 3)

    s = jnp.einsum("bhqd,bhkd->bhqk", q, k) * scale
    a = jax.nn.softmax(s, axis=-1)
    av = jnp.einsum("bhqk,bhkd->bhqd", a, v).transpose(0, 2, 1, 3).reshape(B, N1, dim)
    return av @ params["w_proj"] + params["b_proj"][0]


if __name__ == "__main__":
    # Small, lane-dense shapes consistent with the module's forward:
    #   fea:       (B, N1, dim1)
    #   depth_fea: (B, N2, dim2)
    B, N1, N2 = 2, 64, 32
    dim1, dim2, dim = 128, 128, 128
    num_heads = 8

    key = jax.random.PRNGKey(0)
    keys = jax.random.split(key, 8)

    params = {
        "num_heads": num_heads,
        # weights stored pre-transposed for x @ W (equivalent to nn.Linear W.T)
        "wq1": 0.1 * jax.random.normal(keys[0], (dim1, dim), jnp.float32),
        "wk2": 0.1 * jax.random.normal(keys[1], (dim2, dim), jnp.float32),
        "wv2": 0.1 * jax.random.normal(keys[2], (dim2, dim), jnp.float32),
        "w_proj": 0.1 * jax.random.normal(keys[3], (dim, dim1), jnp.float32),
        "b_proj": 0.1 * jax.random.normal(keys[4], (1, dim1), jnp.float32),
    }

    fea = jax.random.normal(keys[5], (B, N1, dim1), jnp.float32)
    depth_fea = jax.random.normal(keys[6], (B, N2, dim2), jnp.float32)

    out = cross_attention_forward(fea, depth_fea, params)
    out = jax.block_until_ready(out)

    ref = cross_attention_reference(fea, depth_fea, params)
    assert out.shape == (B, N1, dim1)
    # bf16 MXU operands (f32 accumulation) -> loosened tolerance vs f32 ref.
    assert jnp.allclose(out, ref, atol=5e-2, rtol=5e-2), "mismatch vs reference"

    print("KERNEL_OK")
</pallas_src>

<mosaic_0001>
module attributes {stable_mosaic.version = 11 : i64} {
  func.func @cross_attn_kernel(%arg0: i32, %arg1: memref<1x64x128xf32, #tpu.memory_space<vmem>>, %arg2: memref<1x32x128xf32, #tpu.memory_space<vmem>>, %arg3: memref<128x128xbf16, #tpu.memory_space<vmem>>, %arg4: memref<128x256xbf16, #tpu.memory_space<vmem>>, %arg5: memref<128x128xbf16, #tpu.memory_space<vmem>>, %arg6: memref<1x128xf32, #tpu.memory_space<vmem>>, %arg7: memref<1x64x128xf32, #tpu.memory_space<vmem>>) attributes {dimension_semantics = [#tpu.dimension_semantics<parallel>], iteration_bounds = array<i64: 2>, scalar_prefetch = 0 : i64, scratch_operands = 0 : i64, tpu.core_type = #tpu.core_type<tc>, window_params = [{transform_indices = @transform_0, window_bounds = array<i64: 1, 64, 128>}, {transform_indices = @transform_1, window_bounds = array<i64: 1, 32, 128>}, {pipeline_mode = #tpu.pipeline_mode<synchronous>, transform_indices = @transform_2, window_bounds = array<i64: 128, 128>}, {pipeline_mode = #tpu.pipeline_mode<synchronous>, transform_indices = @transform_3, window_bounds = array<i64: 128, 256>}, {pipeline_mode = #tpu.pipeline_mode<synchronous>, transform_indices = @transform_4, window_bounds = array<i64: 128, 128>}, {pipeline_mode = #tpu.pipeline_mode<synchronous>, transform_indices = @transform_5, window_bounds = array<i64: 1, 128>}, {transform_indices = @transform_6, window_bounds = array<i64: 1, 64, 128>}]} {
    %c0 = arith.constant 0 : index
    %c0_0 = arith.constant 0 : index
    %c0_1 = arith.constant 0 : index
    %0 = vector.load %arg1[%c0, %c0_0, %c0_1] : memref<1x64x128xf32, #tpu.memory_space<vmem>>, vector<1x64x128xf32>
    %1 = vector.shape_cast %0 : vector<1x64x128xf32> to vector<64x128xf32>
    %2 = arith.truncf %1 : vector<64x128xf32> to vector<64x128xbf16>
    %c0_2 = arith.constant 0 : index
    %c0_3 = arith.constant 0 : index
    %c0_4 = arith.constant 0 : index
    %3 = vector.load %arg2[%c0_2, %c0_3, %c0_4] : memref<1x32x128xf32, #tpu.memory_space<vmem>>, vector<1x32x128xf32>
    %4 = vector.shape_cast %3 : vector<1x32x128xf32> to vector<32x128xf32>
    %5 = arith.truncf %4 : vector<32x128xf32> to vector<32x128xbf16>
    %c0_5 = arith.constant 0 : index
    %c0_6 = arith.constant 0 : index
    %6 = vector.load %arg3[%c0_5, %c0_6] : memref<128x128xbf16, #tpu.memory_space<vmem>>, vector<128x128xbf16>
    %cst = arith.constant dense<0.000000e+00> : vector<64x128xf32>
    %7 = tpu.matmul %2, %6, %cst {dimension_numbers = #tpu.dot_dimension_numbers<[1], [0], [0], [1], [0, 0, 1, 1], [], []>} : vector<64x128xbf16>, vector<128x128xbf16>, vector<64x128xf32> -> vector<64x128xf32>
    %c0_7 = arith.constant 0 : index
    %c0_8 = arith.constant 0 : index
    %8 = vector.load %arg4[%c0_7, %c0_8] : memref<128x256xbf16, #tpu.memory_space<vmem>>, vector<128x256xbf16>
    %cst_9 = arith.constant dense<0.000000e+00> : vector<32x256xf32>
    %9 = tpu.matmul %5, %8, %cst_9 {dimension_numbers = #tpu.dot_dimension_numbers<[1], [0], [0], [1], [0, 0, 1, 1], [], []>} : vector<32x128xbf16>, vector<128x256xbf16>, vector<32x256xf32> -> vector<32x256xf32>
    %10 = vector.extract_strided_slice %9 {offsets = [0, 0], sizes = [32, 128], strides = [1, 1]} : vector<32x256xf32> to vector<32x128xf32>
    %11 = vector.extract_strided_slice %9 {offsets = [0, 128], sizes = [32, 128], strides = [1, 1]} : vector<32x256xf32> to vector<32x128xf32>
    %12 = arith.truncf %11 : vector<32x128xf32> to vector<32x128xbf16>
    %cst_10 = arith.constant 2.500000e-01 : f32
    %13 = vector.broadcast %cst_10 : f32 to vector<64x128xf32>
    %14 = arith.mulf %7, %13 : vector<64x128xf32>
    %15 = arith.truncf %14 : vector<64x128xf32> to vector<64x128xbf16>
    %16 = tpu.transpose %10, [1, 0] : vector<32x128xf32> -> vector<128x32xf32>
    %17 = arith.truncf %16 : vector<128x32xf32> to vector<128x32xbf16>
    %18 = vector.extract_strided_slice %15 {offsets = [0, 0], sizes = [64, 16], strides = [1, 1]} : vector<64x128xbf16> to vector<64x16xbf16>
    %19 = vector.extract_strided_slice %17 {offsets = [0, 0], sizes = [16, 32], strides = [1, 1]} : vector<128x32xbf16> to vector<16x32xbf16>
    %20 = vector.extract_strided_slice %12 {offsets = [0, 0], sizes = [32, 16], strides = [1, 1]} : vector<32x128xbf16> to vector<32x16xbf16>
    %cst_11 = arith.constant dense<0.000000e+00> : vector<64x32xf32>
    %21 = tpu.matmul %18, %19, %cst_11 {dimension_numbers = #tpu.dot_dimension_numbers<[1], [0], [0], [1], [0, 0, 1, 1], [], []>} : vector<64x16xbf16>, vector<16x32xbf16>, vector<64x32xf32> -> vector<64x32xf32>
    %cst_12 = arith.constant dense<0xFF800000> : vector<64xf32>
    %22 = vector.multi_reduction <maximumf>, %21, %cst_12 [1] : vector<64x32xf32> to vector<64xf32>
    %23 = vector.shape_cast %22 : vector<64xf32> to vector<64x1xf32>
    %24 = vector.broadcast %23 : vector<64x1xf32> to vector<64x32xf32>
    %25 = arith.subf %21, %24 : vector<64x32xf32>
    %26 = math.exp %25 : vector<64x32xf32>
    %cst_13 = arith.constant dense<0.000000e+00> : vector<64xf32>
    %27 = vector.multi_reduction <add>, %26, %cst_13 [1] : vector<64x32xf32> to vector<64xf32>
    %28 = vector.shape_cast %27 : vector<64xf32> to vector<64x1xf32>
    %29 = arith.truncf %26 : vector<64x32xf32> to vector<64x32xbf16>
    %cst_14 = arith.constant dense<0.000000e+00> : vector<64x16xf32>
    %30 = tpu.matmul %29, %20, %cst_14 {dimension_numbers = #tpu.dot_dimension_numbers<[1], [0], [0], [1], [0, 0, 1, 1], [], []>} : vector<64x32xbf16>, vector<32x16xbf16>, vector<64x16xf32> -> vector<64x16xf32>
    %31 = tpu.reciprocal %28 {approx = true} : vector<64x1xf32> -> vector<64x1xf32>
    %32 = vector.broadcast %31 : vector<64x1xf32> to vector<64x16xf32>
    %33 = arith.mulf %30, %32 : vector<64x16xf32>
    %34 = vector.extract_strided_slice %15 {offsets = [0, 16], sizes = [64, 16], strides = [1, 1]} : vector<64x128xbf16> to vector<64x16xbf16>
    %35 = vector.extract_strided_slice %17 {offsets = [16, 0], sizes = [16, 32], strides = [1, 1]} : vector<128x32xbf16> to vector<16x32xbf16>
    %36 = vector.extract_strided_slice %12 {offsets = [0, 16], sizes = [32, 16], strides = [1, 1]} : vector<32x128xbf16> to vector<32x16xbf16>
    %cst_15 = arith.constant dense<0.000000e+00> : vector<64x32xf32>
    %37 = tpu.matmul %34, %35, %cst_15 {dimension_numbers = #tpu.dot_dimension_numbers<[1], [0], [0], [1], [0, 0, 1, 1], [], []>} : vector<64x16xbf16>, vector<16x32xbf16>, vector<64x32xf32> -> vector<64x32xf32>
    %cst_16 = arith.constant dense<0xFF800000> : vector<64xf32>
    %38 = vector.multi_reduction <maximumf>, %37, %cst_16 [1] : vector<64x32xf32> to vector<64xf32>
    %39 = vector.shape_cast %38 : vector<64xf32> to vector<64x1xf32>
    %40 = vector.broadcast %39 : vector<64x1xf32> to vector<64x32xf32>
    %41 = arith.subf %37, %40 : vector<64x32xf32>
    %42 = math.exp %41 : vector<64x32xf32>
    %cst_17 = arith.constant dense<0.000000e+00> : vector<64xf32>
    %43 = vector.multi_reduction <add>, %42, %cst_17 [1] : vector<64x32xf32> to vector<64xf32>
    %44 = vector.shape_cast %43 : vector<64xf32> to vector<64x1xf32>
    %45 = arith.truncf %42 : vector<64x32xf32> to vector<64x32xbf16>
    %cst_18 = arith.constant dense<0.000000e+00> : vector<64x16xf32>
    %46 = tpu.matmul %45, %36, %cst_18 {dimension_numbers = #tpu.dot_dimension_numbers<[1], [0], [0], [1], [0, 0, 1, 1], [], []>} : vector<64x32xbf16>, vector<32x16xbf16>, vector<64x16xf32> -> vector<64x16xf32>
    %47 = tpu.reciprocal %44 {approx = true} : vector<64x1xf32> -> vector<64x1xf32>
    %48 = vector.broadcast %47 : vector<64x1xf32> to vector<64x16xf32>
    %49 = arith.mulf %46, %48 : vector<64x16xf32>
    %50 = vector.extract_strided_slice %15 {offsets = [0, 32], sizes = [64, 16], strides = [1, 1]} : vector<64x128xbf16> to vector<64x16xbf16>
    %51 = vector.extract_strided_slice %17 {offsets = [32, 0], sizes = [16, 32], strides = [1, 1]} : vector<128x32xbf16> to vector<16x32xbf16>
    %52 = vector.extract_strided_slice %12 {offsets = [0, 32], sizes = [32, 16], strides = [1, 1]} : vector<32x128xbf16> to vector<32x16xbf16>
    %cst_19 = arith.constant dense<0.000000e+00> : vector<64x32xf32>
    %53 = tpu.matmul %50, %51, %cst_19 {dimension_numbers = #tpu.dot_dimension_numbers<[1], [0], [0], [1], [0, 0, 1, 1], [], []>} : vector<64x16xbf16>, vector<16x32xbf16>, vector<64x32xf32> -> vector<64x32xf32>
    %cst_20 = arith.constant dense<0xFF800000> : vector<64xf32>
    %54 = vector.multi_reduction <maximumf>, %53, %cst_20 [1] : vector<64x32xf32> to vector<64xf32>
    %55 = vector.shape_cast %54 : vector<64xf32> to vector<64x1xf32>
    %56 = vector.broadcast %55 : vector<64x1xf32> to vector<64x32xf32>
    %57 = arith.subf %53, %56 : vector<64x32xf32>
    %58 = math.exp %57 : vector<64x32xf32>
    %cst_21 = arith.constant dense<0.000000e+00> : vector<64xf32>
    %59 = vector.multi_reduction <add>, %58, %cst_21 [1] : vector<64x32xf32> to vector<64xf32>
    %60 = vector.shape_cast %59 : vector<64xf32> to vector<64x1xf32>
    %61 = arith.truncf %58 : vector<64x32xf32> to vector<64x32xbf16>
    %cst_22 = arith.constant dense<0.000000e+00> : vector<64x16xf32>
    %62 = tpu.matmul %61, %52, %cst_22 {dimension_numbers = #tpu.dot_dimension_numbers<[1], [0], [0], [1], [0, 0, 1, 1], [], []>} : vector<64x32xbf16>, vector<32x16xbf16>, vector<64x16xf32> -> vector<64x16xf32>
    %63 = tpu.reciprocal %60 {approx = true} : vector<64x1xf32> -> vector<64x1xf32>
    %64 = vector.broadcast %63 : vector<64x1xf32> to vector<64x16xf32>
    %65 = arith.mulf %62, %64 : vector<64x16xf32>
    %66 = vector.extract_strided_slice %15 {offsets = [0, 48], sizes = [64, 16], strides = [1, 1]} : vector<64x128xbf16> to vector<64x16xbf16>
    %67 = vector.extract_strided_slice %17 {offsets = [48, 0], sizes = [16, 32], strides = [1, 1]} : vector<128x32xbf16> to vector<16x32xbf16>
    %68 = vector.extract_strided_slice %12 {offsets = [0, 48], sizes = [32, 16], strides = [1, 1]} : vector<32x128xbf16> to vector<32x16xbf16>
    %cst_23 = arith.constant dense<0.000000e+00> : vector<64x32xf32>
    %69 = tpu.matmul %66, %67, %cst_23 {dimension_numbers = #tpu.dot_dimension_numbers<[1], [0], [0], [1], [0, 0, 1, 1], [], []>} : vector<64x16xbf16>, vector<16x32xbf16>, vector<64x32xf32> -> vector<64x32xf32>
    %cst_24 = arith.constant dense<0xFF800000> : vector<64xf32>
    %70 = vector.multi_reduction <maximumf>, %69, %cst_24 [1] : vector<64x32xf32> to vector<64xf32>
    %71 = vector.shape_cast %70 : vector<64xf32> to vector<64x1xf32>
    %72 = vector.broadcast %71 : vector<64x1xf32> to vector<64x32xf32>
    %73 = arith.subf %69, %72 : vector<64x32xf32>
    %74 = math.exp %73 : vector<64x32xf32>
    %cst_25 = arith.constant dense<0.000000e+00> : vector<64xf32>
    %75 = vector.multi_reduction <add>, %74, %cst_25 [1] : vector<64x32xf32> to vector<64xf32>
    %76 = vector.shape_cast %75 : vector<64xf32> to vector<64x1xf32>
    %77 = arith.truncf %74 : vector<64x32xf32> to vector<64x32xbf16>
    %cst_26 = arith.constant dense<0.000000e+00> : vector<64x16xf32>
    %78 = tpu.matmul %77, %68, %cst_26 {dimension_numbers = #tpu.dot_dimension_numbers<[1], [0], [0], [1], [0, 0, 1, 1], [], []>} : vector<64x32xbf16>, vector<32x16xbf16>, vector<64x16xf32> -> vector<64x16xf32>
    %79 = tpu.reciprocal %76 {approx = true} : vector<64x1xf32> -> vector<64x1xf32>
    %80 = vector.broadcast %79 : vector<64x1xf32> to vector<64x16xf32>
    %81 = arith.mulf %78, %80 : vector<64x16xf32>
    %82 = vector.extract_strided_slice %15 {offsets = [0, 64], sizes = [64, 16], strides = [1, 1]} : vector<64x128xbf16> to vector<64x16xbf16>
    %83 = vector.extract_strided_slice %17 {offsets = [64, 0], sizes = [16, 32], strides = [1, 1]} : vector<128x32xbf16> to vector<16x32xbf16>
    %84 = vector.extract_strided_slice %12 {offsets = [0, 64], sizes = [32, 16], strides = [1, 1]} : vector<32x128xbf16> to vector<32x16xbf16>
    %cst_27 = arith.constant dense<0.000000e+00> : vector<64x32xf32>
    %85 = tpu.matmul %82, %83, %cst_27 {dimension_numbers = #tpu.dot_dimension_numbers<[1], [0], [0], [1], [0, 0, 1, 1], [], []>} : vector<64x16xbf16>, vector<16x32xbf16>, vector<64x32xf32> -> vector<64x32xf32>
    %cst_28 = arith.constant dense<0xFF800000> : vector<64xf32>
    %86 = vector.multi_reduction <maximumf>, %85, %cst_28 [1] : vector<64x32xf32> to vector<64xf32>
    %87 = vector.shape_cast %86 : vector<64xf32> to vector<64x1xf32>
    %88 = vector.broadcast %87 : vector<64x1xf32> to vector<64x32xf32>
    %89 = arith.subf %85, %88 : vector<64x32xf32>
    %90 = math.exp %89 : vector<64x32xf32>
    %cst_29 = arith.constant dense<0.000000e+00> : vector<64xf32>
    %91 = vector.multi_reduction <add>, %90, %cst_29 [1] : vector<64x32xf32> to vector<64xf32>
    %92 = vector.shape_cast %91 : vector<64xf32> to vector<64x1xf32>
    %93 = arith.truncf %90 : vector<64x32xf32> to vector<64x32xbf16>
    %cst_30 = arith.constant dense<0.000000e+00> : vector<64x16xf32>
    %94 = tpu.matmul %93, %84, %cst_30 {dimension_numbers = #tpu.dot_dimension_numbers<[1], [0], [0], [1], [0, 0, 1, 1], [], []>} : vector<64x32xbf16>, vector<32x16xbf16>, vector<64x16xf32> -> vector<64x16xf32>
    %95 = tpu.reciprocal %92 {approx = true} : vector<64x1xf32> -> vector<64x1xf32>
    %96 = vector.broadcast %95 : vector<64x1xf32> to vector<64x16xf32>
    %97 = arith.mulf %94, %96 : vector<64x16xf32>
    %98 = vector.extract_strided_slice %15 {offsets = [0, 80], sizes = [64, 16], strides = [1, 1]} : vector<64x128xbf16> to vector<64x16xbf16>
    %99 = vector.extract_strided_slice %17 {offsets = [80, 0], sizes = [16, 32], strides = [1, 1]} : vector<128x32xbf16> to vector<16x32xbf16>
    %100 = vector.extract_strided_slice %12 {offsets = [0, 80], sizes = [32, 16], strides = [1, 1]} : vector<32x128xbf16> to vector<32x16xbf16>
    %cst_31 = arith.constant dense<0.000000e+00> : vector<64x32xf32>
    %101 = tpu.matmul %98, %99, %cst_31 {dimension_numbers = #tpu.dot_dimension_numbers<[1], [0], [0], [1], [0, 0, 1, 1], [], []>} : vector<64x16xbf16>, vector<16x32xbf16>, vector<64x32xf32> -> vector<64x32xf32>
    %cst_32 = arith.constant dense<0xFF800000> : vector<64xf32>
    %102 = vector.multi_reduction <maximumf>, %101, %cst_32 [1] : vector<64x32xf32> to vector<64xf32>
    %103 = vector.shape_cast %102 : vector<64xf32> to vector<64x1xf32>
    %104 = vector.broadcast %103 : vector<64x1xf32> to vector<64x32xf32>
    %105 = arith.subf %101, %104 : vector<64x32xf32>
    %106 = math.exp %105 : vector<64x32xf32>
    %cst_33 = arith.constant dense<0.000000e+00> : vector<64xf32>
    %107 = vector.multi_reduction <add>, %106, %cst_33 [1] : vector<64x32xf32> to vector<64xf32>
    %108 = vector.shape_cast %107 : vector<64xf32> to vector<64x1xf32>
    %109 = arith.truncf %106 : vector<64x32xf32> to vector<64x32xbf16>
    %cst_34 = arith.constant dense<0.000000e+00> : vector<64x16xf32>
    %110 = tpu.matmul %109, %100, %cst_34 {dimension_numbers = #tpu.dot_dimension_numbers<[1], [0], [0], [1], [0, 0, 1, 1], [], []>} : vector<64x32xbf16>, vector<32x16xbf16>, vector<64x16xf32> -> vector<64x16xf32>
    %111 = tpu.reciprocal %108 {approx = true} : vector<64x1xf32> -> vector<64x1xf32>
    %112 = vector.broadcast %111 : vector<64x1xf32> to vector<64x16xf32>
    %113 = arith.mulf %110, %112 : vector<64x16xf32>
    %114 = vector.extract_strided_slice %15 {offsets = [0, 96], sizes = [64, 16], strides = [1, 1]} : vector<64x128xbf16> to vector<64x16xbf16>
    %115 = vector.extract_strided_slice %17 {offsets = [96, 0], sizes = [16, 32], strides = [1, 1]} : vector<128x32xbf16> to vector<16x32xbf16>
    %116 = vector.extract_strided_slice %12 {offsets = [0, 96], sizes = [32, 16], strides = [1, 1]} : vector<32x128xbf16> to vector<32x16xbf16>
    %cst_35 = arith.constant dense<0.000000e+00> : vector<64x32xf32>
    %117 = tpu.matmul %114, %115, %cst_35 {dimension_numbers = #tpu.dot_dimension_numbers<[1], [0], [0], [1], [0, 0, 1, 1], [], []>} : vector<64x16xbf16>, vector<16x32xbf16>, vector<64x32xf32> -> vector<64x32xf32>
    %cst_36 = arith.constant dense<0xFF800000> : vector<64xf32>
    %118 = vector.multi_reduction <maximumf>, %117, %cst_36 [1] : vector<64x32xf32> to vector<64xf32>
    %119 = vector.shape_cast %118 : vector<64xf32> to vector<64x1xf32>
    %120 = vector.broadcast %119 : vector<64x1xf32> to vector<64x32xf32>
    %121 = arith.subf %117, %120 : vector<64x32xf32>
    %122 = math.exp %121 : vector<64x32xf32>
    %cst_37 = arith.constant dense<0.000000e+00> : vector<64xf32>
    %123 = vector.multi_reduction <add>, %122, %cst_37 [1] : vector<64x32xf32> to vector<64xf32>
    %124 = vector.shape_cast %123 : vector<64xf32> to vector<64x1xf32>
    %125 = arith.truncf %122 : vector<64x32xf32> to vector<64x32xbf16>
    %cst_38 = arith.constant dense<0.000000e+00> : vector<64x16xf32>
    %126 = tpu.matmul %125, %116, %cst_38 {dimension_numbers = #tpu.dot_dimension_numbers<[1], [0], [0], [1], [0, 0, 1, 1], [], []>} : vector<64x32xbf16>, vector<32x16xbf16>, vector<64x16xf32> -> vector<64x16xf32>
    %127 = tpu.reciprocal %124 {approx = true} : vector<64x1xf32> -> vector<64x1xf32>
    %128 = vector.broadcast %127 : vector<64x1xf32> to vector<64x16xf32>
    %129 = arith.mulf %126, %128 : vector<64x16xf32>
    %130 = vector.extract_strided_slice %15 {offsets = [0, 112], sizes = [64, 16], strides = [1, 1]} : vector<64x128xbf16> to vector<64x16xbf16>
    %131 = vector.extract_strided_slice %17 {offsets = [112, 0], sizes = [16, 32], strides = [1, 1]} : vector<128x32xbf16> to vector<16x32xbf16>
    %132 = vector.extract_strided_slice %12 {offsets = [0, 112], sizes = [32, 16], strides = [1, 1]} : vector<32x128xbf16> to vector<32x16xbf16>
    %cst_39 = arith.constant dense<0.000000e+00> : vector<64x32xf32>
    %133 = tpu.matmul %130, %131, %cst_39 {dimension_numbers = #tpu.dot_dimension_numbers<[1], [0], [0], [1], [0, 0, 1, 1], [], []>} : vector<64x16xbf16>, vector<16x32xbf16>, vector<64x32xf32> -> vector<64x32xf32>
    %cst_40 = arith.constant dense<0xFF800000> : vector<64xf32>
    %134 = vector.multi_reduction <maximumf>, %133, %cst_40 [1] : vector<64x32xf32> to vector<64xf32>
    %135 = vector.shape_cast %134 : vector<64xf32> to vector<64x1xf32>
    %136 = vector.broadcast %135 : vector<64x1xf32> to vector<64x32xf32>
    %137 = arith.subf %133, %136 : vector<64x32xf32>
    %138 = math.exp %137 : vector<64x32xf32>
    %cst_41 = arith.constant dense<0.000000e+00> : vector<64xf32>
    %139 = vector.multi_reduction <add>, %138, %cst_41 [1] : vector<64x32xf32> to vector<64xf32>
    %140 = vector.shape_cast %139 : vector<64xf32> to vector<64x1xf32>
    %141 = arith.truncf %138 : vector<64x32xf32> to vector<64x32xbf16>
    %cst_42 = arith.constant dense<0.000000e+00> : vector<64x16xf32>
    %142 = tpu.matmul %141, %132, %cst_42 {dimension_numbers = #tpu.dot_dimension_numbers<[1], [0], [0], [1], [0, 0, 1, 1], [], []>} : vector<64x32xbf16>, vector<32x16xbf16>, vector<64x16xf32> -> vector<64x16xf32>
    %143 = tpu.reciprocal %140 {approx = true} : vector<64x1xf32> -> vector<64x1xf32>
    %144 = vector.broadcast %143 : vector<64x1xf32> to vector<64x16xf32>
    %145 = arith.mulf %142, %144 : vector<64x16xf32>
    %146 = tpu.concatenate %33, %49, %65, %81, %97, %113, %129, %145 in 1 : vector<64x16xf32>, vector<64x16xf32>, vector<64x16xf32>, vector<64x16xf32>, vector<64x16xf32>, vector<64x16xf32>, vector<64x16xf32>, vector<64x16xf32> -> vector<64x128xf32>
    %147 = arith.truncf %146 : vector<64x128xf32> to vector<64x128xbf16>
    %c0_43 = arith.constant 0 : index
    %c0_44 = arith.constant 0 : index
    %148 = vector.load %arg5[%c0_43, %c0_44] : memref<128x128xbf16, #tpu.memory_space<vmem>>, vector<128x128xbf16>
    %cst_45 = arith.constant dense<0.000000e+00> : vector<64x128xf32>
    %149 = tpu.matmul %147, %148, %cst_45 {dimension_numbers = #tpu.dot_dimension_numbers<[1], [0], [0], [1], [0, 0, 1, 1], [], []>} : vector<64x128xbf16>, vector<128x128xbf16>, vector<64x128xf32> -> vector<64x128xf32>
    %c0_46 = arith.constant 0 : index
    %c0_47 = arith.constant 0 : index
    %150 = vector.load %arg6[%c0_46, %c0_47] : memref<1x128xf32, #tpu.memory_space<vmem>>, vector<1x128xf32>
    %151 = vector.broadcast %150 : vector<1x128xf32> to vector<64x128xf32>
    %152 = arith.addf %149, %151 : vector<64x128xf32>
    %c0_48 = arith.constant 0 : index
    %c0_49 = arith.constant 0 : index
    %c0_50 = arith.constant 0 : index
    %153 = vector.load %arg7[%c0_48, %c0_49, %c0_50] : memref<1x64x128xf32, #tpu.memory_space<vmem>>, vector<1x64x128xf32>
    %154 = vector.shape_cast %153 : vector<1x64x128xf32> to vector<64x128xf32>
    %155 = vector.shape_cast %152 : vector<64x128xf32> to vector<1x64x128xf32>
    tpu.vector_store %arg7[%c0_48, %c0_49, %c0_50], %155 {strides = array<i32>} : memref<1x64x128xf32, #tpu.memory_space<vmem>>, vector<1x64x128xf32>,
    return
  }
  func.func @transform_0(%arg0: i32) -> (i32, i32, i32) {
    %c0_i32 = arith.constant 0 : i32
    %c0_i32_0 = arith.constant 0 : i32
    %c0_i32_1 = arith.constant 0 : i32
    return %arg0, %c0_i32, %c0_i32_0 : i32, i32, i32
  }
  func.func @transform_1(%arg0: i32) -> (i32, i32, i32) {
    %c0_i32 = arith.constant 0 : i32
    %c0_i32_0 = arith.constant 0 : i32
    %c0_i32_1 = arith.constant 0 : i32
    return %arg0, %c0_i32, %c0_i32_0 : i32, i32, i32
  }
  func.func @transform_2(%arg0: i32) -> (i32, i32) {
    %c0_i32 = arith.constant 0 : i32
    %c0_i32_0 = arith.constant 0 : i32
    %c0_i32_1 = arith.constant 0 : i32
    return %c0_i32, %c0_i32_0 : i32, i32
  }
  func.func @transform_3(%arg0: i32) -> (i32, i32) {
    %c0_i32 = arith.constant 0 : i32
    %c0_i32_0 = arith.constant 0 : i32
    %c0_i32_1 = arith.constant 0 : i32
    return %c0_i32, %c0_i32_0 : i32, i32
  }
  func.func @transform_4(%arg0: i32) -> (i32, i32) {
    %c0_i32 = arith.constant 0 : i32
    %c0_i32_0 = arith.constant 0 : i32
    %c0_i32_1 = arith.constant 0 : i32
    return %c0_i32, %c0_i32_0 : i32, i32
  }
  func.func @transform_5(%arg0: i32) -> (i32, i32) {
    %c0_i32 = arith.constant 0 : i32
    %c0_i32_0 = arith.constant 0 : i32
    %c0_i32_1 = arith.constant 0 : i32
    return %c0_i32, %c0_i32_0 : i32, i32
  }
  func.func @transform_6(%arg0: i32) -> (i32, i32, i32) {
    %c0_i32 = arith.constant 0 : i32
    %c0_i32_0 = arith.constant 0 : i32
    %c0_i32_1 = arith.constant 0 : i32
    return %arg0, %c0_i32, %c0_i32_0 : i32, i32, i32
  }
}

</mosaic_0001>

<bundles_post_ra>
// kernel: tpu_custom_call.1
= control target key start
LH: loop header
LB: loop body
LE: loop exit
PB: predicated region body
PF: predicated region fallthrough
CT: control target
= control target key end

     0   :  { %s5980_s0 = inlined_call_operand.hbm [shape: f32[2,64,128], index: 0, kind: input, shape index: {}]   ;;  %s5981_s1 = inlined_call_operand.hbm [shape: f32[2,32,128], index: 1, kind: input, shape index: {}]   ;;  %s5982_s2 = inlined_call_operand.hbm [shape: bf16[128,128], index: 2, kind: input, shape index: {}]   ;;  %s5983_s3 = inlined_call_operand.hbm [shape: bf16[128,256], index: 3, kind: input, shape index: {}]   ;;  %s5984_s4 = inlined_call_operand.hbm [shape: bf16[128,128], index: 4, kind: input, shape index: {}]   ;;  %s5985_s5 = inlined_call_operand.vmem [shape: f32[1,128], index: 5, kind: input, shape index: {}]   ;;  %s5986_s6 = inlined_call_operand.hbm [shape: f32[2,64,128], index: 6, kind: output, shape index: {}]  }
   0x1   :  { %6013 = sst [smem:[#allocation38_spill]] %s5980_s0 }
   0x2   :  { %6014 = sst [smem:[#allocation39_spill]] %s5982_s2 }
   0x3   :  { %6015 = sst [smem:[#allocation40_spill]] %s5983_s3 }
   0x4   :  { %6016 = sst [smem:[#allocation41_spill]] %s5984_s4 }
   0x5   :  { %11 = vsyncpa [#allocation3], 0 }
   0x6   :  { %13 = vsyncpa [#allocation3 + $0x1], 0 }
   0x7   :  { %14 = vsyncpa [#allocation6], 0 }
   0x8   :  { %16 = vsyncpa [#allocation6 + $0x1], 0 }
   0x9   :  { %17 = vsyncpa [#allocation9], 0 }
   0xa   :  { %18 = vsyncpa [#allocation4], 0 }
   0xb   :  { %20 = vsyncpa [#allocation4 + $0x1], 0  ;;  %s4621_s21 = smov 0   ;;  %s4623_s22 = smov 0  }
   0xc   :  { %s4625_s23 = smov 0   ;;  %s4627_s24 = smov 0  }
   0xd LB: > { %s4642_s25 = sadd.s32 4294967295, %s4564_s24   ;;  %s3349_s26 = sadd.s32 4294967294, %s4564_s24   ;;  %s4564_s24 = sphi %s4627_s24, %s6085_s24   ;;  %s4560_s23 = sphi %s4625_s23, %s6084_s23   ;;  %s4556_s22 = sphi %s4623_s22, %s6083_s22   ;;  %s4552_s21 = sphi %s4621_s21, %s6082_s21  }
   0xe   : > { %p46_p0 = scmp.ne.s32.totalorder %s4556_s22, %s4552_s21  ;;  %p5987_p1 = scmp.eq.s32.totalorder %s4642_s25, 0 }
   0xf   : > { %p186_p3 = scmp.eq.s32.totalorder %s3349_s26, 1  ;;  %p3350_p5 = scmp.ge.s32.totalorder %s4564_s24, 1 }
  0x10   : > { %p4651_p4 = por %p5987_p1, %p46_p0  ;;  %p193_p7 = scmp.lt.s32.totalorder %s4564_s24, 3 }
  0x11   : > { %p4656_p6 = por %p186_p3, %p46_p0  ;;  %s4566_s30 = smov [#allocation7]  }
  0x12   : > { %s6017_s27 = scalar_select %p4651_p4, 1, 0 }
  0x13   : > { %s6018_s28 = scalar_select %p4656_p6, 1, 0 }
  0x14   : > { %p4661_p8 = pnand %p3350_p5, %p193_p7  ;;  %s205_s7 = sshll.u32 %s4566_s30, 4  ;;  %s4665_s7 = int_to_ptr.vmem [resolvable:$true] %s205_s7 }
  0x15   : > { %s4567_s9 = smov [#allocation8]   ;;  %s6021_s2 = sld [smem:[#allocation39_spill]] }
  0x16   : > { %s6019_s29 = scalar_select %p4661_p8, 1, 0 }
  0x17   : > { %p3827_p9 = pneg %p4661_p8  ;;  %s218_s10 = sshll.u32 %s4567_s9, 4  ;;  %s4676_s10 = int_to_ptr.vmem [resolvable:$true] %s218_s10 }
  0x19   : > { %p4672_p11 = pnand %p3827_p9, %p5987_p1 }
  0x1b   : > { %s4342_s13 = scalar_lea.hbm %s6021_s2, 1024  ;;  %p4686_p13 = pneg %p4672_p11 }
  0x1c   : > { %p4343_p12 = scmp.ne.s32.totalorder %s6021_s2, %s4342_s13  ;;  %p4349_p5 = scmp.lt.u32.totalorder %s4342_s13, %s6021_s2 }
  0x1e   : > { %p4345_p0 = pnand %p4686_p13, %p4343_p12 }
  0x20   : > { %p4346_p3 = pneg %p4345_p0 }
  0x22   : > { %p4351_p7 = pnand %p4349_p5, %p4346_p3 }
  0x24   : > { %4354 = shalt.err (!%p4351_p7)
}
  0x25   : > { %s4355_s19 = scalar_lea.vmem %s4665_s7, 1024  ;;  %p4363_p2 = scmp.lt.s32.totalorder %s4665_s7, %s4665_s7 }
  0x26   : > { %p4356_p9 = scmp.ne.s32.totalorder %s4665_s7, %s4355_s19  ;;  %p4364_p6 = scmp.lt.s32.totalorder %s4355_s19, %s4355_s19 }
  0x28   : > { %p4358_p10 = pnand %p4356_p9, %p4686_p13  ;;  %p4365_p12 = por %p4364_p6, %p4363_p2 }
  0x2a   : > { %p4359_p1 = pneg %p4358_p10 }
  0x2c   : > { %p4366_p0 = pnand %p4365_p12, %p4359_p1 }
  0x2e   : > { %4369 = shalt.err (!%p4366_p0)
}
  0x2f   : > { %s5988_s20 = smov 64   ;;  %s5989_s26 = smov 4  }
  0x30   : > { %3830 = dma.hbm_to_vmem [thread:$0]  (!%p4672_p11), %s6021_s2, 1024, %s4665_s7, [#allocation6], %s5988_s20, %s5988_s20, %s5989_s26  }
  0x31   : > { %s6023_s3 = sld [smem:[#allocation40_spill]] }
  0x37   : > { %s4370_s13 = scalar_lea.hbm %s6023_s3, 2048 }
  0x38   : > { %p4371_p1 = scmp.ne.s32.totalorder %s6023_s3, %s4370_s13  ;;  %p4377_p10 = scmp.lt.u32.totalorder %s4370_s13, %s6023_s3 }
  0x3a   : > { %p4373_p2 = pnand %p4371_p1, %p4686_p13 }
  0x3c   : > { %p4374_p6 = pneg %p4373_p2 }
  0x3e   : > { %p4379_p3 = pnand %p4377_p10, %p4374_p6 }
  0x40   : > { %4382 = shalt.err (!%p4379_p3)
}
  0x41   : > { %s4383_s7 = scalar_lea.vmem %s4676_s10, 2048  ;;  %p4391_p12 = scmp.lt.s32.totalorder %s4676_s10, %s4676_s10 }
  0x42   : > { %p4384_p5 = scmp.ne.s32.totalorder %s4676_s10, %s4383_s7  ;;  %p4392_p0 = scmp.lt.s32.totalorder %s4383_s7, %s4383_s7 }
  0x44   : > { %p4386_p7 = pnand %p4384_p5, %p4686_p13  ;;  %p4393_p1 = por %p4392_p0, %p4391_p12 }
  0x46   : > { %p4387_p9 = pneg %p4386_p7 }
  0x48   : > { %p4394_p2 = pnand %p4393_p1, %p4387_p9 }
  0x4a   : > { %4397 = shalt.err (!%p4394_p2)
}
  0x4b   : > { %s4570_s19 = smov 128   ;;  %s4571_s30 = smov 8  }
  0x4c   : > { %3833 = dma.hbm_to_vmem [thread:$0]  (!%p4672_p11), %s6023_s3, 2048, %s4676_s10, [#allocation9], %s4570_s19, %s4570_s19, %s4571_s30  }
  0x4d   : > { %s4572_s12 = smov [#allocation10]   ;;  %s4737_s14 = sadd.s32 1, %s4564_s24  }
  0x4e   : > { %s231_s13 = sshll.u32 %s4572_s12, 4  ;;  %s6024_s4 = sld [smem:[#allocation41_spill]]  ;;  %s232_s13 = int_to_ptr.vmem [resolvable:$true] %s231_s13 }
  0x54   : > { %s4398_s18 = scalar_lea.hbm %s6024_s4, 1024 }
  0x55   : > { %p4399_p6 = scmp.ne.s32.totalorder %s6024_s4, %s4398_s18  ;;  %p4405_p5 = scmp.lt.u32.totalorder %s4398_s18, %s6024_s4 }
  0x57   : > { %p4401_p10 = pnand %p4399_p6, %p4686_p13 }
  0x59   : > { %p4402_p3 = pneg %p4401_p10 }
  0x5b   : > { %p4407_p7 = pnand %p4405_p5, %p4402_p3 }
  0x5d   : > { %4410 = shalt.err (!%p4407_p7)
}
  0x5e   : > { %s4411_s10 = scalar_lea.vmem %s232_s13, 1024  ;;  %p4419_p1 = scmp.lt.s32.totalorder %s232_s13, %s232_s13 }
  0x5f   : > { %p4412_p9 = scmp.ne.s32.totalorder %s232_s13, %s4411_s10  ;;  %p4420_p2 = scmp.lt.s32.totalorder %s4411_s10, %s4411_s10 }
  0x61   : > { %p4414_p12 = pnand %p4412_p9, %p4686_p13  ;;  %p4421_p4 = por %p4420_p2, %p4419_p1 }
  0x63   : > { %p4415_p0 = pneg %p4414_p12 }
  0x65   : > { %p4422_p8 = pnand %p4421_p4, %p4415_p0 }
  0x67   : > { %4425 = shalt.err (!%p4422_p8)
}
  0x68   : > { %s6025_s20 = smov 4   ;;  %s6026_s9 = smov 64  }
  0x69   : > { %3836 = dma.hbm_to_vmem [thread:$0]  (!%p4672_p11), %s6024_s4, 1024, %s232_s13, [#allocation9], %s6026_s9, %s6026_s9, %s6025_s20  }
  0x6a   : > { %s30_s16 = ssub.s32 %s4564_s24, %s4737_s14  ;;  %s33_s8 = sadd.s32 1, %s4560_s23 }
  0x6b   : > { %p31_p4 = scmp.eq.s32.totalorder %s30_s16, 0  ;;  %p40_p8 = scmp.ne.s32.totalorder %s4560_s23, %s4556_s22 }
  0x6c   : > { %p41_p13 = scmp.eq.s32.totalorder %s4564_s24, 0  ;;  %p3851_p6 = scmp.lt.s32.totalorder %s4564_s24, 2 }
  0x6d   : > { %s4768_s11 = scalar_select %p31_p4, %s4560_s23, %s33_s8  }
  0x6e   : > { %p42_p10 = por %p41_p13, %p40_p8  ;;  %p6027_p3 = scmp.eq.s32.totalorder %s4642_s25, 1 }
  0x6f   : > { %s4777_s15 = sand.u32 1, %s4560_s23   ;;  %s3470_s13 = sshll.u32 %s4564_s24, 10 }
  0x70   : > { %p4772_p5 = por %p6027_p3, %p40_p8  ;;  %s3355_s17 = sshll.u32 %s4777_s15, 6 }
  0x71   : > { %s6029_s0 = sld [smem:[#allocation38_spill]]  ;;  %s252_s20 = scalar_lea.vmem [#allocation2], %s3355_s17 }
  0x72   : > { %s259_s9 = sshll.u32 %s252_s20, 4  ;;  %p4786_p11 = pnand %p3851_p6, %p42_p10  ;;  %s4790_s9 = int_to_ptr.vmem [resolvable:$true] %s259_s9 }
  0x73   : > { %s249_s16 = scalar_lea.sflag [#allocation3], %s4777_s15 }
  0x74   : > { %p4428_p9 = pneg %p4786_p11 }
  0x77   : > { %s4784_s10 = scalar_lea.hbm %s6029_s0, %s3470_s13  ;;  %s4431_s18 = scalar_lea.hbm %s6029_s0, 2048 }
  0x78   : > { %s4426_s8 = scalar_lea.hbm %s4784_s10, 1024  ;;  %p4432_p1 = scmp.lt.u32.totalorder %s4784_s10, %s6029_s0 }
  0x79   : > { %p4427_p7 = scmp.ne.s32.totalorder %s4784_s10, %s4426_s8  ;;  %p4433_p2 = scmp.lt.u32.totalorder %s4431_s18, %s4426_s8 }
  0x7a   : > { %p4435_p8 = scmp.lt.u32.totalorder %s4426_s8, %s4784_s10 }
  0x7b   : > { %p4429_p12 = pnand %p4428_p9, %p4427_p7  ;;  %p4434_p4 = por %p4433_p2, %p4432_p1 }
  0x7d   : > { %p4430_p0 = pneg %p4429_p12  ;;  %p4436_p13 = por %p4435_p8, %p4434_p4 }
  0x7f   : > { %p4437_p6 = pnand %p4436_p13, %p4430_p0 }
  0x81   : > { %4440 = shalt.err (!%p4437_p6)
}
  0x82   : > { %s4441_s26 = scalar_lea.vmem %s4790_s9, 1024  ;;  %s4573_s13 = smov [#allocation2]  }
  0x83   : > { %p4442_p10 = scmp.ne.s32.totalorder %s4790_s9, %s4441_s26  ;;  %s4446_s17 = sshll.u32 %s4573_s13, 4  ;;  %s4447_s17 = int_to_ptr.vmem [resolvable:$false] %s4446_s17 }
  0x84   : > { %s4448_s7 = scalar_lea.vmem %s4447_s17, 2048  ;;  %p4449_p12 = scmp.lt.s32.totalorder %s4790_s9, %s4447_s17 }
  0x85   : > { %p4444_p3 = pnand %p4442_p10, %p4428_p9  ;;  %p4450_p1 = scmp.lt.s32.totalorder %s4448_s7, %s4441_s26 }
  0x87   : > { %p4445_p7 = pneg %p4444_p3  ;;  %p4451_p2 = por %p4450_p1, %p4449_p12 }
  0x89   : > { %p4452_p4 = pnand %p4451_p2, %p4445_p7 }
  0x8b   : > { %4455 = shalt.err (!%p4452_p4)
}
  0x8c   : > { %3840 = dma.hbm_to_vmem [thread:$0]  (!%p4786_p11), %s4784_s10, 1024, %s4790_s9, %s249_s16, %s4570_s19, %s4570_s19, %s4571_s30  }
  0x8d   : > { %s3358_s8 = sshll.u32 %s4777_s15, 5  ;;  %s3471_s18 = sshll.u32 %s4564_s24, 9 }
  0x8e   : > { %s4829_s13 = scalar_lea.hbm %s5981_s1, %s3471_s18  ;;  %s273_s17 = scalar_lea.vmem [#allocation5], %s3358_s8 }
  0x8f   : > { %s280_s7 = sshll.u32 %s273_s17, 4  ;;  %s6031_s0 = sand.u32 1, %s4564_s24   ;;  %s4831_s7 = int_to_ptr.vmem [resolvable:$true] %s280_s7 }
  0x90   : > { %s4835_s3 = scalar_lea.sflag [#allocation6], %s6031_s0  ;;  %s4456_s4 = scalar_lea.hbm %s4829_s13, 512 }
  0x91   : > { %p4457_p0 = scmp.ne.s32.totalorder %s4829_s13, %s4456_s4  ;;  %s4461_s9 = scalar_lea.hbm %s5981_s1, 1024 }
  0x92   : > { %p4462_p6 = scmp.lt.u32.totalorder %s4829_s13, %s5981_s1  ;;  %p4463_p10 = scmp.lt.u32.totalorder %s4461_s9, %s4456_s4 }
  0x93   : > { %p4459_p8 = pnand %p4457_p0, %p4428_p9  ;;  %p4465_p7 = scmp.lt.u32.totalorder %s4456_s4, %s4829_s13 }
  0x94   : > { %p4464_p3 = por %p4463_p10, %p4462_p6 }
  0x95   : > { %p4460_p13 = pneg %p4459_p8 }
  0x96   : > { %p4466_p12 = por %p4465_p7, %p4464_p3 }
  0x98   : > { %p4467_p1 = pnand %p4466_p12, %p4460_p13 }
  0x9a   : > { %4470 = shalt.err (!%p4467_p1)
}
  0x9b   : > { %s4471_s0 = scalar_lea.vmem %s4831_s7, 512  ;;  %s4574_s8 = smov [#allocation5]  }
  0x9c   : > { %p4472_p2 = scmp.ne.s32.totalorder %s4831_s7, %s4471_s0  ;;  %s4476_s26 = sshll.u32 %s4574_s8, 4  ;;  %s4477_s26 = int_to_ptr.vmem [resolvable:$false] %s4476_s26 }
  0x9d   : > { %s4478_s20 = scalar_lea.vmem %s4477_s26, 1024  ;;  %p4479_p8 = scmp.lt.s32.totalorder %s4831_s7, %s4477_s26 }
  0x9e   : > { %p4474_p4 = pnand %p4472_p2, %p4428_p9  ;;  %p4480_p6 = scmp.lt.s32.totalorder %s4478_s20, %s4471_s0 }
  0xa0   : > { %p4475_p0 = pneg %p4474_p4  ;;  %p4481_p10 = por %p4480_p6, %p4479_p8 }
  0xa2   : > { %p4482_p3 = pnand %p4481_p10, %p4475_p0 }
  0xa4   : > { %4485 = shalt.err (!%p4482_p3)
}
  0xa5   : > { %3843 = dma.hbm_to_vmem [thread:$0]  (!%p4786_p11), %s4829_s13, 512, %s4831_s7, %s4835_s3, %s4570_s19, %s4570_s19, %s4571_s30  }
  0xa6   : > { %p6032_p9 = scmp.ne.s32.totalorder %s6019_s29, 0 }
  0xa8   : > { %292 = sbr.rel (%p6032_p9) target bundleno = 1733 (0x6c5), region = 44 }
  0xaf   : > { %s4867_s4 = sand.u32 1, %s4556_s22   ;;  %p6033_p13 = scmp.ne.s32.totalorder %s6017_s27, 0 }
  0xb0   : > { %s3362_s17 = sshll.u32 %s4867_s4, 6  ;;  %s295_s15 = scalar_lea.sflag [#allocation3], %s4867_s4 }
  0xb1   : > { %s4873_s2 = scalar_lea.vmem [#allocation2], %s3362_s17 }
  0xb2   : > { %4531 = dma.done.wait (%p6033_p13), %s295_s15, 1024  }
  0xb3   : > { %4533 = vsyncadd (%p6033_p13), %s295_s15, 4294966272  ;;  %s303_s3 = sand.u32 1, %s4642_s25   ;;  %s3363_s29 = sshll.u32 %s4867_s4, 5 }
  0xb4   : > { %s304_s19 = scalar_lea.sflag [#allocation6], %s303_s3  ;;  %s4881_s30 = scalar_lea.vmem [#allocation5], %s3363_s29 }
  0xb5   : > { %4535 = dma.done.wait (%p6033_p13), %s304_s19, 512  }
  0xb6   : > { %4537 = vsyncadd (%p6033_p13), %s304_s19, 4294966784  ;;  %p6034_p11 = scmp.eq.s32.totalorder %s4642_s25, 0 }
  0xb8   : > { %4539 = dma.done.wait (%p6034_p11), [#allocation6], 1024   ;;  %p6035_p7 = pmov %p6034_p11 }
  0xba   : > { %4541 = vsyncadd (%p6035_p7), [#allocation6], 4294966272  ;;  %p6036_p12 = pmov %p6035_p7 }
  0xbb   : > { %p6037_p1 = pmov %p6035_p7 }
  0xbc   : > { %4543 = dma.done.wait (%p6036_p12), [#allocation9], 3072  }
  0xbd   : > { %4545 = vsyncadd (%p6037_p1), [#allocation9], 4294964224  ;;  %v4575_v0 = vmov 0   ;;  %v4046_v1 = vld [vmem:[#allocation7] sm:$0xff]   ;;  %v4050_v4 = vld [vmem:[#allocation7 + $0x8] sm:$0xff]   ;;  %vm704_vm0 = vcmask 130048  }
  0xbe   : > { %629 = vmatprep.mubr.bf16.mxu1 %v4575_v0  ;;  %v4047_v2 = vld [vmem:[#allocation8 + $0x4] ss:$8 sps:$4 sm:$0xff]   ;;  %3585 = vmatprep.subr.bf16.mxu0 %v4046_v1  ;;  %v4049_v3 = vld [vmem:[#allocation8] ss:$8 sps:$4 sm:$0xff]   ;;  %v4051_v5 = vld [vmem:[#allocation8 + $0x14] ss:$8 sps:$4 sm:$0xff]  }
  0xbf   : > { %597 = vmatprep.subr.bf16.mxu1 %v4047_v2  ;;  %3586 = vmatpush3.bf16.msra.mxu0 %v4046_v1  ;;  %v4053_v6 = vld [vmem:[#allocation8 + $0x10] ss:$8 sps:$4 sm:$0xff]   ;;  %v4055_v8 = vld [vmem:[#allocation8 + $0x24] ss:$8 sps:$4 sm:$0xff]   ;;  %v4057_v9 = vld [vmem:[#allocation8 + $0x20] ss:$8 sps:$4 sm:$0xff]  }
  0xc0   : > { %598 = vmatpush1.bf16.msra.mxu1 %v4049_v3  ;;  %3587 = vmatprep.subr.bf16.mxu0 %v4050_v4  ;;  %v4054_v7 = vld [vmem:[#allocation7 + $0x10] sm:$0xff]   ;;  %v4058_v10 = vld [vmem:[#allocation7 + $0x18] sm:$0xff]   ;;  %v4062_v13 = vld [vmem:[#allocation7 + $0x20] sm:$0xff]   ;;  %s4576_s27 = smov 112   ;;  %s4577_s13 = smov 96   ;;  %vm782_vm1 = vcmask 261120  }
  0xc1   : > { %599 = vmatprep.subr.bf16.mxu1 %v4051_v5  ;;  %v4059_v11 = vld [vmem:[#allocation8 + $0x34] ss:$8 sps:$4 sm:$0xff]   ;;  %v4061_v12 = vld [vmem:[#allocation8 + $0x30] ss:$8 sps:$4 sm:$0xff]   ;;  %v4063_v14 = vld [vmem:[#allocation8 + $0x44] ss:$8 sps:$4 sm:$0xff]  }
  0xc2   : > { %v4065_v15 = vld [vmem:[#allocation8 + $0x40] ss:$8 sps:$4 sm:$0xff]   ;;  %v4067_v17 = vld [vmem:[#allocation8 + $0x54] ss:$8 sps:$4 sm:$0xff]   ;;  %v4069_v20 = vld [vmem:[#allocation8 + $0x50] ss:$8 sps:$4 sm:$0xff]  }
  0xc3   : > { %3588 = vmatpush3.bf16.msra.mxu0 %v4050_v4  ;;  %v4066_v16 = vld [vmem:[#allocation7 + $0x28] sm:$0xff]   ;;  %v354_v18 = vld [vmem:[%s4873_s2] sm:$0xff]  ;;  %v4070_v21 = vld [vmem:[#allocation7 + $0x30] sm:$0xff]   ;;  %s4578_s7 = smov 80   ;;  %s4579_s10 = smov 64   ;;  %vm3018_vm2 = vcmask 392192  }
  0xc4   : > { %600 = vmatpush1.bf16.msra.mxu1 %v4053_v6  ;;  %3589 = vmatprep.subr.bf16.mxu0 %v4054_v7  ;;  %v355_v19 = vld [vmem:[%s4873_s2 + $0x8] sm:$0xff]  ;;  %v4074_v25 = vld [vmem:[#allocation7 + $0x38] sm:$0xff]   ;;  %v356_v27 = vld [vmem:[%s4873_s2 + $0x10] sm:$0xff]  ;;  %s4580_s9 = smov 48   ;;  %s4581_s16 = smov 32   ;;  %vm3027_vm3 = vcmask 523264  }
  0xc5   : > { %601 = vmatprep.subr.bf16.mxu1 %v4055_v8  ;;  %v362_v22 = vpack.c.bf16 %v355_v19, %v354_v18  ;;  %v4071_v23 = vld [vmem:[#allocation8 + $0x64] ss:$8 sps:$4 sm:$0xff]   ;;  %v4073_v24 = vld [vmem:[#allocation8 + $0x60] ss:$8 sps:$4 sm:$0xff]   ;;  %v4075_v26 = vld [vmem:[#allocation8 + $0x74] ss:$8 sps:$4 sm:$0xff]  }
  0xc6   : > { %v357_v28 = vld [vmem:[%s4873_s2 + $0x18] sm:$0xff]  ;;  %v366_v30 = vld [vmem:[%s4881_s30] sm:$0xff]  ;;  %v367_v31 = vld [vmem:[%s4881_s30 + $0x8] sm:$0xff]  ;;  %s4582_s18 = smov 16   ;;  %vm3036_vm4 = vcmask 654336   ;;  %vm3045_vm5 = vcmask 785408  }
  0xc7   : > { %3590 = vmatpush3.bf16.msra.mxu0 %v4054_v7  ;;  %3601 = vmatprep.mubr.bf16.mxu0 %v362_v22  ;;  %v4077_v29 = vld [vmem:[#allocation8 + $0x70] ss:$8 sps:$4 sm:$0xff]   ;;  %v358_v32 = vld [vmem:[%s4873_s2 + $0x20] sm:$0xff]  ;;  %v359_v33 = vld [vmem:[%s4873_s2 + $0x28] sm:$0xff]  ;;  %v363_v34 = vpack.c.bf16 %v357_v28, %v356_v27  ;;  %v370_v35 = vpack.c.bf16 %v367_v31, %v366_v30  ;;  %vm3054_vm6 = vcmask 916480   ;;  %s352_s26 = scalar_lea.vmem [#allocation11], %s3362_s17 }
  0xc8   : > { %602 = vmatpush1.bf16.msra.mxu1 %v4057_v9  ;;  %3591 = vmatprep.subr.bf16.mxu0 %v4058_v10  ;;  %v364_v36 = vpack.c.bf16 %v359_v33, %v358_v32  ;;  %v360_v37 = vld [vmem:[%s4873_s2 + $0x30] sm:$0xff]  ;;  %v361_v38 = vld [vmem:[%s4873_s2 + $0x38] sm:$0xff]  ;;  %s3225_s20 = sshll.u32 %s352_s26, 4  ;;  %s3472_s15 = sshll.u32 %s4642_s25, 10  ;;  %s5931_s20 = int_to_ptr.vmem [resolvable:$true] %s3225_s20 }
  0xc9   : > { %603 = vmatprep.subr.bf16.mxu1 %v4059_v11  ;;  %v368_v39 = vld [vmem:[%s4881_s30 + $0x10] sm:$0xff]  ;;  %v369_v40 = vld [vmem:[%s4881_s30 + $0x18] sm:$0xff]  ;;  %v365_v41 = vpack.c.bf16 %v361_v38, %v360_v37  ;;  %s5936_s3 = scalar_lea.hbm %s5986_s6, %s3472_s15  ;;  %s3212_s25 = scalar_lea.sflag [#allocation4], %s4867_s4 }
  0xca   : > { %v371_v42 = vpack.c.bf16 %v369_v40, %v368_v39  ;;  %s4486_s29 = scalar_lea.vmem %s5931_s20, 1024  ;;  %s4583_s19 = smov [#allocation11]  }
  0xcb   : > { %3592 = vmatpush3.bf16.msra.mxu0 %v4058_v10  ;;  %p4487_p2 = scmp.ne.s32.totalorder %s5931_s20, %s4486_s29  ;;  %s4490_s30 = sshll.u32 %s4583_s19, 4  ;;  %s4491_s30 = int_to_ptr.vmem [resolvable:$false] %s4490_s30 }
  0xcc   : > { %604 = vmatpush1.bf16.msra.mxu1 %v4061_v12  ;;  %3593 = vmatprep.subr.bf16.mxu0 %v4062_v13  ;;  %p4493_p8 = scmp.lt.s32.totalorder %s5931_s20, %s4491_s30 }
  0xcd   : > { %605 = vmatprep.subr.bf16.mxu1 %v4063_v14  ;;  %p4488_p4 = pnand %p4487_p2, %p4772_p5 }
  0xcf   : > { %3594 = vmatpush3.bf16.msra.mxu0 %v4062_v13  ;;  %p4489_p0 = pneg %p4488_p4 }
  0xd0   : > { %606 = vmatpush1.bf16.msra.mxu1 %v4065_v15  ;;  %3595 = vmatprep.subr.bf16.mxu0 %v4066_v16 }
  0xd1   : > { %607 = vmatprep.subr.bf16.mxu1 %v4067_v17 }
  0xd3   : > { %3596 = vmatpush3.bf16.msra.mxu0 %v4066_v16 }
  0xd4   : > { %608 = vmatpush1.bf16.msra.mxu1 %v4069_v20  ;;  %3597 = vmatprep.subr.bf16.mxu0 %v4070_v21 }
  0xd5   : > { %609 = vmatprep.subr.bf16.mxu1 %v4071_v23 }
  0xd7   : > { %3598 = vmatpush3.bf16.msra.mxu0 %v4070_v21 }
  0xd8   : > { %610 = vmatpush1.bf16.msra.mxu1 %v4073_v24  ;;  %3599 = vmatprep.subr.bf16.mxu0 %v4074_v25 }
  0xd9   : > { %611 = vmatprep.subr.bf16.mxu1 %v4075_v26 }
  0xdb   : > { %3600 = vmatpush3.bf16.msra.mxu0 %v4074_v25 }
  0xdc   : > { %612 = vmatpush1.bf16.msra.mxu1 %v4077_v29 }
  0xde   : > { %3602 = vmatmul.mubr.bf16.vlgmr.msra.gmra.mrb[0].mxu0 %v363_v34 }
  0xdf   : > { %630 = vmatmul.mubr.bf16.vlgmr.msra.gmra.mrb[0].mxu1 %v370_v35  ;;  %3605 = vmatprep.mubr.bf16.mxu0 %v364_v36 }
  0xe0   : > { %639 = vmatprep.mubr.bf16.mxu1 %v4575_v0 }
  0xe6   : > { %3606 = vmatmul.mubr.bf16.gmra.mrb[4].mxu0 %v365_v41 }
  0xe7   : > { %640 = vmatmul.mubr.bf16.gmra.mrb[4].mxu1 %v371_v42 }
 0x1b1   : > { %v3603_v43 = vpop.f32.mrb[0].mxu0 }
 0x1b2   : > { %v654_v44 = vmul.f32 0.25, %v3603_v43  ;;  %v631_v45 = vpop.f32.mrb[0].mxu1  ;;  %v470_v46 = vpop.f32.mrb[1].mxu0 }
 0x1b3   : > { %664 = vxpose.xlu0.b32.start [1/4] (short) %v631_v45, 128  ;;  %v652_v47 = vmul.f32 0.25, %v470_v46  ;;  %v633_v48 = vpop.f32.mrb[1].mxu1  ;;  %v3604_v49 = vpop.f32.mrb[2].mxu0 }
 0x1b4   : > { %v655_v50 = vmul.f32 0.25, %v3604_v49  ;;  %v635_v51 = vpop.f32.mrb[2].mxu1  ;;  %v473_v52 = vpop.f32.mrb[3].mxu0 }
 0x1b5   : > { %v653_v53 = vmul.f32 0.25, %v473_v52  ;;  %v637_v54 = vpop.f32.mrb[3].mxu1 }
 0x1b6   : > { %v4909_v55 = vpack.c.bf16 %v655_v50, %v654_v44  ;;  %v4911_v56 = vpack.c.bf16 %v637_v54, %v633_v48 }
 0x1b7   : > { %v660_v57 = vpack.c.bf16 %v653_v53, %v652_v47  ;;  %665 = vxpose.xlu0.b32.cont [2/4] (short) %v635_v51, 128 }
 0x1b9   : > { %956 = vrot.lane.b32.xlu1 %v660_v57, %s4576_s27  ;;  %v3607_v58 = vpop.f32.mrb[4].mxu0  ;;  %3611 = vmatprep.mubr.msk.bf16.mxu1 %vm704_vm0, %v660_v57 }
 0x1ba   : > { %v641_v59 = vpop.f32.mrb[4].mxu1  ;;  %v658_v60 = vmul.f32 0.25, %v3607_v58  ;;  %v486_v61 = vpop.f32.mrb[5].mxu0 }
 0x1bb   : > { %666 = vxpose.xlu0.b32.cont [3/4] (short) %v641_v59, 128  ;;  %v656_v62 = vmul.f32 0.25, %v486_v61  ;;  %v643_v63 = vpop.f32.mrb[5].mxu1  ;;  %v3608_v0 = vpop.f32.mrb[6].mxu0 }
 0x1bc   : > { %v659_v1 = vmul.f32 0.25, %v3608_v0  ;;  %v645_v2 = vpop.f32.mrb[6].mxu1  ;;  %v489_v3 = vpop.f32.mrb[7].mxu0 }
 0x1bd   : > { %v657_v4 = vmul.f32 0.25, %v489_v3  ;;  %v647_v5 = vpop.f32.mrb[7].mxu1  ;;  %958 = vrot.lane.b32.xlu1 %v4909_v55, %s4576_s27 }
 0x1be   : > { %v4917_v6 = vpack.c.bf16 %v659_v1, %v658_v60  ;;  %v4919_v7 = vpack.c.bf16 %v647_v5, %v643_v63 }
 0x1bf   : > { %v662_v8 = vpack.c.bf16 %v657_v4, %v656_v62  ;;  %667 = vxpose.xlu0.b32.end [4/4] (short) %v645_v2, 128 }
 0x1c1   : > { %960 = vrot.lane.b32.xlu1 %v662_v8, %s4576_s27 }
 0x1c5   : > { %962 = vrot.lane.b32.xlu1 %v4917_v6, %s4576_s27 }
 0x1c9   : > { %1220 = vrot.lane.b32.xlu1 %v4909_v55, %s4577_s13 }
 0x1cd   : > { %1222 = vrot.lane.b32.xlu1 %v662_v8, %s4577_s13 }
 0x1d1   : > { %1224 = vrot.lane.b32.xlu1 %v4917_v6, %s4577_s13 }
 0x1d5   : > { %1478 = vrot.lane.b32.xlu1 %v660_v57, %s4578_s7 }
 0x1d9   : > { %1480 = vrot.lane.b32.xlu1 %v4909_v55, %s4578_s7 }
 0x1dd   : > { %1482 = vrot.lane.b32.xlu1 %v662_v8, %s4578_s7 }
 0x1e1   : > { %1484 = vrot.lane.b32.xlu1 %v4917_v6, %s4578_s7 }
 0x1e5   : > { %1738 = vrot.lane.b32.xlu1 %v660_v57, %s4579_s10 }
 0x1e9   : > { %1740 = vrot.lane.b32.xlu1 %v4909_v55, %s4579_s10 }
 0x1ed   : > { %1742 = vrot.lane.b32.xlu1 %v662_v8, %s4579_s10 }
 0x1f1   : > { %1744 = vrot.lane.b32.xlu1 %v4917_v6, %s4579_s10 }
 0x1f5   : > { %1998 = vrot.lane.b32.xlu1 %v660_v57, %s4580_s9 }
 0x1f9   : > { %2000 = vrot.lane.b32.xlu1 %v4909_v55, %s4580_s9 }
 0x1fd   : > { %2002 = vrot.lane.b32.xlu1 %v662_v8, %s4580_s9 }
 0x201   : > { %2004 = vrot.lane.b32.xlu1 %v4917_v6, %s4580_s9 }
 0x205   : > { %2258 = vrot.lane.b32.xlu1 %v660_v57, %s4581_s16 }
 0x209   : > { %2260 = vrot.lane.b32.xlu1 %v4909_v55, %s4581_s16 }
 0x20d   : > { %2262 = vrot.lane.b32.xlu1 %v662_v8, %s4581_s16 }
 0x211   : > { %2264 = vrot.lane.b32.xlu1 %v4917_v6, %s4581_s16 }
 0x215   : > { %2518 = vrot.lane.b32.xlu1 %v660_v57, %s4582_s18 }
 0x218   : > { %1218 = vrot.lane.b32.xlu0 %v660_v57, %s4577_s13 }
 0x219   : > { %2520 = vrot.lane.b32.xlu1 %v4909_v55, %s4582_s18 }
 0x21c   : > { %1119 = vrot.lane.b32.xlu0 %v4911_v56, %s4576_s27 }
 0x21d   : > { %2522 = vrot.lane.b32.xlu1 %v662_v8, %s4582_s18 }
 0x220   : > { %1379 = vrot.lane.b32.xlu0 %v4911_v56, %s4577_s13 }
 0x221   : > { %2524 = vrot.lane.b32.xlu1 %v4917_v6, %s4582_s18 }
 0x224   : > { %1381 = vrot.lane.b32.xlu0 %v4919_v7, %s4577_s13 }
 0x225   : > { %1121 = vrot.lane.b32.xlu1 %v4919_v7, %s4576_s27 }
 0x228   : > { %1641 = vrot.lane.b32.xlu0 %v4919_v7, %s4578_s7 }
 0x229   : > { %1639 = vrot.lane.b32.xlu1 %v4911_v56, %s4578_s7 }
 0x22b   : > { %v957_v9 = vpop.permute.xlu1 %956 }
 0x22c   : > { %1901 = vrot.lane.b32.xlu0 %v4919_v7, %s4579_s10  ;;  %3633 = vmatprep.mubr.msk.bf16.mxu0 %vm704_vm0, %v957_v9 }
 0x22d   : > { %1899 = vrot.lane.b32.xlu1 %v4911_v56, %s4579_s10 }
 0x22f   : > { %v959_v15 = vpop.permute.xlu1 %958 }
 0x230   : > { %2161 = vrot.lane.b32.xlu0 %v4919_v7, %s4580_s9 }
 0x231   : > { %2159 = vrot.lane.b32.xlu1 %v4911_v56, %s4580_s9 }
 0x233   : > { %v680_v10 = vpop.trf.xlu0  ;;  %v961_v18 = vpop.permute.xlu1 %960 }
 0x235   : > { %2419 = vrot.lane.b32.xlu1 %v4911_v56, %s4581_s16 }
 0x237   : > { %v681_v11 = vpop.trf.xlu0  ;;  %v963_v22 = vpop.permute.xlu1 %962 }
 0x238   : > { %v696_v12 = vpack.c.bf16 %v681_v11, %v680_v10 }
 0x23a   : > { %3609 = vmatprep.subr.bf16.mxu1 %v696_v12 }
 0x23b   : > { %3610 = vmatpush3.bf16.msra.mxu1 %v696_v12  ;;  %v682_v13 = vpop.trf.xlu0  ;;  %v1221_v26 = vpop.permute.xlu1 %1220 }
 0x23c   : > { %3619 = vmatprep.subr.bf16.mxu1 %v4911_v56 }
 0x23e   : > { %3612 = vmatmul.mubr.msk.bf16.vlgmr.msra.gmra.mrb[8].mxu1 %vm704_vm0, %v4909_v55 }
 0x23f   : > { %3615 = vmatprep.mubr.msk.bf16.mxu1 %vm704_vm0, %v662_v8  ;;  %3620 = vmatpush3.bf16.msra.mxu1 %v4911_v56  ;;  %v683_v14 = vpop.trf.xlu0  ;;  %v1223_v28 = vpop.permute.xlu1 %1222 }
 0x240   : > { %3621 = vmatprep.subr.bf16.mxu1 %v4919_v7  ;;  %v697_v16 = vpack.c.bf16 %v683_v14, %v682_v13 }
 0x242   : > { %3631 = vmatprep.subr.bf16.mxu0 %v697_v16 }
 0x243   : > { %3622 = vmatpush3.bf16.msra.mxu1 %v4919_v7  ;;  %3632 = vmatpush3.bf16.msra.mxu0 %v697_v16  ;;  %v684_v17 = vpop.trf.xlu0  ;;  %v1225_v30 = vpop.permute.xlu1 %1224 }
 0x246   : > { %3616 = vmatmul.mubr.msk.bf16.gmra.mrb[12].mxu1 %vm704_vm0, %v4917_v6  ;;  %3634 = vmatmul.mubr.msk.bf16.vlgmr.msra.gmra.mrb[8].mxu0 %vm704_vm0, %v959_v15 }
 0x247   : > { %3637 = vmatprep.mubr.msk.bf16.mxu0 %vm704_vm0, %v961_v18  ;;  %v685_v19 = vpop.trf.xlu0  ;;  %v1479_v32 = vpop.permute.xlu1 %1478 }
 0x248   : > { %v698_v20 = vpack.c.bf16 %v685_v19, %v684_v17 }
 0x24a   : > { %3653 = vmatprep.subr.bf16.mxu0 %v698_v20 }
 0x24b   : > { %3654 = vmatpush3.bf16.msra.mxu0 %v698_v20  ;;  %v686_v21 = vpop.trf.xlu0  ;;  %v1481_v34 = vpop.permute.xlu1 %1480 }
 0x24e   : > { %3638 = vmatmul.mubr.msk.bf16.gmra.mrb[12].mxu0 %vm704_vm0, %v963_v22 }
 0x24f   : > { %v687_v23 = vpop.trf.xlu0  ;;  %v1483_v36 = vpop.permute.xlu1 %1482 }
 0x250   : > { %v699_v24 = vpack.c.bf16 %v687_v23, %v686_v21 }
 0x252   : > { %3675 = vmatprep.subr.bf16.mxu0 %v699_v24 }
 0x253   : > { %v688_v25 = vpop.trf.xlu0  ;;  %v1485_v38 = vpop.permute.xlu1 %1484 }
 0x257   : > { %v689_v27 = vpop.trf.xlu0  ;;  %v1739_v40 = vpop.permute.xlu1 %1738 }
 0x258   : > { %v700_v42 = vpack.c.bf16 %v689_v27, %v688_v25 }
 0x25b   : > { %v690_v29 = vpop.trf.xlu0  ;;  %v1741_v43 = vpop.permute.xlu1 %1740 }
 0x25f   : > { %v691_v31 = vpop.trf.xlu0  ;;  %v1743_v45 = vpop.permute.xlu1 %1742 }
 0x260   : > { %v701_v47 = vpack.c.bf16 %v691_v31, %v690_v29 }
 0x263   : > { %v692_v33 = vpop.trf.xlu0  ;;  %v1745_v46 = vpop.permute.xlu1 %1744 }
 0x267   : > { %v693_v35 = vpop.trf.xlu0  ;;  %v1999_v48 = vpop.permute.xlu1 %1998 }
 0x268   : > { %v702_v51 = vpack.c.bf16 %v693_v35, %v692_v33 }
 0x26b   : > { %v694_v37 = vpop.trf.xlu0  ;;  %v2001_v49 = vpop.permute.xlu1 %2000 }
 0x26f   : > { %v695_v39 = vpop.trf.xlu0  ;;  %v2003_v50 = vpop.permute.xlu1 %2002 }
 0x270   : > { %v703_v54 = vpack.c.bf16 %v695_v39, %v694_v37 }
 0x273   : > { %v2005_v52 = vpop.permute.xlu1 %2004 }
 0x277   : > { %v2259_v53 = vpop.permute.xlu1 %2258 }
 0x27b   : > { %v2261_v55 = vpop.permute.xlu1 %2260 }
 0x27f   : > { %v2263_v57 = vpop.permute.xlu1 %2262 }
 0x283   : > { %v2265_v58 = vpop.permute.xlu1 %2264 }
 0x287   : > { %v2519_v59 = vpop.permute.xlu1 %2518 }
 0x28a   : > { %v1219_v41 = vpop.permute.xlu0 %1218 }
 0x28b   : > { %3655 = vmatprep.mubr.msk.bf16.mxu0 %vm704_vm0, %v1219_v41  ;;  %v2521_v60 = vpop.permute.xlu1 %2520 }
 0x28c   : > { %3656 = vmatmul.mubr.msk.bf16.vlgmr.msra.gmra.mrb[16].mxu0 %vm704_vm0, %v1221_v26 }
 0x28d   : > { %3676 = vmatpush3.bf16.msra.mxu0 %v699_v24  ;;  %3659 = vmatprep.mubr.msk.bf16.mxu0 %vm704_vm0, %v1223_v28 }
 0x28e   : > { %3697 = vmatprep.subr.bf16.mxu0 %v700_v42  ;;  %v4998_v44 = vpop.permute.xlu0 %1119 }
 0x28f   : > { %3641 = vmatprep.subr.bf16.mxu1 %v4998_v44  ;;  %v2523_v61 = vpop.permute.xlu1 %2522 }
 0x293   : > { %v2525_v62 = vpop.permute.xlu1 %2524 }
 0x294   : > { %3660 = vmatmul.mubr.msk.bf16.gmra.mrb[20].mxu0 %vm704_vm0, %v1225_v30 }
 0x295   : > { %3677 = vmatprep.mubr.msk.bf16.mxu0 %vm704_vm0, %v1479_v32 }
 0x29c   : > { %3678 = vmatmul.mubr.msk.bf16.vlgmr.msra.gmra.mrb[24].mxu0 %vm704_vm0, %v1481_v34 }
 0x29d   : > { %3698 = vmatpush3.bf16.msra.mxu0 %v700_v42  ;;  %3681 = vmatprep.mubr.msk.bf16.mxu0 %vm704_vm0, %v1483_v36 }
 0x29e   : > { %3719 = vmatprep.subr.bf16.mxu0 %v701_v47 }
 0x2a4   : > { %3682 = vmatmul.mubr.msk.bf16.gmra.mrb[28].mxu0 %vm704_vm0, %v1485_v38 }
 0x2a5   : > { %3699 = vmatprep.mubr.msk.bf16.mxu0 %vm704_vm0, %v1739_v40 }
 0x2ac   : > { %3700 = vmatmul.mubr.msk.bf16.vlgmr.msra.gmra.mrb[32].mxu0 %vm704_vm0, %v1741_v43 }
 0x2ad   : > { %3720 = vmatpush3.bf16.msra.mxu0 %v701_v47  ;;  %3703 = vmatprep.mubr.msk.bf16.mxu0 %vm704_vm0, %v1743_v45 }
 0x2ae   : > { %3741 = vmatprep.subr.bf16.mxu0 %v702_v51 }
 0x2b4   : > { %3704 = vmatmul.mubr.msk.bf16.gmra.mrb[36].mxu0 %vm704_vm0, %v1745_v46 }
 0x2b5   : > { %3721 = vmatprep.mubr.msk.bf16.mxu0 %vm704_vm0, %v1999_v48 }
 0x2bc   : > { %3722 = vmatmul.mubr.msk.bf16.vlgmr.msra.gmra.mrb[40].mxu0 %vm704_vm0, %v2001_v49 }
 0x2bd   : > { %3742 = vmatpush3.bf16.msra.mxu0 %v702_v51  ;;  %3725 = vmatprep.mubr.msk.bf16.mxu0 %vm704_vm0, %v2003_v50 }
 0x2be   : > { %3763 = vmatprep.subr.bf16.mxu0 %v703_v54 }
 0x2c4   : > { %3726 = vmatmul.mubr.msk.bf16.gmra.mrb[44].mxu0 %vm704_vm0, %v2005_v52 }
 0x2c5   : > { %3743 = vmatprep.mubr.msk.bf16.mxu0 %vm704_vm0, %v2259_v53 }
 0x2cc   : > { %3744 = vmatmul.mubr.msk.bf16.vlgmr.msra.gmra.mrb[48].mxu0 %vm704_vm0, %v2261_v55 }
 0x2cd   : > { %3764 = vmatpush3.bf16.msra.mxu0 %v703_v54  ;;  %3747 = vmatprep.mubr.msk.bf16.mxu0 %vm704_vm0, %v2263_v57 }
 0x2d4   : > { %3748 = vmatmul.mubr.msk.bf16.gmra.mrb[52].mxu0 %vm704_vm0, %v2265_v58 }
 0x2d5   : > { %3765 = vmatprep.mubr.msk.bf16.mxu0 %vm704_vm0, %v2519_v59 }
 0x2dc   : > { %3766 = vmatmul.mubr.msk.bf16.vlgmr.msra.gmra.mrb[56].mxu0 %vm704_vm0, %v2521_v60 }
 0x2dd   : > { %3769 = vmatprep.mubr.msk.bf16.mxu0 %vm704_vm0, %v2523_v61 }
 0x2e4   : > { %3770 = vmatmul.mubr.msk.bf16.gmra.mrb[60].mxu0 %vm704_vm0, %v2525_v62 }
 0x311   : > { %v5022_v63 = vpop.f32.mrb[8].mxu1 }
 0x312   : > { %v5024_v0 = vpop.f32.mrb[9].mxu1  ;;  %v789_v1 = vsel %vm782_vm1, %v5022_v63, -inf }
 0x313   : > { %790 = vmax.xlane.f32.xlu0 %v789_v1  ;;  %v5028_v2 = vpop.f32.mrb[10].mxu1  ;;  %v783_v5 = vsel %vm782_vm1, %v5024_v0, -inf }
 0x314   : > { %v5030_v3 = vpop.f32.mrb[11].mxu1  ;;  %v792_v10 = vsel %vm782_vm1, %v5028_v2, -inf }
 0x315   : > { %v786_v4 = vsel %vm782_vm1, %v5030_v3, -inf }
 0x316   : > { %787 = vmax.xlane.f32.xlu1 %v786_v4 }
 0x317   : > { %784 = vmax.xlane.f32.xlu0 %v783_v5  ;;  %v5150_v5 = vpop.permute.xlu0 %1379 }
 0x319   : > { %v5036_v6 = vpop.f32.mrb[12].mxu1  ;;  %v5038_v8 = vpop.f32.mrb[8].mxu0 }
 0x31a   : > { %v5040_v9 = vpop.f32.mrb[13].mxu1  ;;  %v5044_v11 = vpop.f32.mrb[9].mxu0  ;;  %v801_v17 = vsel %vm782_vm1, %v5036_v6, -inf  ;;  %v1047_v24 = vsel %vm782_vm1, %v5038_v8, -inf }
 0x31b   : > { %793 = vmax.xlane.f32.xlu0 %v792_v10  ;;  %v5046_v12 = vpop.f32.mrb[14].mxu1  ;;  %v5048_v13 = vpop.f32.mrb[10].mxu0  ;;  %v795_v20 = vsel %vm782_vm1, %v5040_v9, -inf  ;;  %v1041_v27 = vsel %vm782_vm1, %v5044_v11, -inf }
 0x31c   : > { %v5050_v14 = vpop.f32.mrb[15].mxu1  ;;  %v804_v15 = vsel %vm782_vm1, %v5046_v12, -inf  ;;  %v5054_v16 = vpop.f32.mrb[11].mxu0  ;;  %v1050_v21 = vsel %vm782_vm1, %v5048_v13, -inf }
 0x31d   : > { %805 = vmax.xlane.f32.xlu1 %v804_v15  ;;  %v798_v18 = vsel %vm782_vm1, %v5050_v14, -inf  ;;  %v1044_v26 = vsel %vm782_vm1, %v5054_v16, -inf  ;;  %v5154_v15 = vpop.permute.xlu1 %1121 }
 0x31f   : > { %802 = vmax.xlane.f32.xlu0 %v801_v17 }
 0x321   : > { %799 = vmax.xlane.f32.xlu1 %v798_v18  ;;  %v5060_v19 = vpop.f32.mrb[12].mxu0 }
 0x322   : > { %v5066_v22 = vpop.f32.mrb[13].mxu0  ;;  %v1059_v29 = vsel %vm782_vm1, %v5060_v19, -inf }
 0x323   : > { %796 = vmax.xlane.f32.xlu0 %v795_v20  ;;  %v5068_v23 = vpop.f32.mrb[14].mxu0  ;;  %v1053_v31 = vsel %vm782_vm1, %v5066_v22, -inf }
 0x324   : > { %v5072_v25 = vpop.f32.mrb[15].mxu0  ;;  %v1062_v28 = vsel %vm782_vm1, %v5068_v23, -inf }
 0x325   : > { %1051 = vmax.xlane.f32.xlu1 %v1050_v21  ;;  %v1056_v30 = vsel %vm782_vm1, %v5072_v25, -inf  ;;  %v5162_v21 = vpop.permute.xlu0 %1381 }
 0x327   : > { %1048 = vmax.xlane.f32.xlu0 %v1047_v24 }
 0x329   : > { %1045 = vmax.xlane.f32.xlu1 %v1044_v26 }
 0x32b   : > { %1042 = vmax.xlane.f32.xlu0 %v1041_v27  ;;  %v5168_v27 = vpop.permute.xlu1 %1639 }
 0x32d   : > { %1063 = vmax.xlane.f32.xlu1 %v1062_v28 }
 0x32f   : > { %1060 = vmax.xlane.f32.xlu0 %v1059_v29 }
 0x331   : > { %1057 = vmax.xlane.f32.xlu1 %v1056_v30  ;;  %v5174_v30 = vpop.permute.xlu0 %1641 }
 0x333   : > { %1054 = vmax.xlane.f32.xlu0 %v1053_v31 }
 0x35f   : > { %v5086_v32 = vpop.f32.mrb[16].mxu0 }
 0x360   : > { %v5088_v33 = vpop.f32.mrb[17].mxu0  ;;  %v1309_v34 = vsel %vm782_vm1, %v5086_v32, -inf }
 0x361   : > { %v5092_v35 = vpop.f32.mrb[18].mxu0  ;;  %1310 = vmax.xlane.f32.xlu0 %v1309_v34  ;;  %v1303_v38 = vsel %vm782_vm1, %v5088_v33, -inf }
 0x362   : > { %v5094_v36 = vpop.f32.mrb[19].mxu0  ;;  %v1312_v37 = vsel %vm782_vm1, %v5092_v35, -inf }
 0x363   : > { %1313 = vmax.xlane.f32.xlu1 %v1312_v37  ;;  %v1306_v39 = vsel %vm782_vm1, %v5094_v36, -inf }
 0x365   : > { %1304 = vmax.xlane.f32.xlu0 %v1303_v38 }
 0x367   : > { %v5102_v40 = vpop.f32.mrb[20].mxu0  ;;  %1307 = vmax.xlane.f32.xlu1 %v1306_v39  ;;  %v5184_v39 = vpop.permute.xlu1 %1899 }
 0x368   : > { %v5104_v41 = vpop.f32.mrb[21].mxu0  ;;  %v1321_v45 = vsel %vm782_vm1, %v5102_v40, -inf }
 0x369   : > { %v5106_v42 = vpop.f32.mrb[22].mxu0  ;;  %v1315_v46 = vsel %vm782_vm1, %v5104_v41, -inf }
 0x36a   : > { %v5108_v43 = vpop.f32.mrb[23].mxu0  ;;  %v1324_v51 = vsel %vm782_vm1, %v5106_v42, -inf }
 0x36b   : > { %1322 = vmax.xlane.f32.xlu1 %v1321_v45  ;;  %v1318_v52 = vsel %vm782_vm1, %v5108_v43, -inf  ;;  %v5186_v45 = vpop.permute.xlu0 %1901 }
 0x36c   : > { %6048 = vst [vmem:[#allocation27_spill] sm:$0xff] %v5186_v45 }
 0x36f   : > { %v5114_v47 = vpop.f32.mrb[24].mxu0  ;;  %1316 = vmax.xlane.f32.xlu1 %v1315_v46 }
 0x370   : > { %6038 = vst [vmem:[#allocation17_spill] sm:$0xff] %v5114_v47  ;;  %v5116_v48 = vpop.f32.mrb[25].mxu0 }
 0x371   : > { %6039 = vst [vmem:[#allocation18_spill] sm:$0xff] %v5116_v48  ;;  %v5118_v49 = vpop.f32.mrb[26].mxu0 }
 0x372   : > { %6040 = vst [vmem:[#allocation19_spill] sm:$0xff] %v5118_v49  ;;  %v5120_v50 = vpop.f32.mrb[27].mxu0 }
 0x373   : > { %6041 = vst [vmem:[#allocation20_spill] sm:$0xff] %v5120_v50  ;;  %1325 = vmax.xlane.f32.xlu1 %v1324_v51  ;;  %v1566_v58 = vsel %vm782_vm1, %v5120_v50, -inf }
 0x377   : > { %v5126_v53 = vpop.f32.mrb[28].mxu0  ;;  %1319 = vmax.xlane.f32.xlu1 %v1318_v52 }
 0x378   : > { %v5128_v54 = vpop.f32.mrb[29].mxu0  ;;  %v1581_v59 = vsel %vm782_vm1, %v5126_v53, -inf }
 0x379   : > { %v5130_v55 = vpop.f32.mrb[30].mxu0  ;;  %v1575_v4 = vsel %vm782_vm1, %v5128_v54, -inf }
 0x37a   : > { %v5132_v57 = vpop.f32.mrb[31].mxu0  ;;  %v1584_v10 = vsel %vm782_vm1, %v5130_v55, -inf }
 0x37b   : > { %2421 = vrot.lane.b32.xlu0 %v4919_v7, %s4581_s16  ;;  %1567 = vmax.xlane.f32.xlu1 %v1566_v58  ;;  %v1578_v26 = vsel %vm782_vm1, %v5132_v57, -inf  ;;  %v5194_v58 = vpop.permute.xlu1 %2159 }
 0x37c   : > { %6051 = vst [vmem:[#allocation30_spill] sm:$0xff] %v5194_v58 }
 0x37f   : > { %v5140_v60 = vpop.f32.mrb[32].mxu0  ;;  %1582 = vmax.xlane.f32.xlu1 %v1581_v59  ;;  %v5210_v58 = vpop.permute.xlu1 %2419 }
 0x380   : > { %6042 = vst [vmem:[#allocation21_spill] sm:$0xff] %v5140_v60  ;;  %v5142_v61 = vpop.f32.mrb[33].mxu0  ;;  %v1829_v28 = vsel %vm782_vm1, %v5140_v60, -inf  ;;  %6053 = vst [vmem:[#allocation32_spill] sm:$0xff] %v5210_v58 }
 0x381   : > { %6043 = vst [vmem:[#allocation22_spill] sm:$0xff] %v5142_v61  ;;  %v5144_v62 = vpop.f32.mrb[34].mxu0  ;;  %v1823_v38 = vsel %vm782_vm1, %v5142_v61, -inf }
 0x382   : > { %6044 = vst [vmem:[#allocation23_spill] sm:$0xff] %v5144_v62  ;;  %v5146_v1 = vpop.f32.mrb[35].mxu0  ;;  %v1832_v46 = vsel %vm782_vm1, %v5144_v62, -inf }
 0x383   : > { %1576 = vmax.xlane.f32.xlu1 %v1575_v4  ;;  %v1569_v4 = vsel %vm782_vm1, %v5114_v47, -inf  ;;  %v1826_v50 = vsel %vm782_vm1, %v5146_v1, -inf }
 0x387   : > { %v5156_v17 = vpop.f32.mrb[36].mxu0  ;;  %1585 = vmax.xlane.f32.xlu1 %v1584_v10 }
 0x388   : > { %v5158_v18 = vpop.f32.mrb[37].mxu0 }
 0x389   : > { %6045 = vst [vmem:[#allocation24_spill] sm:$0xff] %v5158_v18  ;;  %v5160_v20 = vpop.f32.mrb[38].mxu0 }
 0x38a   : > { %v5164_v24 = vpop.f32.mrb[39].mxu0 }
 0x38b   : > { %1579 = vmax.xlane.f32.xlu1 %v1578_v26  ;;  %v1835_v26 = vsel %vm782_vm1, %v5158_v18, -inf }
 0x38f   : > { %v5172_v29 = vpop.f32.mrb[40].mxu0  ;;  %1830 = vmax.xlane.f32.xlu1 %v1829_v28  ;;  %v5204_v28 = vpop.permute.xlu0 %2161 }
 0x390   : > { %6046 = vst [vmem:[#allocation25_spill] sm:$0xff] %v5172_v29  ;;  %v5176_v31 = vpop.f32.mrb[41].mxu0  ;;  %6052 = vst [vmem:[#allocation31_spill] sm:$0xff] %v5204_v28 }
 0x391   : > { %6047 = vst [vmem:[#allocation26_spill] sm:$0xff] %v5176_v31  ;;  %v5178_v34 = vpop.f32.mrb[42].mxu0 }
 0x392   : > { %v5180_v37 = vpop.f32.mrb[43].mxu0 }
 0x393   : > { %1824 = vmax.xlane.f32.xlu1 %v1823_v38  ;;  %v1563_v38 = vsel %vm782_vm1, %v5116_v48, -inf }
 0x397   : > { %v5190_v51 = vpop.f32.mrb[44].mxu0  ;;  %1833 = vmax.xlane.f32.xlu1 %v1832_v46  ;;  %v2089_v46 = vsel %vm782_vm1, %v5172_v29, -inf }
 0x398   : > { %6049 = vst [vmem:[#allocation28_spill] sm:$0xff] %v5190_v51  ;;  %v5192_v52 = vpop.f32.mrb[45].mxu0 }
 0x399   : > { %6050 = vst [vmem:[#allocation29_spill] sm:$0xff] %v5192_v52  ;;  %v5196_v59 = vpop.f32.mrb[46].mxu0 }
 0x39a   : > { %v5200_v10 = vpop.f32.mrb[47].mxu0  ;;  %1570 = vmax.xlane.f32.xlu0 %v1569_v4 }
 0x39b   : > { %1836 = vmax.xlane.f32.xlu1 %v1835_v26  ;;  %v1572_v26 = vsel %vm782_vm1, %v5118_v49, -inf }
 0x39e   : > { %1564 = vmax.xlane.f32.xlu0 %v1563_v38  ;;  %v2083_v38 = vsel %vm782_vm1, %v5176_v31, -inf }
 0x39f   : > { %v5212_v45 = vpop.f32.mrb[48].mxu0  ;;  %2090 = vmax.xlane.f32.xlu1 %v2089_v46 }
 0x3a0   : > { %v791_v61 = vpop.xlane.xlu0 %790  ;;  %v5214_v4 = vpop.f32.mrb[49].mxu0 }
 0x3a1   : > { %6054 = vst [vmem:[#allocation33_spill] sm:$0xff] %v5214_v4  ;;  %v5216_v47 = vpop.f32.mrb[50].mxu0  ;;  %v809_v58 = vsub.f32 %v5022_v63, %v791_v61 }
 0x3a2   : > { %v5220_v28 = vpop.f32.mrb[51].mxu0  ;;  %1573 = vmax.xlane.f32.xlu0 %v1572_v26  ;;  %v2092_v26 = vsel %vm782_vm1, %v5178_v34, -inf }
 0x3a3   : > { %v788_v18 = vpop.xlane.xlu1 %787  ;;  %2084 = vmax.xlane.f32.xlu1 %v2083_v38  ;;  %v819_v38 = vmul.f32 1.442695, %v809_v58 }
 0x3a4   : > { %v808_v46 = vsub.f32 %v5030_v3, %v788_v18  ;;  %v785_v29 = vpop.xlane.xlu0 %784 }
 0x3a5   : > { %v807_v48 = vsub.f32 %v5024_v0, %v785_v29  ;;  %v2095_v29 = vsel %vm782_vm1, %v5192_v52, -inf }
 0x3a6   : > { %v817_v62 = vmul.f32 1.442695, %v808_v46  ;;  %1827 = vmax.xlane.f32.xlu0 %v1826_v50  ;;  %v1841_v50 = vsel %vm782_vm1, %v5156_v17, -inf }
 0x3a7   : > { %v815_v49 = vmul.f32 1.442695, %v807_v48  ;;  %v5231_v60 = vpop.f32.mrb[52].mxu0  ;;  %2093 = vmax.xlane.f32.xlu1 %v2092_v26  ;;  %v1844_v26 = vsel %vm782_vm1, %v5160_v20, -inf }
 0x3a8   : > { %4086 = vpow2.f32 %v817_v62  ;;  %v794_v63 = vpop.xlane.xlu0 %793  ;;  %v5233_v61 = vpop.f32.mrb[53].mxu0 }
 0x3a9   : > { %6055 = vst [vmem:[#allocation34_spill] sm:$0xff] %v5233_v61  ;;  %4088 = vpow2.f32 %v815_v49  ;;  %v810_v0 = vsub.f32 %v5028_v2, %v794_v63  ;;  %v5236_v3 = vpop.f32.mrb[54].mxu0 }
 0x3aa   : > { %v5240_v18 = vpop.f32.mrb[55].mxu0  ;;  %1842 = vmax.xlane.f32.xlu0 %v1841_v50  ;;  %v806_v48 = vpop.xlane.xlu1 %805  ;;  %4090 = vpow2.f32 %v819_v38  ;;  %v2349_v50 = vsel %vm782_vm1, %v5212_v45, -inf }
 0x3ab   : > { %v821_v58 = vmul.f32 1.442695, %v810_v0  ;;  %v814_v62 = vsub.f32 %v5046_v12, %v806_v48  ;;  %2096 = vmax.xlane.f32.xlu1 %v2095_v29 }
 0x3ac   : > { %v803_v49 = vpop.xlane.xlu0 %802 }
 0x3ad   : > { %4092 = vpow2.f32 %v821_v58  ;;  %v829_v2 = vmul.f32 1.442695, %v814_v62  ;;  %v813_v46 = vsub.f32 %v5036_v6, %v803_v49  ;;  %v1838_v58 = vsel %vm782_vm1, %v5164_v24, -inf }
 0x3ae   : > { %1845 = vmax.xlane.f32.xlu0 %v1844_v26  ;;  %v800_v63 = vpop.xlane.xlu1 %799 }
 0x3af   : > { %v827_v31 = vmul.f32 1.442695, %v813_v46  ;;  %v812_v0 = vsub.f32 %v5050_v14, %v800_v63  ;;  %v5251_v52 = vpop.f32.mrb[56].mxu0  ;;  %2350 = vmax.xlane.f32.xlu1 %v2349_v50  ;;  %4094 = vpow2.f32 %v829_v2  ;;  %v2343_v2 = vsel %vm782_vm1, %v5214_v4, -inf }
 0x3b0   : > { %v5253_v12 = vpop.f32.mrb[57].mxu0  ;;  %v797_v38 = vpop.xlane.xlu0 %796 }
 0x3b1   : > { %4096 = vpow2.f32 %v827_v31  ;;  %v825_v6 = vmul.f32 1.442695, %v812_v0  ;;  %v811_v48 = vsub.f32 %v5040_v9, %v797_v38  ;;  %v5256_v29 = vpop.f32.mrb[58].mxu0  ;;  %v2086_v38 = vsel %vm782_vm1, %v5180_v37, -inf }
 0x3b2   : > { %v5260_v62 = vpop.eup %4086  ;;  %v5262_v49 = vpop.f32.mrb[59].mxu0  ;;  %1839 = vmax.xlane.f32.xlu0 %v1838_v58 }
 0x3b3   : > { %v1052_v14 = vpop.xlane.xlu1 %1051  ;;  %v5266_v46 = vpop.eup %4088  ;;  %v823_v31 = vmul.f32 1.442695, %v811_v48  ;;  %2344 = vmax.xlane.f32.xlu1 %v2343_v2  ;;  %4098 = vpow2.f32 %v825_v6 }
 0x3b4   : > { %v1068_v26 = vsub.f32 %v5048_v13, %v1052_v14  ;;  %v1049_v9 = vpop.xlane.xlu0 %1048  ;;  %v855_v63 = vpack.c.bf16 %v5260_v62, %v5266_v46  ;;  %v5274_v58 = vpop.eup %4090  ;;  %v2352_v13 = vsel %vm782_vm1, %v5216_v47, -inf }
 0x3b5   : > { %4100 = vpow2.f32 %v823_v31  ;;  %v1067_v0 = vsub.f32 %v5038_v8, %v1049_v9 }
 0x3b6   : > { %v1079_v50 = vmul.f32 1.442695, %v1068_v26  ;;  %3623 = vmatprep.mubr.msk.bf16.mxu1 %vm782_vm1, %v855_v63  ;;  %2087 = vmax.xlane.f32.xlu0 %v2086_v38 }
 0x3b7   : > { %v1046_v48 = vpop.xlane.xlu1 %1045  ;;  %v5279_v6 = vpop.eup %4092  ;;  %v1077_v14 = vmul.f32 1.442695, %v1067_v0  ;;  %2353 = vmax.xlane.f32.xlu1 %v2352_v13  ;;  %v2101_v0 = vsel %vm782_vm1, %v5190_v51, -inf  ;;  %v2355_v13 = vsel %vm782_vm1, %v5233_v61, -inf  ;;  %v2104_v61 = vsel %vm782_vm1, %v5196_v59, -inf }
 0x3b8   : > { %v1066_v2 = vsub.f32 %v5054_v16, %v1046_v48  ;;  %v5282_v31 = vpop.f32.mrb[60].mxu0  ;;  %v856_v8 = vpack.c.bf16 %v5279_v6, %v5274_v58  ;;  %4102 = vpow2.f32 %v1079_v50  ;;  %v1043_v9 = vpop.xlane.xlu0 %1042 }
 0x3b9   : > { %v5286_v26 = vpop.f32.mrb[61].mxu0  ;;  %4104 = vpow2.f32 %v1077_v14  ;;  %v1065_v38 = vsub.f32 %v5044_v11, %v1043_v9  ;;  %v5293_v16 = vpop.eup %4094 }
 0x3ba   : > { %v1075_v63 = vmul.f32 1.442695, %v1066_v2  ;;  %v5289_v4 = vpop.f32.mrb[62].mxu0  ;;  %6056 = vst [vmem:[#allocation35_spill] sm:$0xff] %v5293_v16  ;;  %3624 = vmatmul.mubr.msk.bf16.vlgmr.msra.gmra.mrb[16].mxu1 %vm782_vm1, %v856_v8  ;;  %2102 = vmax.xlane.f32.xlu0 %v2101_v0 }
 0x3bb   : > { %v5296_v48 = vpop.f32.mrb[63].mxu0  ;;  %v1064_v50 = vpop.xlane.xlu1 %1063  ;;  %v1073_v2 = vmul.f32 1.442695, %v1065_v38  ;;  %3642 = vmatpush3.bf16.msra.mxu1 %v4998_v44  ;;  %2356 = vmax.xlane.f32.xlu1 %v2355_v13 }
 0x3bc   : > { %v5300_v14 = vpop.eup %4096  ;;  %v1072_v11 = vsub.f32 %v5068_v23, %v1064_v50  ;;  %4106 = vpow2.f32 %v1075_v63  ;;  %3643 = vmatprep.subr.bf16.mxu1 %v5154_v15  ;;  %v1061_v9 = vpop.xlane.xlu0 %1060  ;;  %v2609_v23 = vsel %vm782_vm1, %v5251_v52, -inf }
 0x3bd   : > { %6057 = vst [vmem:[#allocation36_spill] sm:$0xff] %v5300_v14  ;;  %v858_v8 = vpack.c.bf16 %v5293_v16, %v5300_v14  ;;  %4108 = vpow2.f32 %v1073_v2  ;;  %v1071_v51 = vsub.f32 %v5060_v19, %v1061_v9  ;;  %v5310_v38 = vpop.eup %4098  ;;  %v2098_v9 = vsel %vm782_vm1, %v5200_v10, -inf }
 0x3be   : > { %v1087_v0 = vmul.f32 1.442695, %v1072_v11  ;;  %2105 = vmax.xlane.f32.xlu0 %v2104_v61 }
 0x3bf   : > { %v1058_v44 = vpop.xlane.xlu1 %1057  ;;  %v5314_v63 = vpop.eup %4100  ;;  %v1085_v50 = vmul.f32 1.442695, %v1071_v51  ;;  %3644 = vmatpush3.bf16.msra.mxu1 %v5154_v15  ;;  %2610 = vmax.xlane.f32.xlu1 %v2609_v23 }
 0x3c0   : > { %6058 = vst [vmem:[#allocation37_spill] sm:$0xff] %v5314_v63  ;;  %v1070_v13 = vsub.f32 %v5072_v25, %v1058_v44  ;;  %4110 = vpow2.f32 %v1087_v0  ;;  %3663 = vmatprep.subr.bf16.mxu1 %v5150_v5  ;;  %v1055_v19 = vpop.xlane.xlu0 %1054  ;;  %v857_v2 = vpack.c.bf16 %v5310_v38, %v5314_v63  ;;  %v2603_v25 = vsel %vm782_vm1, %v5253_v12, -inf }
 0x3c1   : > { %4112 = vpow2.f32 %v1085_v50  ;;  %v1069_v11 = vsub.f32 %v5066_v22, %v1055_v19  ;;  %v2346_v44 = vsel %vm782_vm1, %v5220_v28, -inf  ;;  %v2612_v50 = vsel %vm782_vm1, %v5256_v29, -inf }
 0x3c2   : > { %v1083_v61 = vmul.f32 1.442695, %v1070_v13  ;;  %v5324_v51 = vpop.eup %4102  ;;  %2099 = vmax.xlane.f32.xlu0 %v2098_v9  ;;  %3627 = vmatprep.mubr.msk.bf16.mxu1 %vm782_vm1, %v857_v2  ;;  %v2361_v19 = vsel %vm782_vm1, %v5231_v60, -inf }
 0x3c3   : > { %v5329_v15 = vpop.eup %4104  ;;  %v1081_v0 = vmul.f32 1.442695, %v1069_v11  ;;  %2604 = vmax.xlane.f32.xlu1 %v2603_v25  ;;  %3628 = vmatmul.mubr.msk.bf16.gmra.mrb[20].mxu1 %vm782_vm1, %v858_v8  ;;  %v2364_v25 = vsel %vm782_vm1, %v5236_v3, -inf }
 0x3c4   : > { %v1114_v22 = vpack.c.bf16 %v5324_v51, %v5329_v15  ;;  %4114 = vpow2.f32 %v1083_v61  ;;  %v2615_v61 = vsel %vm782_vm1, %v5286_v26, -inf }
 0x3c5   : > { %4116 = vpow2.f32 %v1081_v0 }
 0x3c6   : > { %v5336_v23 = vpop.eup %4106  ;;  %2347 = vmax.xlane.f32.xlu0 %v2346_v44 }
 0x3c7   : > { %v5340_v13 = vpop.eup %4108  ;;  %2613 = vmax.xlane.f32.xlu1 %v2612_v50  ;;  %v2606_v50 = vsel %vm782_vm1, %v5262_v49, -inf }
 0x3c8   : > { %v1113_v8 = vpack.c.bf16 %v5336_v23, %v5340_v13 }
 0x3ca   : > { %v5346_v2 = vpop.eup %4110  ;;  %2362 = vmax.xlane.f32.xlu0 %v2361_v19  ;;  %3645 = vmatprep.mubr.msk.bf16.mxu1 %vm782_vm1, %v1113_v8  ;;  %v2624_v8 = vsel %vm782_vm1, %v5289_v4, -inf  ;;  %v2618_v19 = vsel %vm782_vm1, %v5296_v48, -inf }
 0x3cb   : > { %v5351_v11 = vpop.eup %4112  ;;  %2616 = vmax.xlane.f32.xlu1 %v2615_v61  ;;  %3646 = vmatmul.mubr.msk.bf16.vlgmr.msra.gmra.mrb[24].mxu1 %vm782_vm1, %v1114_v22 }
 0x3cc   : > { %3664 = vmatpush3.bf16.msra.mxu1 %v5150_v5  ;;  %v1116_v9 = vpack.c.bf16 %v5346_v2, %v5351_v11  ;;  %v2358_v5 = vsel %vm782_vm1, %v5240_v18, -inf }
 0x3cd   : > { %3665 = vmatprep.subr.bf16.mxu1 %v5162_v21 }
 0x3ce   : > { %v5360_v0 = vpop.eup %4114  ;;  %2365 = vmax.xlane.f32.xlu0 %v2364_v25 }
 0x3cf   : > { %v5362_v44 = vpop.eup %4116 }
 0x3d0   : > { %3666 = vmatpush3.bf16.msra.mxu1 %v5162_v21  ;;  %v1115_v22 = vpack.c.bf16 %v5360_v0, %v5362_v44  ;;  %v2621_v21 = vsel %vm782_vm1, %v5282_v31, -inf }
 0x3d1   : > { %3685 = vmatprep.subr.bf16.mxu1 %v5168_v27 }
 0x3d2   : > { %2359 = vmax.xlane.f32.xlu0 %v2358_v5  ;;  %3649 = vmatprep.mubr.msk.bf16.mxu1 %vm782_vm1, %v1115_v22 }
 0x3d3   : > { %3650 = vmatmul.mubr.msk.bf16.gmra.mrb[28].mxu1 %vm782_vm1, %v1116_v9 }
 0x3d6   : > { %2607 = vmax.xlane.f32.xlu0 %v2606_v50 }
 0x3da   : > { %2622 = vmax.xlane.f32.xlu0 %v2621_v21 }
 0x3dc   : > { %2679 = vrot.lane.b32.xlu1 %v4911_v56, %s4582_s18 }
 0x3de   : > { %2625 = vmax.xlane.f32.xlu0 %v2624_v8 }
 0x3e2   : > { %2619 = vmax.xlane.f32.xlu0 %v2618_v19 }
 0x3ee   : > { %v1311_v61 = vpop.xlane.xlu0 %1310 }
 0x3ef   : > { %v1329_v9 = vsub.f32 %v5086_v32, %v1311_v61 }
 0x3f0   : > { %v1314_v25 = vpop.xlane.xlu1 %1313 }
 0x3f1   : > { %v1339_v22 = vmul.f32 1.442695, %v1329_v9  ;;  %v1330_v5 = vsub.f32 %v5092_v35, %v1314_v25 }
 0x3f2   : > { %v1305_v50 = vpop.xlane.xlu0 %1304 }
 0x3f3   : > { %v1341_v21 = vmul.f32 1.442695, %v1330_v5  ;;  %v1327_v14 = vsub.f32 %v5088_v33, %v1305_v50  ;;  %4118 = vpow2.f32 %v1339_v22  ;;  %v840_v33 = vsel %vm782_vm1, %v5279_v6, 0.0 }
 0x3f4   : > { %v1308_v56 = vpop.xlane.xlu1 %1307  ;;  %v834_v5 = vsel %vm782_vm1, %v5260_v62, 0.0 }
 0x3f5   : > { %4120 = vpow2.f32 %v1341_v21  ;;  %v1335_v63 = vmul.f32 1.442695, %v1327_v14  ;;  %v1328_v8 = vsub.f32 %v5094_v36, %v1308_v56  ;;  %v1092_v56 = vsel %vm782_vm1, %v5336_v23, 0.0 }
 0x3f7   : > { %v1337_v16 = vmul.f32 1.442695, %v1328_v8  ;;  %4122 = vpow2.f32 %v1335_v63 }
 0x3f8   : > { %2681 = vrot.lane.b32.xlu0 %v4919_v7, %s4582_s18  ;;  %v1323_v32 = vpop.xlane.xlu1 %1322 }
 0x3f9   : > { %4124 = vpow2.f32 %v1337_v16  ;;  %v1333_v19 = vsub.f32 %v5102_v40, %v1323_v32 }
 0x3fb   : > { %v1347_v25 = vmul.f32 1.442695, %v1333_v19 }
 0x3fc   : > { %v1317_v35 = vpop.xlane.xlu1 %1316 }
 0x3fd   : > { %v5389_v61 = vpop.eup %4118  ;;  %v1331_v36 = vsub.f32 %v5104_v41, %v1317_v35  ;;  %4126 = vpow2.f32 %v1347_v25 }
 0x3ff   : > { %v4121_v9 = vpop.eup %4120  ;;  %v1343_v50 = vmul.f32 1.442695, %v1331_v36 }
 0x400   : > { %v1376_v14 = vpack.c.bf16 %v4121_v9, %v5389_v61  ;;  %841 = vadd.xlane.f32.xlu1 %v840_v33  ;;  %v1326_v63 = vpop.xlane.xlu1 %1325 }
 0x401   : > { %v1334_v7 = vsub.f32 %v5106_v42, %v1326_v63  ;;  %v5396_v22 = vpop.eup %4122 }
 0x403   : > { %v5398_v16 = vpop.eup %4124  ;;  %v1349_v40 = vmul.f32 1.442695, %v1334_v7 }
 0x404   : > { %835 = vadd.xlane.f32.xlu1 %v834_v5  ;;  %v1320_v6 = vpop.xlane.xlu1 %1319  ;;  %v1375_v21 = vpack.c.bf16 %v5398_v16, %v5396_v22 }
 0x405   : > { %4128 = vpow2.f32 %v1349_v40  ;;  %v1332_v41 = vsub.f32 %v5108_v43, %v1320_v6  ;;  %v1110_v43 = vsel %vm782_vm1, %v5346_v2, 0.0 }
 0x406   : > { %3667 = vmatprep.mubr.msk.bf16.mxu1 %vm782_vm1, %v1375_v21  ;;  %4130 = vpow2.f32 %v1343_v50 }
 0x407   : > { %v1345_v42 = vmul.f32 1.442695, %v1332_v41  ;;  %3668 = vmatmul.mubr.msk.bf16.vlgmr.msra.gmra.mrb[32].mxu1 %vm782_vm1, %v1376_v14  ;;  %v5417_v32 = vpop.eup %4126  ;;  %v1095_v41 = vsel %vm782_vm1, %v5329_v15, 0.0  ;;  %v6060_v15 = vld [vmem:[#allocation23_spill] sm:$0xff] }
 0x408   : > { %3686 = vmatpush3.bf16.msra.mxu1 %v5168_v27  ;;  %1093 = vadd.xlane.f32.xlu1 %v1092_v56  ;;  %v5410_v62 = vpop.xlane.xlu1 %1567  ;;  %v1104_v27 = vsel %vm782_vm1, %v5360_v0, 0.0 }
 0x409   : > { %4132 = vpow2.f32 %v1345_v42  ;;  %3687 = vmatprep.subr.bf16.mxu1 %v5174_v30  ;;  %v6059_v42 = vld [vmem:[#allocation21_spill] sm:$0xff] }
 0x40c   : > { %3688 = vmatpush3.bf16.msra.mxu1 %v5174_v30  ;;  %1111 = vadd.xlane.f32.xlu1 %v1110_v43  ;;  %v1583_v8 = vpop.xlane.xlu1 %1582  ;;  %v1360_v30 = vsel %vm782_vm1, %v4121_v9, 0.0 }
 0x40d   : > { %3707 = vmatprep.subr.bf16.mxu1 %v5184_v39  ;;  %v1593_v19 = vsub.f32 %v5126_v53, %v1583_v8  ;;  %v837_v53 = vsel %vm782_vm1, %v5274_v58, 0.0 }
 0x40f   : > { %v4129_v23 = vpop.eup %4128  ;;  %v1607_v25 = vmul.f32 1.442695, %v1593_v19 }
 0x410   : > { %1105 = vadd.xlane.f32.xlu1 %v1104_v27  ;;  %v1577_v35 = vpop.xlane.xlu1 %1576  ;;  %v1378_v33 = vpack.c.bf16 %v4129_v23, %v5417_v32  ;;  %v5423_v14 = vpop.eup %4130  ;;  %v1372_v9 = vsel %vm782_vm1, %v4129_v23, 0.0 }
 0x411   : > { %v1591_v36 = vsub.f32 %v5128_v54, %v1577_v35  ;;  %4134 = vpow2.f32 %v1607_v25  ;;  %v5447_v23 = vpop.permute.xlu0 %2421 }
 0x413   : > { %v4133_v2 = vpop.eup %4132  ;;  %v1603_v5 = vmul.f32 1.442695, %v1591_v36 }
 0x414   : > { %1361 = vadd.xlane.f32.xlu1 %v1360_v30  ;;  %v1586_v63 = vpop.xlane.xlu1 %1585  ;;  %v1377_v7 = vpack.c.bf16 %v4133_v2, %v5423_v14  ;;  %v1366_v58 = vsel %vm782_vm1, %v4133_v2, 0.0  ;;  %v1098_v30 = vsel %vm782_vm1, %v5324_v51, 0.0 }
 0x415   : > { %v1594_v0 = vsub.f32 %v5130_v55, %v1586_v63  ;;  %v831_v55 = vsel %vm782_vm1, %v5266_v46, 0.0 }
 0x416   : > { %3671 = vmatprep.mubr.msk.bf16.mxu1 %vm782_vm1, %v1377_v7 }
 0x417   : > { %v1609_v40 = vmul.f32 1.442695, %v1594_v0  ;;  %838 = vadd.xlane.f32.xlu0 %v837_v53  ;;  %3672 = vmatmul.mubr.msk.bf16.gmra.mrb[36].mxu1 %vm782_vm1, %v1378_v33 }
 0x418   : > { %1373 = vadd.xlane.f32.xlu1 %v1372_v9  ;;  %v1580_v54 = vpop.xlane.xlu1 %1579 }
 0x419   : > { %4136 = vpow2.f32 %v1609_v40  ;;  %v1592_v50 = vsub.f32 %v5132_v57, %v1580_v54  ;;  %v1089_v57 = vsel %vm782_vm1, %v5340_v13, 0.0  ;;  %v6061_v13 = vld [vmem:[#allocation20_spill] sm:$0xff]  ;;  %v1107_v40 = vsel %vm782_vm1, %v5351_v11, 0.0  ;;  %v6066_v11 = vld [vmem:[#allocation19_spill] sm:$0xff] }
 0x41a   : > { %4138 = vpow2.f32 %v1603_v5  ;;  %v1588_v36 = vsub.f32 %v6061_v13, %v5410_v62  ;;  %v6062_v5 = vld [vmem:[#allocation17_spill] sm:$0xff] }
 0x41b   : > { %v1605_v6 = vmul.f32 1.442695, %v1592_v50  ;;  %832 = vadd.xlane.f32.xlu0 %v831_v55  ;;  %v5441_v8 = vpop.eup %4134  ;;  %v6063_v50 = vld [vmem:[#allocation18_spill] sm:$0xff] }
 0x41c   : > { %1367 = vadd.xlane.f32.xlu1 %v1366_v58  ;;  %v1831_v21 = vpop.xlane.xlu1 %1830  ;;  %v1597_v9 = vmul.f32 1.442695, %v1588_v36 }
 0x41d   : > { %4140 = vpow2.f32 %v1605_v6  ;;  %v1849_v56 = vsub.f32 %v6059_v42, %v1831_v21  ;;  %v6064_v6 = vld [vmem:[#allocation22_spill] sm:$0xff] }
 0x41f   : > { %1096 = vadd.xlane.f32.xlu0 %v1095_v41  ;;  %v1859_v27 = vmul.f32 1.442695, %v1849_v56  ;;  %v1101_v41 = vsel %vm782_vm1, %v5362_v44, 0.0  ;;  %v6065_v56 = vld [vmem:[#allocation25_spill] sm:$0xff] }
 0x420   : > { %v1825_v43 = vpop.xlane.xlu1 %1824 }
 0x421   : > { %4142 = vpow2.f32 %v1859_v27  ;;  %v1847_v58 = vsub.f32 %v6064_v6, %v1825_v43  ;;  %v1357_v43 = vsel %vm782_vm1, %v5389_v61, 0.0  ;;  %v1351_v61 = vsel %vm782_vm1, %v5396_v22, 0.0 }
 0x423   : > { %v5445_v46 = vpop.eup %4136  ;;  %1090 = vadd.xlane.f32.xlu0 %v1089_v57 }
 0x424   : > { %v1834_v19 = vpop.xlane.xlu1 %1833  ;;  %v1638_v35 = vpack.c.bf16 %v5445_v46, %v5441_v8  ;;  %v5452_v2 = vpop.eup %4138 }
 0x425   : > { %v1850_v33 = vsub.f32 %v6060_v15, %v1834_v19 }
 0x427   : > { %v5456_v25 = vpop.eup %4140  ;;  %v1861_v63 = vmul.f32 1.442695, %v1850_v33  ;;  %v1571_v7 = vpop.xlane.xlu0 %1570  ;;  %1099 = vadd.xlane.f32.xlu0 %v1098_v30  ;;  %v1855_v30 = vmul.f32 1.442695, %v1847_v58  ;;  %v6067_v58 = vld [vmem:[#allocation24_spill] sm:$0xff] }
 0x428   : > { %v1837_v0 = vpop.xlane.xlu1 %1836  ;;  %v1637_v53 = vpack.c.bf16 %v5456_v25, %v5452_v2  ;;  %v1589_v51 = vsub.f32 %v6062_v5, %v1571_v7 }
 0x429   : > { %4144 = vpow2.f32 %v1861_v63 }
 0x42a   : > { %4146 = vpow2.f32 %v1597_v9  ;;  %v1599_v42 = vmul.f32 1.442695, %v1589_v51 }
 0x42b   : > { %v1565_v54 = vpop.xlane.xlu0 %1564  ;;  %1108 = vadd.xlane.f32.xlu0 %v1107_v40  ;;  %v5471_v33 = vpop.eup %4142 }
 0x42c   : > { %v1587_v55 = vsub.f32 %v6063_v50, %v1565_v54  ;;  %v2091_v62 = vpop.xlane.xlu1 %2090 }
 0x42d   : > { %v2109_v57 = vsub.f32 %v6065_v56, %v2091_v62 }
 0x42e   : > { %v1595_v21 = vmul.f32 1.442695, %v1587_v55 }
 0x42f   : > { %v1574_v27 = vpop.xlane.xlu0 %1573  ;;  %1102 = vadd.xlane.f32.xlu0 %v1101_v41  ;;  %v2119_v44 = vmul.f32 1.442695, %v2109_v57 }
 0x430   : > { %4148 = vpow2.f32 %v1595_v21  ;;  %v1590_v19 = vsub.f32 %v6066_v11, %v1574_v27  ;;  %v2085_v15 = vpop.xlane.xlu1 %2084  ;;  %v1354_v21 = vsel %vm782_vm1, %v5398_v16, 0.0 }
 0x431   : > { %4150 = vpow2.f32 %v1599_v42 }
 0x432   : > { %v1601_v13 = vmul.f32 1.442695, %v1590_v19  ;;  %v6068_v19 = vld [vmem:[#allocation26_spill] sm:$0xff] }
 0x433   : > { %v5475_v36 = vpop.eup %4144  ;;  %v1828_v63 = vpop.xlane.xlu0 %1827  ;;  %1358 = vadd.xlane.f32.xlu0 %v1357_v43 }
 0x434   : > { %v1896_v7 = vpack.c.bf16 %v5475_v36, %v5471_v33  ;;  %4152 = vpow2.f32 %v1601_v13  ;;  %v1848_v40 = vsub.f32 %v5146_v1, %v1828_v63  ;;  %v2094_v9 = vpop.xlane.xlu1 %2093  ;;  %v4147_v6 = vpop.eup %4146 }
 0x435   : > { %v2110_v5 = vsub.f32 %v5178_v34, %v2094_v9  ;;  %4154 = vpow2.f32 %v1855_v30  ;;  %v1851_v34 = vsub.f32 %v6067_v58, %v1837_v0  ;;  %v2107_v30 = vsub.f32 %v6068_v19, %v2085_v15  ;;  %v6072_v19 = vld [vmem:[#allocation29_spill] sm:$0xff] }
 0x436   : > { %v1857_v51 = vmul.f32 1.442695, %v1848_v40  ;;  %4156 = vpow2.f32 %v2119_v44  ;;  %v1369_v0 = vsel %vm782_vm1, %v5417_v32, 0.0 }
 0x437   : > { %v2121_v54 = vmul.f32 1.442695, %v2110_v5  ;;  %v1843_v50 = vpop.xlane.xlu0 %1842  ;;  %1352 = vadd.xlane.f32.xlu0 %v1351_v61  ;;  %v1863_v11 = vmul.f32 1.442695, %v1851_v34  ;;  %v2115_v5 = vmul.f32 1.442695, %v2107_v30 }
 0x438   : > { %4158 = vpow2.f32 %v1857_v51  ;;  %v1853_v55 = vsub.f32 %v5156_v17, %v1843_v50  ;;  %v5484_v62 = vpop.xlane.xlu1 %2096 }
 0x439   : > { %4160 = vpow2.f32 %v2121_v54  ;;  %v6069_v54 = vld [vmem:[#allocation27_spill] sm:$0xff]  ;;  %v2111_v30 = vsub.f32 %v6072_v19, %v5484_v62 }
 0x43a   : > { %v5486_v1 = vpop.eup %4148  ;;  %v1867_v41 = vmul.f32 1.442695, %v1853_v55  ;;  %v1614_v55 = vsel %vm782_vm1, %v4147_v6, 0.0 }
 0x43b   : > { %v1846_v22 = vpop.xlane.xlu0 %1845  ;;  %1355 = vadd.xlane.f32.xlu0 %v1354_v21  ;;  %v1635_v42 = vpack.c.bf16 %v4147_v6, %v5486_v1  ;;  %v4151_v17 = vpop.eup %4150 }
 0x43c   : > { %v1854_v56 = vsub.f32 %v5160_v20, %v1846_v22  ;;  %v2351_v57 = vpop.xlane.xlu1 %2350  ;;  %4162 = vpow2.f32 %v1867_v41  ;;  %v1617_v41 = vsel %vm782_vm1, %v4151_v17, 0.0  ;;  %v6070_v22 = vld [vmem:[#allocation30_spill] sm:$0xff] }
 0x43d   : > { %3689 = vmatprep.mubr.msk.bf16.mxu1 %vm782_vm1, %v1635_v42  ;;  %v2369_v43 = vsub.f32 %v5212_v45, %v2351_v57 }
 0x43e   : > { %v4153_v27 = vpop.eup %4152  ;;  %v1869_v13 = vmul.f32 1.442695, %v1854_v56  ;;  %v1632_v56 = vsel %vm782_vm1, %v5445_v46, 0.0 }
 0x43f   : > { %v1636_v16 = vpack.c.bf16 %v4153_v27, %v4151_v17  ;;  %v1840_v44 = vpop.xlane.xlu0 %1839  ;;  %1370 = vadd.xlane.f32.xlu0 %v1369_v0  ;;  %v1620_v20 = vsel %vm782_vm1, %v4153_v27, 0.0  ;;  %v5499_v63 = vpop.eup %4154  ;;  %v2379_v61 = vmul.f32 1.442695, %v2369_v43 }
 0x440   : > { %4164 = vpow2.f32 %v1869_v13  ;;  %v1852_v40 = vsub.f32 %v5164_v24, %v1840_v44  ;;  %1621 = vadd.xlane.f32.xlu1 %v1620_v20  ;;  %v5502_v9 = vpop.xlane.xlu1 %2344  ;;  %v5504_v15 = vpop.eup %4156  ;;  %v1363_v24 = vsel %vm782_vm1, %v5423_v14, 0.0 }
 0x441   : > { %3690 = vmatmul.mubr.msk.bf16.vlgmr.msra.gmra.mrb[40].mxu1 %vm782_vm1, %v1636_v16  ;;  %4166 = vpow2.f32 %v1863_v11  ;;  %v1611_v11 = vsel %vm782_vm1, %v5486_v1, 0.0  ;;  %v1626_v16 = vsel %vm782_vm1, %v5456_v25, 0.0  ;;  %v6073_v1 = vld [vmem:[#allocation33_spill] sm:$0xff]  ;;  %v1880_v25 = vsel %vm782_vm1, %v5475_v36, 0.0 }
 0x442   : > { %v5507_v32 = vpop.eup %4158  ;;  %v1865_v45 = vmul.f32 1.442695, %v1852_v40  ;;  %3708 = vmatpush3.bf16.msra.mxu1 %v5184_v39  ;;  %3693 = vmatprep.mubr.msk.bf16.mxu1 %vm782_vm1, %v1637_v53  ;;  %v2367_v40 = vsub.f32 %v6073_v1, %v5502_v9 }
 0x443   : > { %v5516_v51 = vpop.eup %4160  ;;  %3709 = vmatprep.subr.bf16.mxu1 %v6069_v54  ;;  %v2088_v50 = vpop.xlane.xlu0 %2087  ;;  %1364 = vadd.xlane.f32.xlu0 %v1363_v24  ;;  %v1895_v39 = vpack.c.bf16 %v5507_v32, %v5499_v63 }
 0x444   : > { %v2156_v58 = vpack.c.bf16 %v5516_v51, %v5504_v15  ;;  %4168 = vpow2.f32 %v1865_v45  ;;  %v2108_v53 = vsub.f32 %v5180_v37, %v2088_v50  ;;  %1615 = vadd.xlane.f32.xlu1 %v1614_v55  ;;  %v2354_v14 = vpop.xlane.xlu1 %2353  ;;  %v6071_v37 = vld [vmem:[#allocation28_spill] sm:$0xff]  ;;  %v2123_v45 = vmul.f32 1.442695, %v2111_v30  ;;  %v6076_v30 = vld [vmem:[#allocation34_spill] sm:$0xff] }
 0x445   : > { %v2370_v34 = vsub.f32 %v5216_v47, %v2354_v14  ;;  %4170 = vpow2.f32 %v2115_v5  ;;  %v1629_v5 = vsel %vm782_vm1, %v5441_v8, 0.0  ;;  %v2375_v55 = vmul.f32 1.442695, %v2367_v40 }
 0x446   : > { %v2117_v21 = vmul.f32 1.442695, %v2108_v53  ;;  %3710 = vmatpush3.bf16.msra.mxu1 %v6069_v54  ;;  %4172 = vpow2.f32 %v2379_v61  ;;  %v5534_v27 = vpop.eup %4162 }
 0x447   : > { %v2381_v6 = vmul.f32 1.442695, %v2370_v34  ;;  %3729 = vmatprep.subr.bf16.mxu1 %v6070_v22  ;;  %v2103_v42 = vpop.xlane.xlu0 %2102  ;;  %1618 = vadd.xlane.f32.xlu0 %v1617_v41  ;;  %v6074_v34 = vld [vmem:[#allocation31_spill] sm:$0xff] }
 0x448   : > { %4174 = vpow2.f32 %v2117_v21  ;;  %v2113_v57 = vsub.f32 %v6071_v37, %v2103_v42  ;;  %1633 = vadd.xlane.f32.xlu1 %v1632_v56  ;;  %v5532_v47 = vpop.xlane.xlu1 %2356  ;;  %v6075_v37 = vld [vmem:[#allocation32_spill] sm:$0xff] }
 0x449   : > { %4176 = vpow2.f32 %v2381_v6  ;;  %3694 = vmatmul.mubr.msk.bf16.gmra.mrb[44].mxu1 %vm782_vm1, %v1638_v35 }
 0x44a   : > { %v5540_v17 = vpop.eup %4164  ;;  %3711 = vmatprep.mubr.msk.bf16.mxu1 %vm782_vm1, %v1895_v39  ;;  %v2127_v13 = vmul.f32 1.442695, %v2113_v57 }
 0x44b   : > { %v2106_v0 = vpop.xlane.xlu0 %2105  ;;  %1612 = vadd.xlane.f32.xlu0 %v1611_v11  ;;  %v1898_v46 = vpack.c.bf16 %v5540_v17, %v5534_v27  ;;  %v5552_v44 = vpop.eup %4166 }
 0x44c   : > { %v2114_v35 = vsub.f32 %v5196_v59, %v2106_v0  ;;  %1627 = vadd.xlane.f32.xlu1 %v1626_v16  ;;  %v2611_v43 = vpop.xlane.xlu1 %2610  ;;  %4178 = vpow2.f32 %v2127_v13  ;;  %v2371_v13 = vsub.f32 %v6076_v30, %v5532_v47  ;;  %v2140_v47 = vsel %vm782_vm1, %v5516_v51, 0.0 }
 0x44d   : > { %v2629_v24 = vsub.f32 %v5251_v52, %v2611_v43 }
 0x44e   : > { %v4169_v20 = vpop.eup %4168  ;;  %v2129_v62 = vmul.f32 1.442695, %v2114_v35  ;;  %v2383_v40 = vmul.f32 1.442695, %v2371_v13 }
 0x44f   : > { %v2100_v59 = vpop.xlane.xlu0 %2099  ;;  %1630 = vadd.xlane.f32.xlu0 %v1629_v5  ;;  %v1897_v61 = vpack.c.bf16 %v4169_v20, %v5552_v44  ;;  %v5562_v54 = vpop.eup %4170  ;;  %v2639_v14 = vmul.f32 1.442695, %v2629_v24 }
 0x450   : > { %4180 = vpow2.f32 %v2129_v62  ;;  %v2112_v9 = vsub.f32 %v5200_v10, %v2100_v59  ;;  %1881 = vadd.xlane.f32.xlu1 %v1880_v25  ;;  %v5565_v50 = vpop.xlane.xlu1 %2604  ;;  %v5567_v8 = vpop.eup %4172  ;;  %v1623_v10 = vsel %vm782_vm1, %v5452_v2, 0.0  ;;  %v1883_v59 = vsel %vm782_vm1, %v5552_v44, 0.0 }
 0x451   : > { %3712 = vmatmul.mubr.msk.bf16.vlgmr.msra.gmra.mrb[48].mxu1 %vm782_vm1, %v1896_v7  ;;  %4182 = vpow2.f32 %v2123_v45  ;;  %v1874_v7 = vsel %vm782_vm1, %v5507_v32, 0.0  ;;  %v1877_v32 = vsel %vm782_vm1, %v5471_v33, 0.0  ;;  %v1871_v33 = vsel %vm782_vm1, %v5499_v63, 0.0 }
 0x452   : > { %v5573_v52 = vpop.eup %4174  ;;  %v2125_v39 = vmul.f32 1.442695, %v2112_v9  ;;  %3730 = vmatpush3.bf16.msra.mxu1 %v6070_v22  ;;  %3715 = vmatprep.mubr.msk.bf16.mxu1 %vm782_vm1, %v1897_v61  ;;  %v1889_v63 = vsel %vm782_vm1, %v5534_v27, 0.0  ;;  %v2627_v62 = vsub.f32 %v5253_v12, %v5565_v50 }
 0x453   : > { %v5579_v53 = vpop.eup %4176  ;;  %3731 = vmatprep.subr.bf16.mxu1 %v6074_v34  ;;  %v2348_v36 = vpop.xlane.xlu0 %2347  ;;  %1624 = vadd.xlane.f32.xlu0 %v1623_v10  ;;  %v2155_v21 = vpack.c.bf16 %v5573_v52, %v5562_v54  ;;  %v2134_v51 = vsel %vm782_vm1, %v5573_v52, 0.0  ;;  %v2137_v10 = vsel %vm782_vm1, %v5504_v15, 0.0 }
 0x454   : > { %v2416_v41 = vpack.c.bf16 %v5579_v53, %v5567_v8  ;;  %4184 = vpow2.f32 %v2125_v39  ;;  %v2368_v2 = vsub.f32 %v5220_v28, %v2348_v36  ;;  %1875 = vadd.xlane.f32.xlu1 %v1874_v7  ;;  %v2614_v6 = vpop.xlane.xlu1 %2613  ;;  %v1892_v28 = vsel %vm782_vm1, %v5540_v17, 0.0 }
 0x455   : > { %v2630_v22 = vsub.f32 %v5256_v29, %v2614_v6  ;;  %4186 = vpow2.f32 %v2375_v55 }
 0x456   : > { %v2377_v42 = vmul.f32 1.442695, %v2368_v2  ;;  %3732 = vmatpush3.bf16.msra.mxu1 %v6074_v34  ;;  %4188 = vpow2.f32 %v2639_v14  ;;  %v5597_v29 = vpop.eup %4178 }
 0x457   : > { %v2641_v56 = vmul.f32 1.442695, %v2630_v22  ;;  %3751 = vmatprep.subr.bf16.mxu1 %v6075_v37  ;;  %v2363_v57 = vpop.xlane.xlu0 %2362  ;;  %1878 = vadd.xlane.f32.xlu0 %v1877_v32 }
 0x458   : > { %4190 = vpow2.f32 %v2377_v42  ;;  %v2373_v11 = vsub.f32 %v5231_v60, %v2363_v57  ;;  %1893 = vadd.xlane.f32.xlu1 %v1892_v28  ;;  %v1886_v60 = vsel %vm782_vm1, %v4169_v20, 0.0  ;;  %v2617_v25 = vpop.xlane.xlu1 %2616 }
 0x459   : > { %4192 = vpow2.f32 %v2641_v56  ;;  %3716 = vmatmul.mubr.msk.bf16.gmra.mrb[52].mxu1 %vm782_vm1, %v1898_v46  ;;  %v2631_v15 = vsub.f32 %v5286_v26, %v2617_v25  ;;  %v2149_v56 = vsel %vm782_vm1, %v5597_v29, 0.0  ;;  %v2400_v26 = vsel %vm782_vm1, %v5579_v53, 0.0 }
 0x45a   : > { %v4181_v19 = vpop.eup %4180  ;;  %3733 = vmatprep.mubr.msk.bf16.mxu1 %vm782_vm1, %v2155_v21  ;;  %v2387_v0 = vmul.f32 1.442695, %v2373_v11  ;;  %v2397_v53 = vsel %vm782_vm1, %v5567_v8, 0.0 }
 0x45b   : > { %v2366_v17 = vpop.xlane.xlu0 %2365  ;;  %1872 = vadd.xlane.f32.xlu0 %v1871_v33  ;;  %v2158_v16 = vpack.c.bf16 %v4181_v19, %v5597_v29  ;;  %v5608_v46 = vpop.eup %4182  ;;  %v2152_v14 = vsel %vm782_vm1, %v4181_v19, 0.0 }
 0x45c   : > { %v2374_v35 = vsub.f32 %v5236_v3, %v2366_v17  ;;  %1887 = vadd.xlane.f32.xlu1 %v1886_v60  ;;  %4194 = vpow2.f32 %v2387_v0  ;;  %v2680_v55 = vpop.permute.xlu1 %2679  ;;  %v2143_v19 = vsel %vm782_vm1, %v5608_v46, 0.0 }
 0x45e   : > { %v4185_v43 = vpop.eup %4184  ;;  %v2389_v1 = vmul.f32 1.442695, %v2374_v35 }
 0x45f   : > { %v2360_v20 = vpop.xlane.xlu0 %2359  ;;  %1890 = vadd.xlane.f32.xlu0 %v1889_v63  ;;  %v2157_v3 = vpack.c.bf16 %v4185_v43, %v5608_v46  ;;  %v5617_v5 = vpop.eup %4186  ;;  %v2146_v2 = vsel %vm782_vm1, %v4185_v43, 0.0 }
 0x460   : > { %4196 = vpow2.f32 %v2389_v1  ;;  %v2372_v45 = vsub.f32 %v5240_v18, %v2360_v20  ;;  %2141 = vadd.xlane.f32.xlu1 %v2140_v47  ;;  %v5620_v27 = vpop.eup %4188  ;;  %v2635_v18 = vmul.f32 1.442695, %v2627_v62  ;;  %v2391_v17 = vsel %vm782_vm1, %v5617_v5, 0.0 }
 0x461   : > { %3734 = vmatmul.mubr.msk.bf16.vlgmr.msra.gmra.mrb[56].mxu1 %vm782_vm1, %v2156_v58  ;;  %4198 = vpow2.f32 %v2383_v40  ;;  %v2657_v40 = vsel %vm782_vm1, %v5620_v27, 0.0  ;;  %v846_v62 = vsel %vm782_vm1, %v5310_v38, 0.0 }
 0x462   : > { %v5626_v12 = vpop.eup %4190  ;;  %v2385_v24 = vmul.f32 1.442695, %v2372_v45  ;;  %3752 = vmatpush3.bf16.msra.mxu1 %v6075_v37  ;;  %3737 = vmatprep.mubr.msk.bf16.mxu1 %vm782_vm1, %v2157_v3  ;;  %v2643_v37 = vmul.f32 1.442695, %v2631_v15  ;;  %v6077_v3 = vld [vmem:[#allocation35_spill] sm:$0xff] }
 0x463   : > { %v5632_v61 = vpop.eup %4192  ;;  %3753 = vmatprep.subr.bf16.mxu1 %v5447_v23  ;;  %v2608_v9 = vpop.xlane.xlu0 %2607  ;;  %1884 = vadd.xlane.f32.xlu0 %v1883_v59  ;;  %v2415_v58 = vpack.c.bf16 %v5626_v12, %v5617_v5  ;;  %v852_v5 = vsel %vm782_vm1, %v6077_v3, 0.0 }
 0x464   : > { %v2676_v50 = vpack.c.bf16 %v5632_v61, %v5620_v27  ;;  %4200 = vpow2.f32 %v2385_v24  ;;  %v2628_v44 = vsub.f32 %v5262_v49, %v2608_v9  ;;  %2135 = vadd.xlane.f32.xlu1 %v2134_v51  ;;  %v2660_v43 = vsel %vm782_vm1, %v5632_v61, 0.0 }
 0x465   : > { %4202 = vpow2.f32 %v2635_v18 }
 0x466   : > { %v2637_v39 = vmul.f32 1.442695, %v2628_v44  ;;  %3754 = vmatpush3.bf16.msra.mxu1 %v5447_v23  ;;  %v4195_v36 = vpop.eup %4194  ;;  %v2131_v23 = vsel %vm782_vm1, %v5562_v54, 0.0 }
 0x467   : > { %3773 = vmatprep.subr.bf16.mxu1 %v2680_v55  ;;  %v2623_v52 = vpop.xlane.xlu0 %2622  ;;  %2138 = vadd.xlane.f32.xlu0 %v2137_v10  ;;  %v2409_v46 = vsel %vm782_vm1, %v4195_v36, 0.0 }
 0x468   : > { %4204 = vpow2.f32 %v2637_v39  ;;  %v2633_v34 = vsub.f32 %v5282_v31, %v2623_v52  ;;  %2153 = vadd.xlane.f32.xlu1 %v2152_v14  ;;  %v6079_v14 = vld [vmem:[#allocation36_spill] sm:$0xff] }
 0x469   : > { %3738 = vmatmul.mubr.msk.bf16.gmra.mrb[60].mxu1 %vm782_vm1, %v2158_v16 }
 0x46a   : > { %v4197_v49 = vpop.eup %4196  ;;  %3755 = vmatprep.mubr.msk.bf16.mxu1 %vm782_vm1, %v2415_v58  ;;  %v2647_v7 = vmul.f32 1.442695, %v2633_v34  ;;  %v6078_v58 = vld [vmem:[#allocation37_spill] sm:$0xff]  ;;  %v849_v34 = vsel %vm782_vm1, %v6079_v14, 0.0 }
 0x46b   : > { %v2626_v21 = vpop.xlane.xlu0 %2625  ;;  %2132 = vadd.xlane.f32.xlu0 %v2131_v23  ;;  %v2418_v6 = vpack.c.bf16 %v4197_v49, %v4195_v36  ;;  %v4199_v22 = vpop.eup %4198 }
 0x46c   : > { %v2634_v31 = vsub.f32 %v5289_v4, %v2626_v21  ;;  %2147 = vadd.xlane.f32.xlu1 %v2146_v2  ;;  %4206 = vpow2.f32 %v2647_v7  ;;  %v2403_v63 = vsel %vm782_vm1, %v4199_v22, 0.0 }
 0x46e   : > { %v4201_v42 = vpop.eup %4200  ;;  %v2649_v32 = vmul.f32 1.442695, %v2634_v31 }
 0x46f   : > { %v2620_v54 = vpop.xlane.xlu0 %2619  ;;  %2150 = vadd.xlane.f32.xlu0 %v2149_v56  ;;  %v2417_v57 = vpack.c.bf16 %v4201_v42, %v4199_v22  ;;  %v4203_v4 = vpop.eup %4202  ;;  %v2406_v60 = vsel %vm782_vm1, %v4201_v42, 0.0 }
 0x470   : > { %4208 = vpow2.f32 %v2649_v32  ;;  %v2632_v28 = vsub.f32 %v5296_v48, %v2620_v54  ;;  %2401 = vadd.xlane.f32.xlu1 %v2400_v26  ;;  %v2394_v48 = vsel %vm782_vm1, %v5626_v12, 0.0  ;;  %v2651_v20 = vsel %vm782_vm1, %v4203_v4, 0.0 }
 0x471   : > { %3756 = vmatmul.mubr.msk.bf16.vlgmr.msra.gmra.mrb[64].mxu1 %vm782_vm1, %v2416_v41  ;;  %4210 = vpow2.f32 %v2643_v37  ;;  %v2412_v41 = vsel %vm782_vm1, %v4197_v49, 0.0 }
 0x472   : > { %v4205_v11 = vpop.eup %4204  ;;  %v2645_v29 = vmul.f32 1.442695, %v2632_v28  ;;  %3774 = vmatpush3.bf16.msra.mxu1 %v2680_v55  ;;  %3759 = vmatprep.mubr.msk.bf16.mxu1 %vm782_vm1, %v2417_v57 }
 0x473   : > { %v2682_v33 = vpop.permute.xlu0 %2681  ;;  %2144 = vadd.xlane.f32.xlu0 %v2143_v19  ;;  %v2675_v30 = vpack.c.bf16 %v4205_v11, %v4203_v4  ;;  %v2654_v47 = vsel %vm782_vm1, %v4205_v11, 0.0 }
 0x474   : > { %4212 = vpow2.f32 %v2645_v29  ;;  %2395 = vadd.xlane.f32.xlu1 %v2394_v48  ;;  %3775 = vmatprep.subr.bf16.mxu1 %v2682_v33 }
 0x476   : > { %3776 = vmatpush3.bf16.msra.mxu1 %v2682_v33  ;;  %v4207_v13 = vpop.eup %4206 }
 0x477   : > { %2398 = vadd.xlane.f32.xlu0 %v2397_v53  ;;  %v2669_v27 = vsel %vm782_vm1, %v4207_v13, 0.0 }
 0x478   : > { %2413 = vadd.xlane.f32.xlu1 %v2412_v41 }
 0x479   : > { %3760 = vmatmul.mubr.msk.bf16.gmra.mrb[68].mxu1 %vm782_vm1, %v2418_v6 }
 0x47a   : > { %v4209_v0 = vpop.eup %4208  ;;  %3777 = vmatprep.mubr.msk.bf16.mxu1 %vm782_vm1, %v2675_v30 }
 0x47b   : > { %2392 = vadd.xlane.f32.xlu0 %v2391_v17  ;;  %v2678_v16 = vpack.c.bf16 %v4209_v0, %v4207_v13  ;;  %v4211_v35 = vpop.eup %4210  ;;  %v2672_v38 = vsel %vm782_vm1, %v4209_v0, 0.0 }
 0x47c   : > { %2407 = vadd.xlane.f32.xlu1 %v2406_v60  ;;  %v2663_v18 = vsel %vm782_vm1, %v4211_v35, 0.0 }
 0x47e   : > { %v4213_v8 = vpop.eup %4212 }
 0x47f   : > { %2410 = vadd.xlane.f32.xlu0 %v2409_v46  ;;  %v2677_v1 = vpack.c.bf16 %v4213_v8, %v4211_v35  ;;  %v2666_v9 = vsel %vm782_vm1, %v4213_v8, 0.0 }
 0x480   : > { %2661 = vadd.xlane.f32.xlu1 %v2660_v43 }
 0x481   : > { %3778 = vmatmul.mubr.msk.bf16.vlgmr.msra.gmra.mrb[72].mxu1 %vm782_vm1, %v2676_v50  ;;  %v843_v50 = vsel %vm782_vm1, %v6078_v58, 0.0 }
 0x482   : > { %3781 = vmatprep.mubr.msk.bf16.mxu1 %vm782_vm1, %v2677_v1 }
 0x483   : > { %2404 = vadd.xlane.f32.xlu0 %v2403_v63 }
 0x484   : > { %2655 = vadd.xlane.f32.xlu1 %v2654_v47 }
 0x487   : > { %2658 = vadd.xlane.f32.xlu0 %v2657_v40 }
 0x488   : > { %847 = vadd.xlane.f32.xlu1 %v846_v62 }
 0x489   : > { %3782 = vmatmul.mubr.msk.bf16.gmra.mrb[76].mxu1 %vm782_vm1, %v2678_v16 }
 0x48b   : > { %2652 = vadd.xlane.f32.xlu0 %v2651_v20 }
 0x48c   : > { %853 = vadd.xlane.f32.xlu1 %v852_v5 }
 0x48d   : > { %v3625_v25 = vpop.f32.mrb[16].mxu1  ;;  %v842_v45 = vpop.xlane.xlu1 %841 }
 0x48e   : > { %4214 = vrcp.f32 %v842_v45  ;;  %v905_v12 = vpop.f32.mrb[17].mxu1 }
 0x48f   : > { %v3626_v24 = vpop.f32.mrb[18].mxu1  ;;  %2670 = vadd.xlane.f32.xlu0 %v2669_v27 }
 0x490   : > { %v908_v59 = vpop.f32.mrb[19].mxu1  ;;  %2673 = vadd.xlane.f32.xlu1 %v2672_v38 }
 0x491   : > { %v836_v61 = vpop.xlane.xlu1 %835 }
 0x492   : > { %4216 = vrcp.f32 %v836_v61 }
 0x493   : > { %2664 = vadd.xlane.f32.xlu0 %v2663_v18 }
 0x494   : > { %2667 = vadd.xlane.f32.xlu1 %v2666_v9 }
 0x495   : > { %v1094_v56 = vpop.xlane.xlu1 %1093 }
 0x496   : > { %v5698_v51 = vpop.f32.mrb[20].mxu1 }
 0x497   : > { %v5702_v44 = vpop.f32.mrb[21].mxu1  ;;  %844 = vadd.xlane.f32.xlu0 %v843_v50 }
 0x498   : > { %v4215_v55 = vpop.eup %4214  ;;  %v5704_v39 = vpop.f32.mrb[22].mxu1 }
 0x499   : > { %v5706_v10 = vmul.f32 %v4215_v55, %v3626_v24  ;;  %v5708_v52 = vpop.f32.mrb[23].mxu1  ;;  %v1112_v28 = vpop.xlane.xlu1 %1111 }
 0x49b   : > { %850 = vadd.xlane.f32.xlu0 %v849_v34 }
 0x49c   : > { %v4217_v36 = vpop.eup %4216 }
 0x49d   : > { %v5712_v49 = vmul.f32 %v4217_v36, %v908_v59  ;;  %v1106_v19 = vpop.xlane.xlu1 %1105 }
 0x49e   : > { %v3647_v23 = vpop.f32.mrb[24].mxu1 }
 0x49f   : > { %v1171_v15 = vpop.f32.mrb[25].mxu1 }
 0x4a0   : > { %v3648_v7 = vpop.f32.mrb[26].mxu1 }
 0x4a1   : > { %v1174_v21 = vpop.f32.mrb[27].mxu1  ;;  %v1362_v17 = vpop.xlane.xlu1 %1361 }
 0x4a4   : > { %v839_v2 = vpop.xlane.xlu0 %838 }
 0x4a5   : > { %4218 = vrcp.f32 %v839_v2  ;;  %v1374_v47 = vpop.xlane.xlu1 %1373 }
 0x4a6   : > { %v3651_v6 = vpop.f32.mrb[28].mxu1 }
 0x4a7   : > { %v1187_v31 = vpop.f32.mrb[29].mxu1 }
 0x4a8   : > { %v833_v22 = vpop.xlane.xlu0 %832  ;;  %v3652_v42 = vpop.f32.mrb[30].mxu1 }
 0x4a9   : > { %4220 = vrcp.f32 %v833_v22  ;;  %v1190_v32 = vpop.f32.mrb[31].mxu1  ;;  %v1368_v27 = vpop.xlane.xlu1 %1367 }
 0x4aa   : > { %4222 = vrcp.f32 %v1094_v56 }
 0x4ac   : > { %v1097_v37 = vpop.xlane.xlu0 %1096 }
 0x4af   : > { %v4219_v54 = vpop.eup %4218 }
 0x4b0   : > { %v1091_v26 = vpop.xlane.xlu0 %1090  ;;  %v5714_v57 = vmul.f32 %v4219_v54, %v3625_v25 }
 0x4b1   : > { %4224 = vrcp.f32 %v1091_v26 }
 0x4b2   : > { %4226 = vrcp.f32 %v1097_v37 }
 0x4b3   : > { %v4221_v4 = vpop.eup %4220 }
 0x4b4   : > { %v1100_v11 = vpop.xlane.xlu0 %1099  ;;  %v5716_v29 = vmul.f32 %v4221_v4, %v905_v12  ;;  %v4223_v48 = vpop.eup %4222 }
 0x4b5   : > { %4228 = vrcp.f32 %v1100_v11  ;;  %v1211_v53 = vmul.f32 %v4223_v48, %v1174_v21 }
 0x4b6   : > { %4230 = vrcp.f32 %v1112_v28 }
 0x4b8   : > { %v1109_v33 = vpop.xlane.xlu0 %1108 }
 0x4b9   : > { %4232 = vrcp.f32 %v1109_v33 }
 0x4ba   : > { %4234 = vrcp.f32 %v1106_v19 }
 0x4bb   : > { %v4225_v30 = vpop.eup %4224 }
 0x4bc   : > { %v1103_v41 = vpop.xlane.xlu0 %1102  ;;  %v1210_v13 = vmul.f32 %v4225_v30, %v1171_v15  ;;  %v4227_v0 = vpop.eup %4226 }
 0x4bd   : > { %4236 = vrcp.f32 %v1103_v41  ;;  %v1212_v8 = vmul.f32 %v4227_v0, %v3647_v23 }
 0x4be   : > { %v3911_v60 = vpack.i.bf16 %v1211_v53, %v1210_v13  ;;  %4238 = vrcp.f32 %v1362_v17 }
 0x4bf   : > { %v4229_v16 = vpop.eup %4228 }
 0x4c0   : > { %v1359_v35 = vpop.xlane.xlu0 %1358  ;;  %3912 = vrot.lane.b32.xlu0 %v3911_v60, %s4582_s18  ;;  %v1213_v46 = vmul.f32 %v4229_v16, %v3648_v7  ;;  %v4231_v43 = vpop.eup %4230 }
 0x4c1   : > { %v1217_v40 = vmul.f32 %v4231_v43, %v3652_v42  ;;  %4240 = vrcp.f32 %v1359_v35 }
 0x4c2   : > { %v3906_v1 = vpack.i.bf16 %v1213_v46, %v1212_v8 }
 0x4c3   : > { %v4233_v63 = vpop.eup %4232 }
 0x4c4   : > { %3907 = vrot.lane.b32.xlu1 %v3906_v1, %s4582_s18  ;;  %v1216_v62 = vmul.f32 %v4233_v63, %v3651_v6  ;;  %v4235_v20 = vpop.eup %4234  ;;  %v1353_v3 = vpop.xlane.xlu0 %1352 }
 0x4c5   : > { %v1215_v45 = vmul.f32 %v4235_v20, %v1190_v32  ;;  %4242 = vrcp.f32 %v1353_v3 }
 0x4c6   : > { %v3916_v5 = vpack.i.bf16 %v1217_v40, %v1216_v62 }
 0x4c7   : > { %v4237_v25 = vpop.eup %4236 }
 0x4c8   : > { %3917 = vrot.lane.b32.xlu1 %v3916_v5, %s4582_s18  ;;  %v1214_v12 = vmul.f32 %v4237_v25, %v1187_v31  ;;  %v1356_v38 = vpop.xlane.xlu0 %1355  ;;  %v4239_v55 = vpop.eup %4238 }
 0x4c9   : > { %4244 = vrcp.f32 %v1356_v38 }
 0x4ca   : > { %v3921_v24 = vpack.i.bf16 %v1215_v45, %v1214_v12  ;;  %4246 = vrcp.f32 %v1374_v47 }
 0x4cb   : > { %v4241_v34 = vpop.eup %4240  ;;  %4248 = vrcp.f32 %v1368_v27 }
 0x4cc   : > { %3922 = vrot.lane.b32.xlu0 %v3921_v24, %s4582_s18  ;;  %v1371_v18 = vpop.xlane.xlu0 %1370 }
 0x4cd   : > { %v5722_v59 = vpop.xlane.xlu1 %1621  ;;  %4250 = vrcp.f32 %v1371_v18 }
 0x4cf   : > { %v4243_v23 = vpop.eup %4242 }
 0x4d0   : > { %v1365_v58 = vpop.xlane.xlu0 %1364 }
 0x4d1   : > { %v5724_v61 = vpop.xlane.xlu1 %1615  ;;  %4252 = vrcp.f32 %v1365_v58 }
 0x4d2   : > { %4254 = vrcp.f32 %v5722_v59 }
 0x4d3   : > { %v4245_v7 = vpop.eup %4244  ;;  %4256 = vrcp.f32 %v5724_v61 }
 0x4d4   : > { %v1619_v22 = vpop.xlane.xlu0 %1618  ;;  %v4247_v11 = vpop.eup %4246 }
 0x4d5   : > { %v5726_v9 = vpop.xlane.xlu1 %1633  ;;  %v4249_v48 = vpop.eup %4248  ;;  %4258 = vrcp.f32 %v1619_v22 }
 0x4d7   : > { %v4251_v53 = vpop.eup %4250 }
 0x4d8   : > { %v1613_v26 = vpop.xlane.xlu0 %1612 }
 0x4d9   : > { %v5728_v50 = vpop.xlane.xlu1 %1627  ;;  %4260 = vrcp.f32 %v1613_v26 }
 0x4da   : > { %v3669_v14 = vpop.f32.mrb[32].mxu1  ;;  %4262 = vrcp.f32 %v5726_v9 }
 0x4db   : > { %v1431_v36 = vpop.f32.mrb[33].mxu1  ;;  %v1472_v21 = vmul.f32 %v4241_v34, %v3669_v14  ;;  %v4253_v13 = vpop.eup %4252  ;;  %4264 = vrcp.f32 %v5728_v50 }
 0x4dc   : > { %v3670_v15 = vpop.f32.mrb[34].mxu1  ;;  %v1470_v42 = vmul.f32 %v4243_v23, %v1431_v36  ;;  %v1631_v19 = vpop.xlane.xlu0 %1630 }
 0x4dd   : > { %v1473_v2 = vmul.f32 %v4239_v55, %v3670_v15  ;;  %v1434_v6 = vpop.f32.mrb[35].mxu1  ;;  %v5730_v31 = vpop.xlane.xlu1 %1881  ;;  %4266 = vrcp.f32 %v1631_v19 }
 0x4de   : > { %v1471_v32 = vmul.f32 %v4245_v7, %v1434_v6  ;;  %v4255_v58 = vpop.eup %4254 }
 0x4df   : > { %v3926_v56 = vpack.i.bf16 %v1473_v2, %v1472_v21  ;;  %v4257_v59 = vpop.eup %4256 }
 0x4e0   : > { %v3931_v37 = vpack.i.bf16 %v1471_v32, %v1470_v42  ;;  %v1625_v43 = vpop.xlane.xlu0 %1624  ;;  %v4259_v36 = vpop.eup %4258 }
 0x4e1   : > { %3927 = vrot.lane.b32.xlu1 %v3926_v56, %s4581_s16  ;;  %v5733_v54 = vpop.xlane.xlu1 %1875  ;;  %4268 = vrcp.f32 %v1625_v43 }
 0x4e3   : > { %v4261_v15 = vpop.eup %4260 }
 0x4e4   : > { %v1879_v40 = vpop.xlane.xlu0 %1878  ;;  %v4263_v56 = vpop.eup %4262 }
 0x4e5   : > { %3932 = vrot.lane.b32.xlu1 %v3931_v37, %s4581_s16  ;;  %v5736_v28 = vpop.xlane.xlu1 %1893  ;;  %v4265_v26 = vpop.eup %4264 }
 0x4e7   : > { %v4267_v19 = vpop.eup %4266 }
 0x4e8   : > { %v1873_v20 = vpop.xlane.xlu0 %1872 }
 0x4e9   : > { %v5738_v4 = vpop.xlane.xlu1 %1887 }
 0x4ea   : > { %v3673_v33 = vpop.f32.mrb[36].mxu1 }
 0x4eb   : > { %v1447_v30 = vpop.f32.mrb[37].mxu1  ;;  %v1476_v0 = vmul.f32 %v4251_v53, %v3673_v33  ;;  %v4269_v33 = vpop.eup %4268 }
 0x4ec   : > { %v3674_v41 = vpop.f32.mrb[38].mxu1  ;;  %v1474_v35 = vmul.f32 %v4253_v13, %v1447_v30  ;;  %v1891_v25 = vpop.xlane.xlu0 %1890 }
 0x4ed   : > { %v1477_v17 = vmul.f32 %v4247_v11, %v3674_v41  ;;  %v1450_v60 = vpop.f32.mrb[39].mxu1  ;;  %v5740_v16 = vpop.xlane.xlu1 %2141 }
 0x4ee   : > { %v1475_v8 = vmul.f32 %v4249_v48, %v1450_v60 }
 0x4ef   : > { %v3936_v46 = vpack.i.bf16 %v1477_v17, %v1476_v0 }
 0x4f0   : > { %v3941_v1 = vpack.i.bf16 %v1475_v8, %v1474_v35  ;;  %v5756_v12 = vpop.xlane.xlu0 %1884 }
 0x4f1   : > { %3937 = vrot.lane.b32.xlu1 %v3936_v46, %s4581_s16  ;;  %v5743_v63 = vpop.xlane.xlu1 %2135 }
 0x4f2   : > { %3942 = vrot.lane.b32.xlu0 %v3941_v1, %s4581_s16 }
 0x4f4   : > { %v5764_v38 = vpop.xlane.xlu0 %2138 }
 0x4f5   : > { %v5746_v47 = vpop.xlane.xlu1 %2153 }
 0x4f8   : > { %v5770_v55 = vpop.xlane.xlu0 %2132 }
 0x4f9   : > { %v5748_v62 = vpop.xlane.xlu1 %2147 }
 0x4fc   : > { %v5774_v32 = vpop.xlane.xlu0 %2150 }
 0x4fd   : > { %v5750_v3 = vpop.xlane.xlu1 %2401 }
 0x500   : > { %v2145_v0 = vpop.xlane.xlu0 %2144 }
 0x501   : > { %v5752_v5 = vpop.xlane.xlu1 %2395 }
 0x505   : > { %v5754_v45 = vpop.xlane.xlu1 %2413 }
 0x509   : > { %v5758_v27 = vpop.xlane.xlu1 %2407 }
 0x50d   : > { %v5762_v24 = vpop.xlane.xlu1 %2661 }
 0x511   : > { %v5766_v18 = vpop.xlane.xlu1 %2655 }
 0x514   : > { %v3691_v14 = vpop.f32.mrb[40].mxu1 }
 0x515   : > { %v1691_v61 = vpop.f32.mrb[41].mxu1  ;;  %v848_v34 = vpop.xlane.xlu1 %847  ;;  %v1732_v7 = vmul.f32 %v4259_v36, %v3691_v14 }
 0x516   : > { %4270 = vrcp.f32 %v848_v34  ;;  %v3692_v23 = vpop.f32.mrb[42].mxu1  ;;  %v1730_v6 = vmul.f32 %v4261_v15, %v1691_v61  ;;  %v2399_v14 = vpop.xlane.xlu0 %2398 }
 0x517   : > { %v1733_v21 = vmul.f32 %v4255_v58, %v3692_v23  ;;  %v1694_v2 = vpop.f32.mrb[43].mxu1  ;;  %4272 = vrcp.f32 %v5730_v31 }
 0x518   : > { %v1731_v9 = vmul.f32 %v4257_v59, %v1694_v2 }
 0x519   : > { %v3946_v50 = vpack.i.bf16 %v1733_v21, %v1732_v7  ;;  %v854_v22 = vpop.xlane.xlu1 %853 }
 0x51a   : > { %v3951_v42 = vpack.i.bf16 %v1731_v9, %v1730_v6  ;;  %4274 = vrcp.f32 %v854_v22  ;;  %v2393_v7 = vpop.xlane.xlu0 %2392 }
 0x51b   : > { %4276 = vrcp.f32 %v5733_v54  ;;  %3947 = vrot.lane.b32.xlu1 %v3946_v50, %s4580_s9 }
 0x51c   : > { %4278 = vrcp.f32 %v1879_v40  ;;  %v3695_v37 = vpop.f32.mrb[44].mxu1  ;;  %3952 = vrot.lane.b32.xlu0 %v3951_v42, %s4580_s9 }
 0x51d   : > { %4280 = vrcp.f32 %v1873_v20  ;;  %v1707_v11 = vpop.f32.mrb[45].mxu1  ;;  %v1736_v48 = vmul.f32 %v4267_v19, %v3695_v37  ;;  %v4078_v37 = vld [vmem:[#allocation10] sm:$0xff]  }
 0x51e   : > { %v3696_v31 = vpop.f32.mrb[46].mxu1  ;;  %v1734_v54 = vmul.f32 %v4269_v33, %v1707_v11  ;;  %4282 = vrcp.f32 %v5736_v28  ;;  %3785 = vmatprep.subr.bf16.mxu0 %v4078_v37 }
 0x51f   : > { %v1737_v30 = vmul.f32 %v4263_v56, %v3696_v31  ;;  %v1710_v53 = vpop.f32.mrb[47].mxu1  ;;  %4284 = vrcp.f32 %v5738_v4  ;;  %3786 = vmatpush3.bf16.msra.mxu0 %v4078_v37 }
 0x520   : > { %v4271_v41 = vpop.eup %4270  ;;  %v1735_v13 = vmul.f32 %v4265_v26, %v1710_v53  ;;  %4286 = vrcp.f32 %v1891_v25  ;;  %v2411_v26 = vpop.xlane.xlu0 %2410 }
 0x521   : > { %v3956_v17 = vpack.i.bf16 %v1737_v30, %v1736_v48  ;;  %v5779_v60 = vmul.f32 %v4271_v41, %v5708_v52  ;;  %v4273_v8 = vpop.eup %4272  ;;  %4288 = vrcp.f32 %v5756_v12 }
 0x522   : > { %v3961_v35 = vpack.i.bf16 %v1735_v13, %v1734_v54  ;;  %4290 = vrcp.f32 %v5740_v16  ;;  %v4079_v13 = vld [vmem:[#allocation10 + $0x8] sm:$0xff]  }
 0x523   : > { %3957 = vrot.lane.b32.xlu1 %v3956_v17, %s4580_s9  ;;  %4292 = vrcp.f32 %v5743_v63  ;;  %3787 = vmatprep.subr.bf16.mxu0 %v4079_v13 }
 0x524   : > { %v4275_v46 = vpop.eup %4274  ;;  %v3713_v43 = vpop.f32.mrb[48].mxu1  ;;  %3962 = vrot.lane.b32.xlu0 %v3961_v35, %s4580_s9  ;;  %4294 = vrcp.f32 %v5764_v38  ;;  %3788 = vmatpush3.bf16.msra.mxu0 %v4079_v13 }
 0x525   : > { %v4277_v1 = vpop.eup %4276  ;;  %v1951_v40 = vpop.f32.mrb[49].mxu1  ;;  %v5787_v52 = vmul.f32 %v4275_v46, %v5704_v39  ;;  %4296 = vrcp.f32 %v5770_v55 }
 0x526   : > { %v4279_v20 = vpop.eup %4278  ;;  %v3714_v28 = vpop.f32.mrb[50].mxu1  ;;  %4298 = vrcp.f32 %v5746_v47 }
 0x527   : > { %v4281_v58 = vpop.eup %4280  ;;  %v1992_v59 = vmul.f32 %v4279_v20, %v3713_v43  ;;  %v1993_v4 = vmul.f32 %v4273_v8, %v3714_v28  ;;  %v1954_v61 = vpop.f32.mrb[51].mxu1  ;;  %4300 = vrcp.f32 %v5748_v62  ;;  %v4080_v8 = vld [vmem:[#allocation10 + $0x10] sm:$0xff]  }
 0x528   : > { %v1990_v34 = vmul.f32 %v4281_v58, %v1951_v40  ;;  %v1991_v36 = vmul.f32 %v4277_v1, %v1954_v61  ;;  %v4283_v12 = vpop.eup %4282  ;;  %4302 = vrcp.f32 %v5774_v32  ;;  %v2405_v17 = vpop.xlane.xlu0 %2404  ;;  %3789 = vmatprep.subr.bf16.mxu0 %v4080_v8 }
 0x529   : > { %v3966_v25 = vpack.i.bf16 %v1993_v4, %v1992_v59  ;;  %v4285_v15 = vpop.eup %4284  ;;  %4304 = vrcp.f32 %v2145_v0  ;;  %3790 = vmatpush3.bf16.msra.mxu0 %v4080_v8 }
 0x52a   : > { %v3971_v23 = vpack.i.bf16 %v1991_v36, %v1990_v34  ;;  %v4287_v2 = vpop.eup %4286  ;;  %4306 = vrcp.f32 %v5750_v3  ;;  %v4081_v34 = vld [vmem:[#allocation10 + $0x18] sm:$0xff]  }
 0x52b   : > { %3967 = vrot.lane.b32.xlu1 %v3966_v25, %s4579_s10  ;;  %v4289_v9 = vpop.eup %4288  ;;  %4308 = vrcp.f32 %v5752_v5  ;;  %3791 = vmatprep.subr.bf16.mxu0 %v4081_v34 }
 0x52c   : > { %v3717_v39 = vpop.f32.mrb[52].mxu1  ;;  %3972 = vrot.lane.b32.xlu0 %v3971_v23, %s4579_s10  ;;  %v4291_v55 = vpop.eup %4290  ;;  %4310 = vrcp.f32 %v2399_v14  ;;  %v4082_v14 = vld [vmem:[#allocation10 + $0x20] sm:$0xff]  }
 0x52d   : > { %v1967_v21 = vpop.f32.mrb[53].mxu1  ;;  %v1996_v16 = vmul.f32 %v4287_v2, %v3717_v39  ;;  %v4293_v19 = vpop.eup %4292  ;;  %4312 = vrcp.f32 %v2393_v7  ;;  %3792 = vmatpush3.bf16.msra.mxu0 %v4081_v34  ;;  %v4083_v39 = vld [vmem:[#allocation10 + $0x28] sm:$0xff]  }
 0x52e   : > { %v3718_v6 = vpop.f32.mrb[54].mxu1  ;;  %v1994_v63 = vmul.f32 %v4289_v9, %v1967_v21  ;;  %v4295_v33 = vpop.eup %4294  ;;  %4314 = vrcp.f32 %v5754_v45  ;;  %3793 = vmatprep.subr.bf16.mxu0 %v4082_v14 }
 0x52f   : > { %v1997_v50 = vmul.f32 %v4283_v12, %v3718_v6  ;;  %v1970_v22 = vpop.f32.mrb[55].mxu1  ;;  %v4297_v47 = vpop.eup %4296  ;;  %4316 = vrcp.f32 %v5758_v27 }
 0x530   : > { %v1995_v42 = vmul.f32 %v4285_v15, %v1970_v22  ;;  %v4299_v0 = vpop.eup %4298  ;;  %v2659_v3 = vpop.xlane.xlu0 %2658  ;;  %4318 = vrcp.f32 %v2411_v26 }
 0x531   : > { %v3976_v56 = vpack.i.bf16 %v1997_v50, %v1996_v16  ;;  %v4301_v43 = vpop.eup %4300  ;;  %4320 = vrcp.f32 %v2405_v17  ;;  %3794 = vmatpush3.bf16.msra.mxu0 %v4082_v14  ;;  %v2674_v26 = vpop.xlane.xlu1 %2673 }
 0x532   : > { %v3981_v38 = vpack.i.bf16 %v1995_v42, %v1994_v63  ;;  %v4303_v40 = vpop.eup %4302  ;;  %3795 = vmatprep.subr.bf16.mxu0 %v4083_v39  ;;  %v4084_v63 = vld [vmem:[#allocation10 + $0x30] sm:$0xff]   ;;  %4322 = vrcp.f32 %v5762_v24 }
 0x533   : > { %3977 = vrot.lane.b32.xlu1 %v3976_v56, %s4579_s10  ;;  %v4305_v28 = vpop.eup %4304  ;;  %4324 = vrcp.f32 %v5766_v18 }
 0x534   : > { %v3735_v11 = vpop.f32.mrb[56].mxu1  ;;  %3982 = vrot.lane.b32.xlu0 %v3981_v38, %s4579_s10  ;;  %v4307_v23 = vpop.eup %4306  ;;  %4326 = vrcp.f32 %v2659_v3 }
 0x535   : > { %v2211_v31 = vpop.f32.mrb[57].mxu1  ;;  %v2252_v30 = vmul.f32 %v4295_v33, %v3735_v11  ;;  %v4309_v15 = vpop.eup %4308  ;;  %3796 = vmatpush3.bf16.msra.mxu0 %v4083_v39 }
 0x536   : > { %v3736_v48 = vpop.f32.mrb[58].mxu1  ;;  %v2250_v41 = vmul.f32 %v4297_v47, %v2211_v31  ;;  %v2653_v7 = vpop.xlane.xlu0 %2652  ;;  %3797 = vmatprep.subr.bf16.mxu0 %v4084_v63 }
 0x537   : > { %v2253_v53 = vmul.f32 %v4291_v55, %v3736_v48  ;;  %v2214_v62 = vpop.f32.mrb[59].mxu1  ;;  %v4311_v2 = vpop.eup %4310  ;;  %4328 = vrcp.f32 %v2653_v7 }
 0x538   : > { %v2251_v54 = vmul.f32 %v4293_v19, %v2214_v62  ;;  %v4313_v6 = vpop.eup %4312  ;;  %v4085_v62 = vld [vmem:[#allocation10 + $0x38] sm:$0xff]   ;;  %v2668_v13 = vpop.xlane.xlu1 %2667 }
 0x539   : > { %v3986_v35 = vpack.i.bf16 %v2253_v53, %v2252_v30  ;;  %v4315_v38 = vpop.eup %4314  ;;  %3798 = vmatpush3.bf16.msra.mxu0 %v4084_v63 }
 0x53a   : > { %v3991_v32 = vpack.i.bf16 %v2251_v54, %v2250_v41  ;;  %v2671_v37 = vpop.xlane.xlu0 %2670  ;;  %v4317_v11 = vpop.eup %4316  ;;  %3799 = vmatprep.subr.bf16.mxu0 %v4085_v62 }
 0x53b   : > { %3987 = vrot.lane.b32.xlu1 %v3986_v35, %s4578_s7  ;;  %v4319_v31 = vpop.eup %4318  ;;  %4330 = vrcp.f32 %v2671_v37 }
 0x53c   : > { %v3739_v46 = vpop.f32.mrb[60].mxu1  ;;  %3992 = vrot.lane.b32.xlu0 %v3991_v32, %s4578_s7  ;;  %v4321_v24 = vpop.eup %4320  ;;  %4332 = vrcp.f32 %v2674_v26 }
 0x53d   : > { %v2227_v1 = vpop.f32.mrb[61].mxu1  ;;  %v2256_v58 = vmul.f32 %v4303_v40, %v3739_v46  ;;  %3800 = vmatpush3.bf16.msra.mxu0 %v4085_v62  ;;  %v4323_v35 = vpop.eup %4322 }
 0x53e   : > { %v3740_v20 = vpop.f32.mrb[62].mxu1  ;;  %v2254_v5 = vmul.f32 %v4305_v28, %v2227_v1  ;;  %v2665_v41 = vpop.xlane.xlu0 %2664 }
 0x53f   : > { %v2257_v59 = vmul.f32 %v4299_v0, %v3740_v20  ;;  %v2230_v4 = vpop.f32.mrb[63].mxu1  ;;  %4334 = vrcp.f32 %v2665_v41  ;;  %v4325_v32 = vpop.eup %4324 }
 0x540   : > { %v2255_v61 = vmul.f32 %v4301_v43, %v2230_v4  ;;  %4336 = vrcp.f32 %v2668_v13  ;;  %v4327_v46 = vpop.eup %4326 }
 0x541   : > { %v3996_v36 = vpack.i.bf16 %v2257_v59, %v2256_v58  ;;  %v4329_v1 = vpop.eup %4328 }
 0x542   : > { %v4001_v25 = vpack.i.bf16 %v2255_v61, %v2254_v5 }
 0x543   : > { %3997 = vrot.lane.b32.xlu1 %v3996_v36, %s4578_s7 }
 0x544   : > { %v3757_v12 = vpop.f32.mrb[64].mxu1  ;;  %4002 = vrot.lane.b32.xlu0 %v4001_v25, %s4578_s7 }
 0x545   : > { %v2471_v21 = vpop.f32.mrb[65].mxu1  ;;  %v2512_v9 = vmul.f32 %v4311_v2, %v3757_v12  ;;  %v4331_v5 = vpop.eup %4330 }
 0x546   : > { %v3758_v45 = vpop.f32.mrb[66].mxu1  ;;  %v2510_v50 = vmul.f32 %v4313_v6, %v2471_v21  ;;  %v4333_v34 = vpop.eup %4332 }
 0x547   : > { %v2513_v16 = vmul.f32 %v4307_v23, %v3758_v45  ;;  %v2474_v27 = vpop.f32.mrb[67].mxu1  ;;  %v3908_v6 = vpop.permute.xlu1 %3907 }
 0x548   : > { %v2511_v22 = vmul.f32 %v4309_v15, %v2474_v27 }
 0x549   : > { %v4006_v42 = vpack.i.bf16 %v2513_v16, %v2512_v9  ;;  %v4335_v14 = vpop.eup %4334  ;;  %v845_v9 = vpop.xlane.xlu0 %844 }
 0x54a   : > { %v4011_v56 = vpack.i.bf16 %v2511_v22, %v2510_v50  ;;  %v4337_v23 = vpop.eup %4336  ;;  %4338 = vrcp.f32 %v845_v9 }
 0x54b   : > { %4007 = vrot.lane.b32.xlu1 %v4006_v42, %s4577_s13  ;;  %v3918_v16 = vpop.permute.xlu1 %3917 }
 0x54c   : > { %v3761_v55 = vpop.f32.mrb[68].mxu1  ;;  %4012 = vrot.lane.b32.xlu0 %v4011_v56, %s4577_s13  ;;  %v3920_v62 = vunpack.i.h.bf16 %v3918_v16 }
 0x54d   : > { %v2487_v19 = vpop.f32.mrb[69].mxu1  ;;  %v2516_v48 = vmul.f32 %v4319_v31, %v3761_v55  ;;  %v851_v27 = vpop.xlane.xlu0 %850 }
 0x54e   : > { %v3762_v33 = vpop.f32.mrb[70].mxu1  ;;  %v2514_v30 = vmul.f32 %v4321_v24, %v2487_v19  ;;  %4340 = vrcp.f32 %v851_v27 }
 0x54f   : > { %v2517_v47 = vmul.f32 %v4315_v38, %v3762_v33  ;;  %v2490_v18 = vpop.f32.mrb[71].mxu1 }
 0x550   : > { %v2515_v53 = vmul.f32 %v4317_v11, %v2490_v18  ;;  %v3910_v18 = vunpack.i.h.bf16 %v3908_v6 }
 0x551   : > { %v4031_v54 = vpack.i.bf16 %v2517_v47, %v2516_v48  ;;  %v3913_v22 = vpop.permute.xlu0 %3912 }
 0x552   : > { %v4026_v17 = vpack.i.bf16 %v2515_v53, %v2514_v30  ;;  %v3915_v48 = vunpack.i.h.bf16 %v3913_v22  ;;  %v3914_v47 = vunpack.i.l.bf16 %v3913_v22  ;;  %v3909_v30 = vunpack.i.l.bf16 %v3908_v6 }
 0x553   : > { %v3928_v50 = vpop.permute.xlu1 %3927 }
 0x554   : > { %v3779_v8 = vpop.f32.mrb[72].mxu1  ;;  %v4339_v33 = vpop.eup %4338 }
 0x555   : > { %v2731_v0 = vpop.f32.mrb[73].mxu1  ;;  %v2772_v40 = vmul.f32 %v4327_v46, %v3779_v8  ;;  %v3923_v42 = vpop.permute.xlu0 %3922  ;;  %v948_v41 = vmul.f32 %v4339_v33, %v5702_v44  ;;  %v3005_v46 = vsel %vm704_vm0, %v5706_v10, %v3910_v18  ;;  %v3004_v44 = vsel %vm704_vm0, %v5714_v57, %v3909_v30 }
 0x556   : > { %v3780_v43 = vpop.f32.mrb[74].mxu1  ;;  %v2770_v3 = vmul.f32 %v4329_v1, %v2731_v0  ;;  %v3924_v8 = vunpack.i.l.bf16 %v3923_v42  ;;  %v3002_v0 = vsel %vm704_vm0, %v5716_v29, %v3914_v47  ;;  %v3930_v1 = vunpack.i.h.bf16 %v3928_v50 }
 0x557   : > { %v2773_v20 = vmul.f32 %v4323_v35, %v3780_v43  ;;  %v2734_v28 = vpop.f32.mrb[75].mxu1  ;;  %v3933_v63 = vpop.permute.xlu1 %3932  ;;  %v3925_v35 = vunpack.i.h.bf16 %v3923_v42  ;;  %v3929_v43 = vunpack.i.l.bf16 %v3928_v50 }
 0x558   : > { %v2771_v58 = vmul.f32 %v4325_v32, %v2734_v28  ;;  %v4341_v24 = vpop.eup %4340  ;;  %v3003_v32 = vsel %vm704_vm0, %v5712_v49, %v3915_v48  ;;  %v3009_v28 = vsel %vm704_vm0, %v5787_v52, %v3920_v62  ;;  %v3006_v10 = vsel %vm704_vm0, %v948_v41, %v3924_v8 }
 0x559   : > { %v4016_v59 = vpack.i.bf16 %v2773_v20, %v2772_v40  ;;  %v950_v13 = vmul.f32 %v4341_v24, %v5698_v51  ;;  %v3935_v40 = vunpack.i.h.bf16 %v3933_v63  ;;  %v3934_v51 = vunpack.i.l.bf16 %v3933_v63 }
 0x55a   : > { %v4021_v4 = vpack.i.bf16 %v2771_v58, %v2770_v3  ;;  %v3012_v57 = vsel %vm782_vm1, %v3004_v44, %v3929_v43 }
 0x55b   : > { %4017 = vrot.lane.b32.xlu1 %v4016_v59, %s4576_s27 }
 0x55c   : > { %v3783_v61 = vpop.f32.mrb[76].mxu1  ;;  %4022 = vrot.lane.b32.xlu0 %v4021_v4, %s4576_s27  ;;  %v3007_v4 = vsel %vm704_vm0, %v5779_v60, %v3925_v35 }
 0x55d   : > { %v2747_v36 = vpop.f32.mrb[77].mxu1  ;;  %v2776_v12 = vmul.f32 %v4331_v5, %v3783_v61 }
 0x55e   : > { %v3784_v25 = vpop.f32.mrb[78].mxu1  ;;  %v2774_v7 = vmul.f32 %v4335_v14, %v2747_v36  ;;  %v3013_v36 = vsel %vm782_vm1, %v3005_v46, %v3930_v1  ;;  %v3011_v14 = vsel %vm782_vm1, %v3003_v32, %v3935_v40 }
 0x55f   : > { %v2777_v39 = vmul.f32 %v4333_v34, %v3784_v25  ;;  %v2750_v15 = vpop.f32.mrb[79].mxu1  ;;  %4032 = vrot.lane.b32.xlu1 %v4031_v54, %s4577_s13  ;;  %v3010_v25 = vsel %vm782_vm1, %v3002_v0, %v3934_v51 }
 0x560   : > { %v2775_v21 = vmul.f32 %v4337_v23, %v2750_v15  ;;  %4027 = vrot.lane.b32.xlu0 %v4026_v17, %s4577_s13  ;;  %v3919_v17 = vunpack.i.l.bf16 %v3918_v16 }
 0x561   : > { %v4041_v2 = vpack.i.bf16 %v2777_v39, %v2776_v12 }
 0x562   : > { %v4036_v45 = vpack.i.bf16 %v2775_v21, %v2774_v7  ;;  %v3008_v29 = vsel %vm704_vm0, %v950_v13, %v3919_v17 }
 0x563   : > { %4042 = vrot.lane.b32.xlu1 %v4041_v2, %s4576_s27  ;;  %v3938_v56 = vpop.permute.xlu1 %3937 }
 0x564   : > { %4037 = vrot.lane.b32.xlu0 %v4036_v45, %s4576_s27  ;;  %v3943_v37 = vpop.permute.xlu0 %3942  ;;  %v3940_v3 = vunpack.i.h.bf16 %v3938_v56  ;;  %v3939_v49 = vunpack.i.l.bf16 %v3938_v56  ;;  %s4492_s27 = scalar_lea.vmem %s4491_s30, 2048 }
 0x565   : > { %v3944_v58 = vunpack.i.l.bf16 %v3943_v37  ;;  %v3945_v5 = vunpack.i.h.bf16 %v3943_v37  ;;  %p4494_p6 = scmp.lt.s32.totalorder %s4492_s27, %s4486_s29 }
 0x566   : > { %v3016_v60 = vsel %vm782_vm1, %v3008_v29, %v3939_v49  ;;  %v3017_v39 = vsel %vm782_vm1, %v3009_v28, %v3940_v3 }
 0x567   : > { %v5863_v15 = vsel %vm782_vm1, %v3006_v10, %v3944_v58  ;;  %v3015_v2 = vsel %vm782_vm1, %v3007_v4, %v3945_v5  ;;  %p4495_p10 = por %p4494_p6, %p4493_p8 }
 0x569   : > { %p4496_p3 = pnand %p4495_p10, %p4489_p0 }
 0x58d   : > { %v5818_v38 = vpop.permute.xlu1 %3947 }
 0x58e   : > { %v5820_v26 = vpop.permute.xlu0 %3952  ;;  %v3950_v61 = vunpack.i.h.bf16 %v5818_v38  ;;  %v3949_v34 = vunpack.i.l.bf16 %v5818_v38 }
 0x58f   : > { %v3954_v52 = vunpack.i.l.bf16 %v5820_v26  ;;  %v3955_v23 = vunpack.i.h.bf16 %v5820_v26 }
 0x590   : > { %v3021_v16 = vsel %vm3018_vm2, %v3012_v57, %v3949_v34  ;;  %v3022_v27 = vsel %vm3018_vm2, %v3013_v36, %v3950_v61 }
 0x591   : > { %v3019_v50 = vsel %vm3018_vm2, %v3010_v25, %v3954_v52  ;;  %v3020_v63 = vsel %vm3018_vm2, %v3011_v14, %v3955_v23 }
 0x595   : > { %v5822_v55 = vpop.permute.xlu1 %3957 }
 0x596   : > { %v5824_v11 = vpop.permute.xlu0 %3962  ;;  %v3959_v7 = vunpack.i.l.bf16 %v5822_v55  ;;  %v3960_v42 = vunpack.i.h.bf16 %v5822_v55 }
 0x597   : > { %v3965_v56 = vunpack.i.h.bf16 %v5824_v11  ;;  %v3964_v37 = vunpack.i.l.bf16 %v5824_v11 }
 0x598   : > { %v3025_v26 = vsel %vm3018_vm2, %v3016_v60, %v3959_v7  ;;  %v3026_v52 = vsel %vm3018_vm2, %v3017_v39, %v3960_v42 }
 0x599   : > { %v3023_v60 = vsel %vm3018_vm2, %v5863_v15, %v3964_v37  ;;  %v3024_v7 = vsel %vm3018_vm2, %v3015_v2, %v3965_v56 }
 0x59d   : > { %v5826_v19 = vpop.permute.xlu1 %3967 }
 0x59e   : > { %v5828_v31 = vpop.permute.xlu0 %3972  ;;  %v3970_v45 = vunpack.i.h.bf16 %v5826_v19  ;;  %v3969_v6 = vunpack.i.l.bf16 %v5826_v19 }
 0x59f   : > { %v3974_v9 = vunpack.i.l.bf16 %v5828_v31  ;;  %v3975_v22 = vunpack.i.h.bf16 %v5828_v31 }
 0x5a0   : > { %v3030_v47 = vsel %vm3027_vm3, %v3021_v16, %v3969_v6  ;;  %v3031_v18 = vsel %vm3027_vm3, %v3022_v27, %v3970_v45 }
 0x5a1   : > { %v3028_v31 = vsel %vm3027_vm3, %v3019_v50, %v3974_v9  ;;  %v3029_v55 = vsel %vm3027_vm3, %v3020_v63, %v3975_v22 }
 0x5a5   : > { %v5830_v53 = vpop.permute.xlu1 %3977 }
 0x5a6   : > { %v5833_v54 = vpop.permute.xlu0 %3982  ;;  %v3980_v62 = vunpack.i.h.bf16 %v5830_v53  ;;  %v3979_v13 = vunpack.i.l.bf16 %v5830_v53 }
 0x5a7   : > { %v3985_v17 = vunpack.i.h.bf16 %v5833_v54  ;;  %v3984_v32 = vunpack.i.l.bf16 %v5833_v54 }
 0x5a8   : > { %v3034_v6 = vsel %vm3027_vm3, %v3025_v26, %v3979_v13  ;;  %v3035_v9 = vsel %vm3027_vm3, %v3026_v52, %v3980_v62 }
 0x5a9   : > { %v3032_v39 = vsel %vm3027_vm3, %v3023_v60, %v3984_v32 }
 0x5ad   : > { %v3988_v20 = vpop.permute.xlu1 %3987 }
 0x5ae   : > { %v3993_v59 = vpop.permute.xlu0 %3992  ;;  %v3990_v19 = vunpack.i.h.bf16 %v3988_v20  ;;  %v3989_v33 = vunpack.i.l.bf16 %v3988_v20 }
 0x5af   : > { %v3994_v24 = vunpack.i.l.bf16 %v3993_v59  ;;  %v3995_v30 = vunpack.i.h.bf16 %v3993_v59 }
 0x5b0   : > { %v3039_v0 = vsel %vm3036_vm4, %v3030_v47, %v3989_v33  ;;  %v3040_v46 = vsel %vm3036_vm4, %v3031_v18, %v3990_v19 }
 0x5b1   : > { %v3037_v43 = vsel %vm3036_vm4, %v3028_v31, %v3994_v24  ;;  %v3038_v1 = vsel %vm3036_vm4, %v3029_v55, %v3995_v30 }
 0x5b5   : > { %v5858_v12 = vpop.permute.xlu1 %3997 }
 0x5b6   : > { %v5866_v21 = vpop.permute.xlu0 %4002  ;;  %v4000_v40 = vunpack.i.h.bf16 %v5858_v12  ;;  %v3999_v4 = vunpack.i.l.bf16 %v5858_v12 }
 0x5b7   : > { %v4005_v36 = vunpack.i.h.bf16 %v5866_v21  ;;  %v4004_v14 = vunpack.i.l.bf16 %v5866_v21  ;;  %v3033_v21 = vsel %vm3027_vm3, %v3024_v7, %v3985_v17 }
 0x5b8   : > { %v3043_v50 = vsel %vm3036_vm4, %v3034_v6, %v3999_v4  ;;  %v3044_v22 = vsel %vm3036_vm4, %v3035_v9, %v4000_v40 }
 0x5b9   : > { %v3041_v2 = vsel %vm3036_vm4, %v3032_v39, %v4004_v14  ;;  %v3042_v63 = vsel %vm3036_vm4, %v3033_v21, %v4005_v36 }
 0x5bd   : > { %v4008_v38 = vpop.permute.xlu1 %4007 }
 0x5be   : > { %v4013_v48 = vpop.permute.xlu0 %4012  ;;  %v4010_v41 = vunpack.i.h.bf16 %v4008_v38  ;;  %v4009_v11 = vunpack.i.l.bf16 %v4008_v38 }
 0x5bf   : > { %v4015_v35 = vunpack.i.h.bf16 %v4013_v48  ;;  %v4014_v8 = vunpack.i.l.bf16 %v4013_v48 }
 0x5c0   : > { %v3048_v28 = vsel %vm3045_vm5, %v3039_v0, %v4009_v11  ;;  %v3049_v3 = vsel %vm3045_vm5, %v3040_v46, %v4010_v41  ;;  %v3456_v41 = vld [vmem:[%s5985_s5] ss:$0 sm:$0xff] }
 0x5c1   : > { %v3046_v58 = vsel %vm3045_vm5, %v3037_v43, %v4014_v8  ;;  %v3047_v59 = vsel %vm3045_vm5, %v3038_v1, %v4015_v35 }
 0x5cd   : > { %v4018_v44 = vpop.permute.xlu1 %4017 }
 0x5ce   : > { %v4020_v51 = vunpack.i.h.bf16 %v4018_v44  ;;  %v4019_v20 = vunpack.i.l.bf16 %v4018_v44  ;;  %v4023_v53 = vpop.permute.xlu0 %4022 }
 0x5cf   : > { %v4025_v49 = vunpack.i.h.bf16 %v4023_v53  ;;  %v4024_v54 = vunpack.i.l.bf16 %v4023_v53 }
 0x5d0   : > { %v3057_v29 = vsel %vm3054_vm6, %v3048_v28, %v4019_v20  ;;  %v3058_v10 = vsel %vm3054_vm6, %v3049_v3, %v4020_v51 }
 0x5d1   : > { %v3064_v5 = vpack.c.bf16 %v3058_v10, %v3057_v29  ;;  %v4033_v57 = vpop.permute.xlu1 %4032  ;;  %v3055_v61 = vsel %vm3054_vm6, %v3046_v58, %v4024_v54  ;;  %v3056_v34 = vsel %vm3054_vm6, %v3047_v59, %v4025_v49 }
 0x5d2   : > { %v4028_v25 = vpop.permute.xlu0 %4027  ;;  %v3063_v23 = vpack.c.bf16 %v3056_v34, %v3055_v61  ;;  %v4035_v12 = vunpack.i.h.bf16 %v4033_v57  ;;  %v4034_v45 = vunpack.i.l.bf16 %v4033_v57 }
 0x5d3   : > { %v4030_v16 = vunpack.i.h.bf16 %v4028_v25  ;;  %v4029_v27 = vunpack.i.l.bf16 %v4028_v25 }
 0x5d4   : > { %3801 = vmatprep.mubr.bf16.mxu0 %v3063_v23  ;;  %v3052_v38 = vsel %vm3045_vm5, %v3043_v50, %v4034_v45  ;;  %v3053_v26 = vsel %vm3045_vm5, %v3044_v22, %v4035_v12 }
 0x5d5   : > { %v4043_v15 = vpop.permute.xlu1 %4042  ;;  %3802 = vmatmul.mubr.bf16.vlgmr.msra.gmra.mrb[64].mxu0 %v3064_v5  ;;  %v3050_v24 = vsel %vm3045_vm5, %v3041_v2, %v4029_v27  ;;  %v3051_v48 = vsel %vm3045_vm5, %v3042_v63, %v4030_v16 }
 0x5d6   : > { %v4045_v42 = vunpack.i.h.bf16 %v4043_v15  ;;  %v4044_v56 = vunpack.i.l.bf16 %v4043_v15  ;;  %v4038_v37 = vpop.permute.xlu0 %4037 }
 0x5d7   : > { %v4040_v19 = vunpack.i.h.bf16 %v4038_v37  ;;  %v4039_v33 = vunpack.i.l.bf16 %v4038_v37 }
 0x5d8   : > { %v3061_v47 = vsel %vm3054_vm6, %v3052_v38, %v4044_v56  ;;  %v3062_v18 = vsel %vm3054_vm6, %v3053_v26, %v4045_v42 }
 0x5d9   : > { %v3059_v31 = vsel %vm3054_vm6, %v3050_v24, %v4039_v33  ;;  %v3060_v30 = vsel %vm3054_vm6, %v3051_v48, %v4040_v19  ;;  %v3066_v55 = vpack.c.bf16 %v3062_v18, %v3061_v47 }
 0x5da   : > { %v3065_v62 = vpack.c.bf16 %v3060_v30, %v3059_v31 }
 0x5dc   : > { %3805 = vmatprep.mubr.bf16.mxu0 %v3065_v62 }
 0x5dd   : > { %3806 = vmatmul.mubr.bf16.gmra.mrb[68].mxu0 %v3066_v55 }
 0x6a8   : > { %v3803_v11 = vpop.f32.mrb[64].mxu0 }
 0x6a9   : > { %v3181_v13 = vadd.f32 %v3803_v11, %v3456_v41  ;;  %v3172_v17 = vpop.f32.mrb[65].mxu0 }
 0x6aa   : > { %v3173_v35 = vadd.f32 %v3456_v41, %v3172_v17  ;;  %v3804_v8 = vpop.f32.mrb[66].mxu0 }
 0x6ab   : > { %3205 = vst [vmem:[%s352_s26 + $0x10] sm:$0xff] %v3181_v13  ;;  %v3184_v32 = vadd.f32 %v3804_v8, %v3456_v41  ;;  %v3175_v0 = vpop.f32.mrb[67].mxu0 }
 0x6ac   : > { %3203 = vst [vmem:[%s352_s26] sm:$0xff] %v3173_v35  ;;  %v3176_v46 = vadd.f32 %v3456_v41, %v3175_v0 }
 0x6ad   : > { %3206 = vst [vmem:[%s352_s26 + $0x18] sm:$0xff] %v3184_v32 }
 0x6ae   : > { %3204 = vst [vmem:[%s352_s26 + $0x8] sm:$0xff] %v3176_v46 }
 0x6b0   : > { %v3807_v43 = vpop.f32.mrb[68].mxu0 }
 0x6b1   : > { %v3197_v44 = vadd.f32 %v3807_v43, %v3456_v41  ;;  %v3188_v1 = vpop.f32.mrb[69].mxu0 }
 0x6b2   : > { %v3189_v40 = vadd.f32 %v3456_v41, %v3188_v1  ;;  %v3808_v51 = vpop.f32.mrb[70].mxu0 }
 0x6b3   : > { %3209 = vst [vmem:[%s352_s26 + $0x30] sm:$0xff] %v3197_v44  ;;  %v3200_v20 = vadd.f32 %v3808_v51, %v3456_v41  ;;  %v3191_v53 = vpop.f32.mrb[71].mxu0 }
 0x6b4   : > { %3207 = vst [vmem:[%s352_s26 + $0x20] sm:$0xff] %v3189_v40  ;;  %v3192_v28 = vadd.f32 %v3456_v41, %v3191_v53 }
 0x6b5   : > { %3210 = vst [vmem:[%s352_s26 + $0x38] sm:$0xff] %v3200_v20 }
 0x6b6   : > { %3208 = vst [vmem:[%s352_s26 + $0x28] sm:$0xff] %v3192_v28 }
 0x6b7   : > { %4499 = shalt.err (!%p4496_p3)
}
 0x6b8   : > { %s4500_s13 = scalar_lea.hbm %s5936_s3, 1024  ;;  %s4504_s9 = scalar_lea.hbm %s5986_s6, 2048 }
 0x6b9   : > { %p4501_p9 = scmp.ne.s32.totalorder %s5936_s3, %s4500_s13  ;;  %p4505_p7 = scmp.lt.u32.totalorder %s5936_s3, %s5986_s6 }
 0x6ba   : > { %p4506_p12 = scmp.lt.u32.totalorder %s4504_s9, %s4500_s13  ;;  %p4508_p2 = scmp.lt.u32.totalorder %s4500_s13, %s5936_s3 }
 0x6bb   : > { %p4502_p13 = pnand %p4501_p9, %p4772_p5 }
 0x6bc   : > { %p4507_p1 = por %p4506_p12, %p4505_p7 }
 0x6bd   : > { %p4503_p11 = pneg %p4502_p13 }
 0x6be   : > { %p4509_p4 = por %p4508_p2, %p4507_p1 }
 0x6c0   : > { %p4510_p0 = pnand %p4509_p4, %p4503_p11 }
 0x6c2   : > { %4513 = shalt.err (!%p4510_p0)
}
 0x6c3   : > { %s4584_s0 = smov 128   ;;  %s4585_s8 = smov 8  }
 0x6c4   : > { %3825 = dma.vmem_to_hbm [thread:$0]  (%p4772_p5), %s5931_s20, 1024, %s5936_s3, %s3212_s25, %s4584_s0, %s4584_s0, %s4585_s8  }
 0x6c5 PF: > { %s3240_s26 = sand.u32 1, %s4552_s21   ;;  %p6080_p8 = scmp.ne.s32.totalorder %s6018_s28, 0 }
 0x6c6   : > { %p6081_p6 = scmp.ge.s32.totalorder %s4564_s24, 2  ;;  %s3241_s15 = scalar_lea.sflag [#allocation4], %s3240_s26 }
 0x6c8   : > { %p3845_p10 = pnand %p6081_p6, %p6080_p8 }
 0x6ca   : > { %4547 = dma.done.wait (!%p3845_p10), %s3241_s15, 1024  }
 0x6cb   : > { %4549 = vsyncadd (!%p3845_p10), %s3241_s15, 4294966272  ;;  %p23_p3 = scmp.ge.s32.totalorder %s4737_s14, 4   ;;  %s6082_s21 = smov %s4556_s22 }
 0x6cc   : > { %s6083_s22 = smov %s4560_s23  ;;  %s6084_s23 = smov %s4768_s11 }
 0x6cd   : > { %s6085_s24 = smov %s4737_s14  ;;  %25 = sbr.rel (!%p23_p3) target bundleno = 13 (0xd), region = 114 }
 0x6d4   :  { %3246 = vsyncpa [#allocation3], 1 }
 0x6d5   :  { %3248 = vsyncpa [#allocation3 + $0x1], 1 }
 0x6d6   :  { %3249 = vsyncpa [#allocation6], 1 }
 0x6d7   :  { %3251 = vsyncpa [#allocation6 + $0x1], 1 }
 0x6d8   :  { %3252 = vsyncpa [#allocation9], 1 }
 0x6d9   :  { %3253 = vsyncpa [#allocation4], 1 }
 0x6da   :  { %3255 = vsyncpa [#allocation4 + $0x1], 1 }

</bundles_post_ra>
